<compile_context>
chip_gen: v6e
topology: v6e:2x2x1
jax: 0.10.0
libtpu: 0.0.40
codegen_flags: <defaults>
</compile_context>

<pallas_src>
import functools
import math

import numpy as np

import jax
import jax.numpy as jnp
from jax.experimental import pallas as pl
from jax.experimental.pallas import tpu as pltpu


# ------------------------------ static helpers ------------------------------

def out_size(l_in, kernel_size, padding, dilation=1, stride=1):
    a = l_in + 2 * padding - dilation * (kernel_size - 1) - 1
    b = int(a / stride)
    return b + 1


def _round_up(x, m):
    return ((x + m - 1) // m) * m


def _static_config(params):
    """All static shape/layout metadata derived from params."""
    S = params["sequence_length"]
    E = params["embedding_dim"]
    F = params["num_filters"]
    fss = tuple(params["filter_sizes"])

    pads = [int(f / 2 - 1) for f in fss]
    p_max = max(pads)

    branches = []
    row_off = 0
    for fsz, pad in zip(fss, pads):
        l_out = out_size(S, fsz, pad, stride=2)
        branches.append(dict(fsz=fsz, pad=pad, start=p_max - pad,
                             l_out=l_out, row_off=row_off))
        row_off = _round_up(row_off + l_out, 8)      # sublane-aligned row offsets
    L_pad = _round_up(row_off, 8)

    s_tot = S + 2 * p_max
    seq_hi = p_max + (s_tot % 2)                     # make padded length even
    s_even = S + p_max + seq_hi

    return dict(
        S=S, E=E, F=F,
        branches=branches, p_max=p_max, seq_hi=seq_hi,
        S_half=s_even // 2,
        Ep=_round_up(E, 128),                        # lane-padded embedding dim
        Fp=_round_up(F, 128),                        # lane-padded filter dim
        L_pad=L_pad,
    )


def _linear_plan(K, N, *, tk_max=4096, tn_max=512):
    """Tile plan for y = x @ w + b with pre-padded (Kp, Np) weights."""
    Np = _round_up(N, 128)
    tn = min(tn_max, Np)
    while Np % tn:
        tn -= 128
    # v7x has 2 TensorCores: keep >=2 blocks on the parallel N axis when possible.
    if Np // tn < 2 and Np >= 256 and (Np // 2) % 128 == 0:
        tn = Np // 2
    Kp = _round_up(K, 128)
    tk = min(tk_max, Kp)
    while tk > 128 and Kp % tk:
        tk -= 128
    if Kp % tk:
        Kp = _round_up(Kp, tk)
    return dict(Kp=Kp, Np=Np, tk=tk, tn=tn)


# --------------------- fused conv + bias + ReLU + maxpool --------------------

def _make_conv_pool_kernel(branches, Fp, Bblk):
    nb = len(branches)

    def kernel(x_ref, *refs):
        # refs = [w0..w_{nb-1}, b0..b_{nb-1}, o_ref]
        o_ref = refs[2 * nb]
        # Zero the whole block once so alignment-pad rows/cols are finite zeros
        # (they hit zero rows of fin_wT downstream).
        o_ref[...] = jnp.zeros_like(o_ref)

        for bi in range(Bblk):
            for i, br in enumerate(branches):
                fsz, start = br["fsz"], br["start"]
                l_out, row_off = br["l_out"], br["row_off"]
                w_ref = refs[i]            # (fsz, Ep, Fp)
                b_ref = refs[nb + i]       # (1, Fp)

                # Conv1d(E->F, kernel=fsz, stride=2, pad) as fsz contiguous-tap
                # matmuls over the phase-deinterleaved input, f32 accumulation.
                acc = jnp.zeros((l_out, Fp), jnp.float32)
                for k in range(fsz):
                    ph = (start + k) & 1
                    base = (start + k) >> 1
                    xs = x_ref[bi, ph, pl.ds(base, l_out), :]     # (l_out, Ep)
                    acc = acc + jnp.dot(xs, w_ref[k],
                                        preferred_element_type=jnp.float32)
                y = jnp.maximum(acc + b_ref[...], 0.0)            # ReLU hoisted

                # MaxPool1d(kernel=3, stride=1, padding=1) over the channel-major
                # flattened (F*l_out) axis, evaluated in (t, f) layout.  ReLU is
                # already applied so the implicit -inf pad becomes a 0 pad, and
                # padded filter columns of y are exactly 0.
                z11 = jnp.zeros((1, 1), jnp.float32)
                prev_edge = jnp.concatenate(
                    [z11, y[l_out - 1:l_out, :Fp - 1]], axis=1)   # wrap to prev channel
                next_edge = jnp.concatenate(
                    [y[0:1, 1:], z11], axis=1)                    # wrap to next channel
                prv = jnp.concatenate([prev_edge, y[:l_out - 1, :]], axis=0)
                nxt = jnp.concatenate([y[1:, :], next_edge], axis=0)
                pooled = jnp.maximum(jnp.maximum(y, prv), nxt)    # (l_out, Fp)

                o_ref[bi, pl.ds(row_off, l_out), :] = pooled

    return kernel


def conv_relu_pool(x_ph, conv_ws, conv_bs, cfg, B):
    """Fused conv+bias+ReLU+maxpool for all filter sizes -> (B, L_pad, Fp)."""
    S_half, Ep, Fp, L_pad = cfg["S_half"], cfg["Ep"], cfg["Fp"], cfg["L_pad"]

    # Batch-block the grid; keep double-buffered blocks + resident weights well
    # under v7x's 32 MiB scoped VMEM (v5e default 16 MiB also respected below).
    row_bytes = (2 * S_half * Ep + L_pad * Fp) * 4
    w_bytes = 2 * 4 * (sum(int(w.size) for w in conv_ws)
                       + sum(int(b.size) for b in conv_bs))
    budget = 20 * 1024 * 1024
    Bblk = 1
    for cand in (8, 4, 2, 1):
        if B % cand == 0 and 2 * cand * row_bytes + w_bytes <= budget:
            Bblk = cand
            break

    operands = [x_ph]
    in_specs = [pl.BlockSpec((Bblk, 2, S_half, Ep), lambda b: (b, 0, 0, 0))]
    for w in conv_ws:
        operands.append(w)
        in_specs.append(pl.BlockSpec(w.shape, lambda b: (0, 0, 0)))
    for bias in conv_bs:
        operands.append(bias)
        in_specs.append(pl.BlockSpec(bias.shape, lambda b: (0, 0)))

    return pl.pallas_call(
        _make_conv_pool_kernel(cfg["branches"], Fp, Bblk),
        out_shape=jax.ShapeDtypeStruct((B, L_pad, Fp), jnp.float32),
        grid=(B // Bblk,),
        in_specs=in_specs,
        out_specs=pl.BlockSpec((Bblk, L_pad, Fp), lambda b: (b, 0, 0)),
        compiler_params=pltpu.CompilerParams(
            dimension_semantics=("parallel",),
            vmem_limit_bytes=32 * 1024 * 1024),
    )(*operands)


# ----------------------------- gridded linear --------------------------------

def _linear_kernel(x_ref, w_ref, b_ref, o_ref, acc_ref, *, apply_relu):
    k = pl.program_id(1)

    @pl.when(k == 0)
    def _():
        acc_ref[...] = jnp.zeros_like(acc_ref)

    acc_ref[...] += jnp.dot(x_ref[...], w_ref[...],
                            preferred_element_type=jnp.float32)

    @pl.when(k == pl.num_programs(1) - 1)
    def _():
        r = acc_ref[...] + b_ref[...]
        if apply_relu:
            r = jnp.maximum(r, 0.0)
        o_ref[...] = r


def linear(x, w, b, plan, *, apply_relu):
    """y = x @ w + b (+ optional ReLU).  w/b are pre-padded (Kp,Np)/(1,Np)."""
    M, K = x.shape
    Kp, Np, tk, tn = plan["Kp"], plan["Np"], plan["tk"], plan["tn"]
    if K != Kp:  # only in the generic fallback; normally folded away at prepare time
        x = jnp.pad(x, ((0, 0), (0, Kp - K)))
    xb = x.astype(jnp.bfloat16)   # bf16 MXU path; accumulation stays f32

    return pl.pallas_call(
        functools.partial(_linear_kernel, apply_relu=apply_relu),
        out_shape=jax.ShapeDtypeStruct((M, Np), jnp.float32),
        grid=(Np // tn, Kp // tk),
        in_specs=[
            pl.BlockSpec((M, tk), lambda j, k: (0, k)),
            pl.BlockSpec((tk, tn), lambda j, k: (k, j)),
            pl.BlockSpec((1, tn), lambda j, k: (0, j)),
        ],
        out_specs=pl.BlockSpec((M, tn), lambda j, k: (0, j)),
        scratch_shapes=[pltpu.VMEM((M, tn), jnp.float32)],
        compiler_params=pltpu.CompilerParams(
            dimension_semantics=("parallel", "arbitrary"),
            vmem_limit_bytes=32 * 1024 * 1024),
    )(xb, w, b)


# ------------------------------ weight prepare --------------------------------

def prepare_weights(weights, params):
    """One-time re-layout/pad of PyTorch-style weights into kernel-ready layout."""
    cfg = _static_config(params)
    E, F = cfg["E"], cfg["F"]
    Ep, Fp, L_pad = cfg["Ep"], cfg["Fp"], cfg["L_pad"]
    H = params["hidden_dims"]
    Y = params["y_dim"]

    conv_ws, conv_bs = [], []
    for i, br in enumerate(cfg["branches"]):
        fsz = br["fsz"]
        w = np.asarray(weights[f"conv{i}_w"], np.float32)       # (F, E, fsz)
        wk = np.zeros((fsz, Ep, Fp), np.float32)
        wk[:, :E, :F] = np.transpose(w, (2, 1, 0))
        bk = np.zeros((1, Fp), np.float32)
        bk[0, :F] = np.asarray(weights[f"conv{i}_b"], np.float32)
        conv_ws.append(jnp.asarray(wk))
        conv_bs.append(jnp.asarray(bk))

    # fin layer: consume the conv kernel's (row, f) layout directly; absorb the
    # channel-major (f*l_out + t) flatten order and all alignment padding into
    # a prepare-time scatter of fin_w's columns (zero rows at padded positions).
    K_fin = L_pad * Fp
    plan_fin = _linear_plan(K_fin, H)
    fin_w = np.asarray(weights["fin_w"], np.float32)            # (H, fin_l_out)
    fin_full = np.zeros((plan_fin["Kp"], plan_fin["Np"]), np.float32)
    flat_off = 0
    for br in cfg["branches"]:
        l_out, row_off = br["l_out"], br["row_off"]
        t = np.arange(l_out)[:, None]
        f = np.arange(F)[None, :]
        dst = ((row_off + t) * Fp + f).reshape(-1)
        src = (flat_off + f * l_out + t).reshape(-1)
        fin_full[dst, :H] = fin_w.T[src, :]
        flat_off += l_out * F
    fin_b = np.zeros((1, plan_fin["Np"]), np.float32)
    fin_b[0, :H] = np.asarray(weights["fin_b"], np.float32)

    # out layer: K is the fin layer's padded width; padded rows are zero so the
    # fin output can be fed through without slicing.
    plan_out = _linear_plan(plan_fin["Np"], Y)
    out_w = np.asarray(weights["out_w"], np.float32)            # (Y, H)
    out_full = np.zeros((plan_out["Kp"], plan_out["Np"]), np.float32)
    out_full[:H, :Y] = out_w.T
    out_b = np.zeros((1, plan_out["Np"]), np.float32)
    out_b[0, :Y] = np.asarray(weights["out_b"], np.float32)

    static = dict(cfg=cfg, fin_plan=plan_fin, out_plan=plan_out)
    arrays = dict(
        conv_w=conv_ws, conv_b=conv_bs,
        fin_w=jnp.asarray(fin_full, jnp.bfloat16), fin_b=jnp.asarray(fin_b),
        out_w=jnp.asarray(out_full, jnp.bfloat16), out_b=jnp.asarray(out_b),
    )
    return static, arrays


# ------------------------------ forward pass ---------------------------------

def cnn_encoder_forward(inputs, arrays, params, static):
    """inputs: (B, sequence_length, embedding_dim) — matches the PyTorch call."""
    cfg = static["cfg"]
    B, S, E = inputs.shape

    # Zero-pad once: largest conv padding on the sequence axis + lane padding on E,
    # then de-interleave the stride-2 phases so every conv tap is a contiguous read.
    x = jnp.pad(inputs, ((0, 0),
                         (cfg["p_max"], cfg["seq_hi"]),
                         (0, cfg["Ep"] - E)))
    x_ph = x.reshape(B, cfg["S_half"], 2, cfg["Ep"]).transpose(0, 2, 1, 3)

    pooled = conv_relu_pool(x_ph, arrays["conv_w"], arrays["conv_b"], cfg, B)
    feats = pooled.reshape(B, cfg["L_pad"] * cfg["Fp"])   # lane-dense, no transpose

    h = linear(feats, arrays["fin_w"], arrays["fin_b"], static["fin_plan"],
               apply_relu=True)
    # TODO(synk): Dropout(p=1e-19) layers are identity at inference (no RNG mask).
    out = linear(h, arrays["out_w"], arrays["out_b"], static["out_plan"],
                 apply_relu=False)
    return out[:, :params["y_dim"]]


# ----------------------------- parameter init --------------------------------

def xavier_uniform(key, shape, fan_in, fan_out):
    bound = math.sqrt(6.0 / (fan_in + fan_out))
    return jax.random.uniform(key, shape, jnp.float32, -bound, bound)


def uniform_bias(key, shape, fan_in):
    bound = 1.0 / math.sqrt(fan_in)
    return jax.random.uniform(key, shape, jnp.float32, -bound, bound)


def init_weights(key, params):
    E = params["embedding_dim"]
    F = params["num_filters"]
    S = params["sequence_length"]
    H = params["hidden_dims"]
    Y = params["y_dim"]

    weights = {}
    fin_l_out = 0
    keys = jax.random.split(key, 2 * len(params["filter_sizes"]) + 4)
    k = 0
    for i, fsz in enumerate(params["filter_sizes"]):
        pad = int(fsz / 2 - 1)
        l_out = out_size(S, fsz, pad, stride=2)
        fin_l_out += l_out * F
        weights[f"conv{i}_w"] = xavier_uniform(
            keys[k], (F, E, fsz), fan_in=E * fsz, fan_out=F * fsz); k += 1
        weights[f"conv{i}_b"] = uniform_bias(keys[k], (F,), fan_in=E * fsz); k += 1
    weights["fin_w"] = xavier_uniform(keys[k], (H, fin_l_out), fin_l_out, H); k += 1
    weights["fin_b"] = uniform_bias(keys[k], (H,), fin_l_out); k += 1
    weights["out_w"] = xavier_uniform(keys[k], (Y, H), H, Y); k += 1
    weights["out_b"] = uniform_bias(keys[k], (Y,), H); k += 1
    return weights


# ---------------------------- pure-JAX reference -----------------------------

def reference_forward(inputs, params, weights):
    """Pure-jnp mirror of the PyTorch module (correctness check only, f32)."""
    B, S, E = inputs.shape
    F = params["num_filters"]
    conv_out = []
    for i, fsz in enumerate(params["filter_sizes"]):
        pad = int(fsz / 2 - 1)
        l_out = out_size(S, fsz, pad, stride=2)
        x_pad = jnp.pad(inputs, ((0, 0), (pad, pad), (0, 0)))
        idx = 2 * jnp.arange(l_out)[:, None] + jnp.arange(fsz)[None, :]
        patches = x_pad[:, idx, :]                                 # (B,l_out,fsz,E)
        conv = jnp.einsum("blke,fek->blf", patches, weights[f"conv{i}_w"])
        conv = conv + weights[f"conv{i}_b"]
        o = jnp.transpose(conv, (0, 2, 1)).reshape(B, F * l_out)   # channel-major
        op = jnp.pad(o, ((0, 0), (1, 1)), constant_values=-jnp.inf)
        o = jnp.maximum(jnp.maximum(op[:, :-2], op[:, 1:-1]), op[:, 2:])
        o = jnp.maximum(o, 0.0)
        conv_out.append(o)
    o = jnp.concatenate(conv_out, axis=1)
    h = jnp.maximum(o @ weights["fin_w"].T + weights["fin_b"], 0.0)
    return h @ weights["out_w"].T + weights["out_b"]


# ---------------------------------- main --------------------------------------

if __name__ == "__main__":
    params = dict(
        sequence_length=8,
        embedding_dim=16,
        num_filters=8,
        filter_sizes=(2, 4, 8),
        hidden_dims=32,
        y_dim=16,
    )
    B = 2

    key = jax.random.PRNGKey(0)
    k_w, k_x = jax.random.split(key)
    weights = init_weights(k_w, params)
    prep_static, prep_arrays = prepare_weights(weights, params)
    x = jax.random.normal(
        k_x, (B, params["sequence_length"], params["embedding_dim"]), jnp.float32)

    fwd = jax.jit(lambda inp, arrs: cnn_encoder_forward(inp, arrs, params, prep_static))
    out = jax.block_until_ready(fwd(x, prep_arrays))

    assert out.shape == (B, params["y_dim"]), out.shape
    assert bool(jnp.all(jnp.isfinite(out)))
    ref = reference_forward(x, params, weights)
    # fin/out weights run in bf16 on the MXU -> compare with a loosened tolerance.
    err = float(jnp.max(jnp.abs(out - ref)))
    assert bool(jnp.allclose(out, ref, atol=5e-2, rtol=5e-2)), err
    print("KERNEL_OK")
</pallas_src>

<mosaic_0001>
module attributes {stable_mosaic.version = 11 : i64} {
  func.func @kernel(%arg0: i32, %arg1: memref<2x2x7x128xf32, #tpu.memory_space<vmem>>, %arg2: memref<2x128x128xf32, #tpu.memory_space<vmem>>, %arg3: memref<4x128x128xf32, #tpu.memory_space<vmem>>, %arg4: memref<8x128x128xf32, #tpu.memory_space<vmem>>, %arg5: memref<1x128xf32, #tpu.memory_space<vmem>>, %arg6: memref<1x128xf32, #tpu.memory_space<vmem>>, %arg7: memref<1x128xf32, #tpu.memory_space<vmem>>, %arg8: memref<2x24x128xf32, #tpu.memory_space<vmem>>) attributes {dimension_semantics = [#tpu.dimension_semantics<parallel>], iteration_bounds = array<i64: 1>, scalar_prefetch = 0 : i64, scratch_operands = 0 : i64, tpu.core_type = #tpu.core_type<tc>, window_params = [{transform_indices = @transform_0, window_bounds = array<i64: 2, 2, 7, 128>}, {pipeline_mode = #tpu.pipeline_mode<synchronous>, transform_indices = @transform_1, window_bounds = array<i64: 2, 128, 128>}, {pipeline_mode = #tpu.pipeline_mode<synchronous>, transform_indices = @transform_2, window_bounds = array<i64: 4, 128, 128>}, {pipeline_mode = #tpu.pipeline_mode<synchronous>, transform_indices = @transform_3, window_bounds = array<i64: 8, 128, 128>}, {pipeline_mode = #tpu.pipeline_mode<synchronous>, transform_indices = @transform_4, window_bounds = array<i64: 1, 128>}, {pipeline_mode = #tpu.pipeline_mode<synchronous>, transform_indices = @transform_5, window_bounds = array<i64: 1, 128>}, {pipeline_mode = #tpu.pipeline_mode<synchronous>, transform_indices = @transform_6, window_bounds = array<i64: 1, 128>}, {transform_indices = @transform_7, window_bounds = array<i64: 2, 24, 128>}]} {
    %cst = arith.constant 0.000000e+00 : f32
    %0 = vector.broadcast %cst : f32 to vector<2x24x128xf32>
    %c0 = arith.constant 0 : index
    %c0_0 = arith.constant 0 : index
    %c0_1 = arith.constant 0 : index
    %1 = vector.load %arg8[%c0, %c0_0, %c0_1] : memref<2x24x128xf32, #tpu.memory_space<vmem>>, vector<2x24x128xf32>
    tpu.vector_store %arg8[%c0, %c0_0, %c0_1], %0 {strides = array<i32>} : memref<2x24x128xf32, #tpu.memory_space<vmem>>, vector<2x24x128xf32>,
    %cst_2 = arith.constant 0.000000e+00 : f32
    %2 = vector.broadcast %cst_2 : f32 to vector<4x128xf32>
    %c0_3 = arith.constant 0 : index
    %c1 = arith.constant 1 : index
    %c1_4 = arith.constant 1 : index
    %c0_5 = arith.constant 0 : index
    %3 = vector.load %arg1[%c0_3, %c1, %c1_4, %c0_5] : memref<2x2x7x128xf32, #tpu.memory_space<vmem>>, vector<1x1x4x128xf32>
    %4 = vector.shape_cast %3 : vector<1x1x4x128xf32> to vector<4x128xf32>
    %c0_6 = arith.constant 0 : index
    %c0_7 = arith.constant 0 : index
    %c0_8 = arith.constant 0 : index
    %5 = vector.load %arg2[%c0_6, %c0_7, %c0_8] : memref<2x128x128xf32, #tpu.memory_space<vmem>>, vector<1x128x128xf32>
    %6 = vector.shape_cast %5 : vector<1x128x128xf32> to vector<128x128xf32>
    %cst_9 = arith.constant dense<0.000000e+00> : vector<4x128xf32>
    %7 = tpu.matmul %4, %6, %cst_9 {dimension_numbers = #tpu.dot_dimension_numbers<[1], [0], [0], [1], [0, 0, 1, 1], [], []>} : vector<4x128xf32>, vector<128x128xf32>, vector<4x128xf32> -> vector<4x128xf32>
    %8 = arith.addf %2, %7 : vector<4x128xf32>
    %c0_10 = arith.constant 0 : index
    %c0_11 = arith.constant 0 : index
    %c2 = arith.constant 2 : index
    %c0_12 = arith.constant 0 : index
    %9 = vector.load %arg1[%c0_10, %c0_11, %c2, %c0_12] : memref<2x2x7x128xf32, #tpu.memory_space<vmem>>, vector<1x1x4x128xf32>
    %10 = vector.shape_cast %9 : vector<1x1x4x128xf32> to vector<4x128xf32>
    %c1_13 = arith.constant 1 : index
    %c0_14 = arith.constant 0 : index
    %c0_15 = arith.constant 0 : index
    %11 = vector.load %arg2[%c1_13, %c0_14, %c0_15] : memref<2x128x128xf32, #tpu.memory_space<vmem>>, vector<1x128x128xf32>
    %12 = vector.shape_cast %11 : vector<1x128x128xf32> to vector<128x128xf32>
    %cst_16 = arith.constant dense<0.000000e+00> : vector<4x128xf32>
    %13 = tpu.matmul %10, %12, %cst_16 {dimension_numbers = #tpu.dot_dimension_numbers<[1], [0], [0], [1], [0, 0, 1, 1], [], []>} : vector<4x128xf32>, vector<128x128xf32>, vector<4x128xf32> -> vector<4x128xf32>
    %14 = arith.addf %8, %13 : vector<4x128xf32>
    %c0_17 = arith.constant 0 : index
    %c0_18 = arith.constant 0 : index
    %15 = vector.load %arg5[%c0_17, %c0_18] : memref<1x128xf32, #tpu.memory_space<vmem>>, vector<1x128xf32>
    %16 = vector.broadcast %15 : vector<1x128xf32> to vector<4x128xf32>
    %17 = arith.addf %14, %16 : vector<4x128xf32>
    %cst_19 = arith.constant 0.000000e+00 : f32
    %18 = vector.broadcast %cst_19 : f32 to vector<4x128xf32>
    %19 = arith.maximumf %17, %18 : vector<4x128xf32>
    %cst_20 = arith.constant 0.000000e+00 : f32
    %20 = vector.broadcast %cst_20 : f32 to vector<1x1xf32>
    %21 = vector.extract_strided_slice %19 {offsets = [3, 0], sizes = [1, 127], strides = [1, 1]} : vector<4x128xf32> to vector<1x127xf32>
    %22 = tpu.concatenate %20, %21 in 1 : vector<1x1xf32>, vector<1x127xf32> -> vector<1x128xf32>
    %23 = vector.extract_strided_slice %19 {offsets = [0, 1], sizes = [1, 127], strides = [1, 1]} : vector<4x128xf32> to vector<1x127xf32>
    %24 = tpu.concatenate %23, %20 in 1 : vector<1x127xf32>, vector<1x1xf32> -> vector<1x128xf32>
    %25 = vector.extract_strided_slice %19 {offsets = [0, 0], sizes = [3, 128], strides = [1, 1]} : vector<4x128xf32> to vector<3x128xf32>
    %26 = tpu.concatenate %22, %25 in 0 : vector<1x128xf32>, vector<3x128xf32> -> vector<4x128xf32>
    %27 = vector.extract_strided_slice %19 {offsets = [1, 0], sizes = [3, 128], strides = [1, 1]} : vector<4x128xf32> to vector<3x128xf32>
    %28 = tpu.concatenate %27, %24 in 0 : vector<3x128xf32>, vector<1x128xf32> -> vector<4x128xf32>
    %29 = arith.maximumf %19, %26 : vector<4x128xf32>
    %30 = arith.maximumf %29, %28 : vector<4x128xf32>
    %c0_21 = arith.constant 0 : index
    %c0_22 = arith.constant 0 : index
    %c0_23 = arith.constant 0 : index
    %31 = vector.load %arg8[%c0_21, %c0_22, %c0_23] : memref<2x24x128xf32, #tpu.memory_space<vmem>>, vector<1x4x128xf32>
    %32 = vector.shape_cast %31 : vector<1x4x128xf32> to vector<4x128xf32>
    %33 = vector.shape_cast %30 : vector<4x128xf32> to vector<1x4x128xf32>
    tpu.vector_store %arg8[%c0_21, %c0_22, %c0_23], %33 {strides = array<i32>} : memref<2x24x128xf32, #tpu.memory_space<vmem>>, vector<1x4x128xf32>,
    %cst_24 = arith.constant 0.000000e+00 : f32
    %34 = vector.broadcast %cst_24 : f32 to vector<4x128xf32>
    %c0_25 = arith.constant 0 : index
    %c0_26 = arith.constant 0 : index
    %c1_27 = arith.constant 1 : index
    %c0_28 = arith.constant 0 : index
    %35 = vector.load %arg1[%c0_25, %c0_26, %c1_27, %c0_28] : memref<2x2x7x128xf32, #tpu.memory_space<vmem>>, vector<1x1x4x128xf32>
    %36 = vector.shape_cast %35 : vector<1x1x4x128xf32> to vector<4x128xf32>
    %c0_29 = arith.constant 0 : index
    %c0_30 = arith.constant 0 : index
    %c0_31 = arith.constant 0 : index
    %37 = vector.load %arg3[%c0_29, %c0_30, %c0_31] : memref<4x128x128xf32, #tpu.memory_space<vmem>>, vector<1x128x128xf32>
    %38 = vector.shape_cast %37 : vector<1x128x128xf32> to vector<128x128xf32>
    %cst_32 = arith.constant dense<0.000000e+00> : vector<4x128xf32>
    %39 = tpu.matmul %36, %38, %cst_32 {dimension_numbers = #tpu.dot_dimension_numbers<[1], [0], [0], [1], [0, 0, 1, 1], [], []>} : vector<4x128xf32>, vector<128x128xf32>, vector<4x128xf32> -> vector<4x128xf32>
    %40 = arith.addf %34, %39 : vector<4x128xf32>
    %c0_33 = arith.constant 0 : index
    %c1_34 = arith.constant 1 : index
    %c1_35 = arith.constant 1 : index
    %c0_36 = arith.constant 0 : index
    %41 = vector.load %arg1[%c0_33, %c1_34, %c1_35, %c0_36] : memref<2x2x7x128xf32, #tpu.memory_space<vmem>>, vector<1x1x4x128xf32>
    %42 = vector.shape_cast %41 : vector<1x1x4x128xf32> to vector<4x128xf32>
    %c1_37 = arith.constant 1 : index
    %c0_38 = arith.constant 0 : index
    %c0_39 = arith.constant 0 : index
    %43 = vector.load %arg3[%c1_37, %c0_38, %c0_39] : memref<4x128x128xf32, #tpu.memory_space<vmem>>, vector<1x128x128xf32>
    %44 = vector.shape_cast %43 : vector<1x128x128xf32> to vector<128x128xf32>
    %cst_40 = arith.constant dense<0.000000e+00> : vector<4x128xf32>
    %45 = tpu.matmul %42, %44, %cst_40 {dimension_numbers = #tpu.dot_dimension_numbers<[1], [0], [0], [1], [0, 0, 1, 1], [], []>} : vector<4x128xf32>, vector<128x128xf32>, vector<4x128xf32> -> vector<4x128xf32>
    %46 = arith.addf %40, %45 : vector<4x128xf32>
    %c0_41 = arith.constant 0 : index
    %c0_42 = arith.constant 0 : index
    %c2_43 = arith.constant 2 : index
    %c0_44 = arith.constant 0 : index
    %47 = vector.load %arg1[%c0_41, %c0_42, %c2_43, %c0_44] : memref<2x2x7x128xf32, #tpu.memory_space<vmem>>, vector<1x1x4x128xf32>
    %48 = vector.shape_cast %47 : vector<1x1x4x128xf32> to vector<4x128xf32>
    %c2_45 = arith.constant 2 : index
    %c0_46 = arith.constant 0 : index
    %c0_47 = arith.constant 0 : index
    %49 = vector.load %arg3[%c2_45, %c0_46, %c0_47] : memref<4x128x128xf32, #tpu.memory_space<vmem>>, vector<1x128x128xf32>
    %50 = vector.shape_cast %49 : vector<1x128x128xf32> to vector<128x128xf32>
    %cst_48 = arith.constant dense<0.000000e+00> : vector<4x128xf32>
    %51 = tpu.matmul %48, %50, %cst_48 {dimension_numbers = #tpu.dot_dimension_numbers<[1], [0], [0], [1], [0, 0, 1, 1], [], []>} : vector<4x128xf32>, vector<128x128xf32>, vector<4x128xf32> -> vector<4x128xf32>
    %52 = arith.addf %46, %51 : vector<4x128xf32>
    %c0_49 = arith.constant 0 : index
    %c1_50 = arith.constant 1 : index
    %c2_51 = arith.constant 2 : index
    %c0_52 = arith.constant 0 : index
    %53 = vector.load %arg1[%c0_49, %c1_50, %c2_51, %c0_52] : memref<2x2x7x128xf32, #tpu.memory_space<vmem>>, vector<1x1x4x128xf32>
    %54 = vector.shape_cast %53 : vector<1x1x4x128xf32> to vector<4x128xf32>
    %c3 = arith.constant 3 : index
    %c0_53 = arith.constant 0 : index
    %c0_54 = arith.constant 0 : index
    %55 = vector.load %arg3[%c3, %c0_53, %c0_54] : memref<4x128x128xf32, #tpu.memory_space<vmem>>, vector<1x128x128xf32>
    %56 = vector.shape_cast %55 : vector<1x128x128xf32> to vector<128x128xf32>
    %cst_55 = arith.constant dense<0.000000e+00> : vector<4x128xf32>
    %57 = tpu.matmul %54, %56, %cst_55 {dimension_numbers = #tpu.dot_dimension_numbers<[1], [0], [0], [1], [0, 0, 1, 1], [], []>} : vector<4x128xf32>, vector<128x128xf32>, vector<4x128xf32> -> vector<4x128xf32>
    %58 = arith.addf %52, %57 : vector<4x128xf32>
    %c0_56 = arith.constant 0 : index
    %c0_57 = arith.constant 0 : index
    %59 = vector.load %arg6[%c0_56, %c0_57] : memref<1x128xf32, #tpu.memory_space<vmem>>, vector<1x128xf32>
    %60 = vector.broadcast %59 : vector<1x128xf32> to vector<4x128xf32>
    %61 = arith.addf %58, %60 : vector<4x128xf32>
    %cst_58 = arith.constant 0.000000e+00 : f32
    %62 = vector.broadcast %cst_58 : f32 to vector<4x128xf32>
    %63 = arith.maximumf %61, %62 : vector<4x128xf32>
    %cst_59 = arith.constant 0.000000e+00 : f32
    %64 = vector.broadcast %cst_59 : f32 to vector<1x1xf32>
    %65 = vector.extract_strided_slice %63 {offsets = [3, 0], sizes = [1, 127], strides = [1, 1]} : vector<4x128xf32> to vector<1x127xf32>
    %66 = tpu.concatenate %64, %65 in 1 : vector<1x1xf32>, vector<1x127xf32> -> vector<1x128xf32>
    %67 = vector.extract_strided_slice %63 {offsets = [0, 1], sizes = [1, 127], strides = [1, 1]} : vector<4x128xf32> to vector<1x127xf32>
    %68 = tpu.concatenate %67, %64 in 1 : vector<1x127xf32>, vector<1x1xf32> -> vector<1x128xf32>
    %69 = vector.extract_strided_slice %63 {offsets = [0, 0], sizes = [3, 128], strides = [1, 1]} : vector<4x128xf32> to vector<3x128xf32>
    %70 = tpu.concatenate %66, %69 in 0 : vector<1x128xf32>, vector<3x128xf32> -> vector<4x128xf32>
    %71 = vector.extract_strided_slice %63 {offsets = [1, 0], sizes = [3, 128], strides = [1, 1]} : vector<4x128xf32> to vector<3x128xf32>
    %72 = tpu.concatenate %71, %68 in 0 : vector<3x128xf32>, vector<1x128xf32> -> vector<4x128xf32>
    %73 = arith.maximumf %63, %70 : vector<4x128xf32>
    %74 = arith.maximumf %73, %72 : vector<4x128xf32>
    %c0_60 = arith.constant 0 : index
    %c8 = arith.constant 8 : index
    %c0_61 = arith.constant 0 : index
    %75 = vector.load %arg8[%c0_60, %c8, %c0_61] : memref<2x24x128xf32, #tpu.memory_space<vmem>>, vector<1x4x128xf32>
    %76 = vector.shape_cast %75 : vector<1x4x128xf32> to vector<4x128xf32>
    %77 = vector.shape_cast %74 : vector<4x128xf32> to vector<1x4x128xf32>
    tpu.vector_store %arg8[%c0_60, %c8, %c0_61], %77 {strides = array<i32>} : memref<2x24x128xf32, #tpu.memory_space<vmem>>, vector<1x4x128xf32>,
    %cst_62 = arith.constant 0.000000e+00 : f32
    %78 = vector.broadcast %cst_62 : f32 to vector<4x128xf32>
    %c0_63 = arith.constant 0 : index
    %c0_64 = arith.constant 0 : index
    %c0_65 = arith.constant 0 : index
    %c0_66 = arith.constant 0 : index
    %79 = vector.load %arg1[%c0_63, %c0_64, %c0_65, %c0_66] : memref<2x2x7x128xf32, #tpu.memory_space<vmem>>, vector<1x1x4x128xf32>
    %80 = vector.shape_cast %79 : vector<1x1x4x128xf32> to vector<4x128xf32>
    %c0_67 = arith.constant 0 : index
    %c0_68 = arith.constant 0 : index
    %c0_69 = arith.constant 0 : index
    %81 = vector.load %arg4[%c0_67, %c0_68, %c0_69] : memref<8x128x128xf32, #tpu.memory_space<vmem>>, vector<1x128x128xf32>
    %82 = vector.shape_cast %81 : vector<1x128x128xf32> to vector<128x128xf32>
    %cst_70 = arith.constant dense<0.000000e+00> : vector<4x128xf32>
    %83 = tpu.matmul %80, %82, %cst_70 {dimension_numbers = #tpu.dot_dimension_numbers<[1], [0], [0], [1], [0, 0, 1, 1], [], []>} : vector<4x128xf32>, vector<128x128xf32>, vector<4x128xf32> -> vector<4x128xf32>
    %84 = arith.addf %78, %83 : vector<4x128xf32>
    %c0_71 = arith.constant 0 : index
    %c1_72 = arith.constant 1 : index
    %c0_73 = arith.constant 0 : index
    %c0_74 = arith.constant 0 : index
    %85 = vector.load %arg1[%c0_71, %c1_72, %c0_73, %c0_74] : memref<2x2x7x128xf32, #tpu.memory_space<vmem>>, vector<1x1x4x128xf32>
    %86 = vector.shape_cast %85 : vector<1x1x4x128xf32> to vector<4x128xf32>
    %c1_75 = arith.constant 1 : index
    %c0_76 = arith.constant 0 : index
    %c0_77 = arith.constant 0 : index
    %87 = vector.load %arg4[%c1_75, %c0_76, %c0_77] : memref<8x128x128xf32, #tpu.memory_space<vmem>>, vector<1x128x128xf32>
    %88 = vector.shape_cast %87 : vector<1x128x128xf32> to vector<128x128xf32>
    %cst_78 = arith.constant dense<0.000000e+00> : vector<4x128xf32>
    %89 = tpu.matmul %86, %88, %cst_78 {dimension_numbers = #tpu.dot_dimension_numbers<[1], [0], [0], [1], [0, 0, 1, 1], [], []>} : vector<4x128xf32>, vector<128x128xf32>, vector<4x128xf32> -> vector<4x128xf32>
    %90 = arith.addf %84, %89 : vector<4x128xf32>
    %c0_79 = arith.constant 0 : index
    %c0_80 = arith.constant 0 : index
    %c1_81 = arith.constant 1 : index
    %c0_82 = arith.constant 0 : index
    %91 = vector.load %arg1[%c0_79, %c0_80, %c1_81, %c0_82] : memref<2x2x7x128xf32, #tpu.memory_space<vmem>>, vector<1x1x4x128xf32>
    %92 = vector.shape_cast %91 : vector<1x1x4x128xf32> to vector<4x128xf32>
    %c2_83 = arith.constant 2 : index
    %c0_84 = arith.constant 0 : index
    %c0_85 = arith.constant 0 : index
    %93 = vector.load %arg4[%c2_83, %c0_84, %c0_85] : memref<8x128x128xf32, #tpu.memory_space<vmem>>, vector<1x128x128xf32>
    %94 = vector.shape_cast %93 : vector<1x128x128xf32> to vector<128x128xf32>
    %cst_86 = arith.constant dense<0.000000e+00> : vector<4x128xf32>
    %95 = tpu.matmul %92, %94, %cst_86 {dimension_numbers = #tpu.dot_dimension_numbers<[1], [0], [0], [1], [0, 0, 1, 1], [], []>} : vector<4x128xf32>, vector<128x128xf32>, vector<4x128xf32> -> vector<4x128xf32>
    %96 = arith.addf %90, %95 : vector<4x128xf32>
    %c0_87 = arith.constant 0 : index
    %c1_88 = arith.constant 1 : index
    %c1_89 = arith.constant 1 : index
    %c0_90 = arith.constant 0 : index
    %97 = vector.load %arg1[%c0_87, %c1_88, %c1_89, %c0_90] : memref<2x2x7x128xf32, #tpu.memory_space<vmem>>, vector<1x1x4x128xf32>
    %98 = vector.shape_cast %97 : vector<1x1x4x128xf32> to vector<4x128xf32>
    %c3_91 = arith.constant 3 : index
    %c0_92 = arith.constant 0 : index
    %c0_93 = arith.constant 0 : index
    %99 = vector.load %arg4[%c3_91, %c0_92, %c0_93] : memref<8x128x128xf32, #tpu.memory_space<vmem>>, vector<1x128x128xf32>
    %100 = vector.shape_cast %99 : vector<1x128x128xf32> to vector<128x128xf32>
    %cst_94 = arith.constant dense<0.000000e+00> : vector<4x128xf32>
    %101 = tpu.matmul %98, %100, %cst_94 {dimension_numbers = #tpu.dot_dimension_numbers<[1], [0], [0], [1], [0, 0, 1, 1], [], []>} : vector<4x128xf32>, vector<128x128xf32>, vector<4x128xf32> -> vector<4x128xf32>
    %102 = arith.addf %96, %101 : vector<4x128xf32>
    %c0_95 = arith.constant 0 : index
    %c0_96 = arith.constant 0 : index
    %c2_97 = arith.constant 2 : index
    %c0_98 = arith.constant 0 : index
    %103 = vector.load %arg1[%c0_95, %c0_96, %c2_97, %c0_98] : memref<2x2x7x128xf32, #tpu.memory_space<vmem>>, vector<1x1x4x128xf32>
    %104 = vector.shape_cast %103 : vector<1x1x4x128xf32> to vector<4x128xf32>
    %c4 = arith.constant 4 : index
    %c0_99 = arith.constant 0 : index
    %c0_100 = arith.constant 0 : index
    %105 = vector.load %arg4[%c4, %c0_99, %c0_100] : memref<8x128x128xf32, #tpu.memory_space<vmem>>, vector<1x128x128xf32>
    %106 = vector.shape_cast %105 : vector<1x128x128xf32> to vector<128x128xf32>
    %cst_101 = arith.constant dense<0.000000e+00> : vector<4x128xf32>
    %107 = tpu.matmul %104, %106, %cst_101 {dimension_numbers = #tpu.dot_dimension_numbers<[1], [0], [0], [1], [0, 0, 1, 1], [], []>} : vector<4x128xf32>, vector<128x128xf32>, vector<4x128xf32> -> vector<4x128xf32>
    %108 = arith.addf %102, %107 : vector<4x128xf32>
    %c0_102 = arith.constant 0 : index
    %c1_103 = arith.constant 1 : index
    %c2_104 = arith.constant 2 : index
    %c0_105 = arith.constant 0 : index
    %109 = vector.load %arg1[%c0_102, %c1_103, %c2_104, %c0_105] : memref<2x2x7x128xf32, #tpu.memory_space<vmem>>, vector<1x1x4x128xf32>
    %110 = vector.shape_cast %109 : vector<1x1x4x128xf32> to vector<4x128xf32>
    %c5 = arith.constant 5 : index
    %c0_106 = arith.constant 0 : index
    %c0_107 = arith.constant 0 : index
    %111 = vector.load %arg4[%c5, %c0_106, %c0_107] : memref<8x128x128xf32, #tpu.memory_space<vmem>>, vector<1x128x128xf32>
    %112 = vector.shape_cast %111 : vector<1x128x128xf32> to vector<128x128xf32>
    %cst_108 = arith.constant dense<0.000000e+00> : vector<4x128xf32>
    %113 = tpu.matmul %110, %112, %cst_108 {dimension_numbers = #tpu.dot_dimension_numbers<[1], [0], [0], [1], [0, 0, 1, 1], [], []>} : vector<4x128xf32>, vector<128x128xf32>, vector<4x128xf32> -> vector<4x128xf32>
    %114 = arith.addf %108, %113 : vector<4x128xf32>
    %c0_109 = arith.constant 0 : index
    %c0_110 = arith.constant 0 : index
    %c3_111 = arith.constant 3 : index
    %c0_112 = arith.constant 0 : index
    %115 = vector.load %arg1[%c0_109, %c0_110, %c3_111, %c0_112] : memref<2x2x7x128xf32, #tpu.memory_space<vmem>>, vector<1x1x4x128xf32>
    %116 = vector.shape_cast %115 : vector<1x1x4x128xf32> to vector<4x128xf32>
    %c6 = arith.constant 6 : index
    %c0_113 = arith.constant 0 : index
    %c0_114 = arith.constant 0 : index
    %117 = vector.load %arg4[%c6, %c0_113, %c0_114] : memref<8x128x128xf32, #tpu.memory_space<vmem>>, vector<1x128x128xf32>
    %118 = vector.shape_cast %117 : vector<1x128x128xf32> to vector<128x128xf32>
    %cst_115 = arith.constant dense<0.000000e+00> : vector<4x128xf32>
    %119 = tpu.matmul %116, %118, %cst_115 {dimension_numbers = #tpu.dot_dimension_numbers<[1], [0], [0], [1], [0, 0, 1, 1], [], []>} : vector<4x128xf32>, vector<128x128xf32>, vector<4x128xf32> -> vector<4x128xf32>
    %120 = arith.addf %114, %119 : vector<4x128xf32>
    %c0_116 = arith.constant 0 : index
    %c1_117 = arith.constant 1 : index
    %c3_118 = arith.constant 3 : index
    %c0_119 = arith.constant 0 : index
    %121 = vector.load %arg1[%c0_116, %c1_117, %c3_118, %c0_119] : memref<2x2x7x128xf32, #tpu.memory_space<vmem>>, vector<1x1x4x128xf32>
    %122 = vector.shape_cast %121 : vector<1x1x4x128xf32> to vector<4x128xf32>
    %c7 = arith.constant 7 : index
    %c0_120 = arith.constant 0 : index
    %c0_121 = arith.constant 0 : index
    %123 = vector.load %arg4[%c7, %c0_120, %c0_121] : memref<8x128x128xf32, #tpu.memory_space<vmem>>, vector<1x128x128xf32>
    %124 = vector.shape_cast %123 : vector<1x128x128xf32> to vector<128x128xf32>
    %cst_122 = arith.constant dense<0.000000e+00> : vector<4x128xf32>
    %125 = tpu.matmul %122, %124, %cst_122 {dimension_numbers = #tpu.dot_dimension_numbers<[1], [0], [0], [1], [0, 0, 1, 1], [], []>} : vector<4x128xf32>, vector<128x128xf32>, vector<4x128xf32> -> vector<4x128xf32>
    %126 = arith.addf %120, %125 : vector<4x128xf32>
    %c0_123 = arith.constant 0 : index
    %c0_124 = arith.constant 0 : index
    %127 = vector.load %arg7[%c0_123, %c0_124] : memref<1x128xf32, #tpu.memory_space<vmem>>, vector<1x128xf32>
    %128 = vector.broadcast %127 : vector<1x128xf32> to vector<4x128xf32>
    %129 = arith.addf %126, %128 : vector<4x128xf32>
    %cst_125 = arith.constant 0.000000e+00 : f32
    %130 = vector.broadcast %cst_125 : f32 to vector<4x128xf32>
    %131 = arith.maximumf %129, %130 : vector<4x128xf32>
    %cst_126 = arith.constant 0.000000e+00 : f32
    %132 = vector.broadcast %cst_126 : f32 to vector<1x1xf32>
    %133 = vector.extract_strided_slice %131 {offsets = [3, 0], sizes = [1, 127], strides = [1, 1]} : vector<4x128xf32> to vector<1x127xf32>
    %134 = tpu.concatenate %132, %133 in 1 : vector<1x1xf32>, vector<1x127xf32> -> vector<1x128xf32>
    %135 = vector.extract_strided_slice %131 {offsets = [0, 1], sizes = [1, 127], strides = [1, 1]} : vector<4x128xf32> to vector<1x127xf32>
    %136 = tpu.concatenate %135, %132 in 1 : vector<1x127xf32>, vector<1x1xf32> -> vector<1x128xf32>
    %137 = vector.extract_strided_slice %131 {offsets = [0, 0], sizes = [3, 128], strides = [1, 1]} : vector<4x128xf32> to vector<3x128xf32>
    %138 = tpu.concatenate %134, %137 in 0 : vector<1x128xf32>, vector<3x128xf32> -> vector<4x128xf32>
    %139 = vector.extract_strided_slice %131 {offsets = [1, 0], sizes = [3, 128], strides = [1, 1]} : vector<4x128xf32> to vector<3x128xf32>
    %140 = tpu.concatenate %139, %136 in 0 : vector<3x128xf32>, vector<1x128xf32> -> vector<4x128xf32>
    %141 = arith.maximumf %131, %138 : vector<4x128xf32>
    %142 = arith.maximumf %141, %140 : vector<4x128xf32>
    %c0_127 = arith.constant 0 : index
    %c16 = arith.constant 16 : index
    %c0_128 = arith.constant 0 : index
    %143 = vector.load %arg8[%c0_127, %c16, %c0_128] : memref<2x24x128xf32, #tpu.memory_space<vmem>>, vector<1x4x128xf32>
    %144 = vector.shape_cast %143 : vector<1x4x128xf32> to vector<4x128xf32>
    %145 = vector.shape_cast %142 : vector<4x128xf32> to vector<1x4x128xf32>
    tpu.vector_store %arg8[%c0_127, %c16, %c0_128], %145 {strides = array<i32>} : memref<2x24x128xf32, #tpu.memory_space<vmem>>, vector<1x4x128xf32>,
    %cst_129 = arith.constant 0.000000e+00 : f32
    %146 = vector.broadcast %cst_129 : f32 to vector<4x128xf32>
    %c1_130 = arith.constant 1 : index
    %c1_131 = arith.constant 1 : index
    %c1_132 = arith.constant 1 : index
    %c0_133 = arith.constant 0 : index
    %147 = vector.load %arg1[%c1_130, %c1_131, %c1_132, %c0_133] : memref<2x2x7x128xf32, #tpu.memory_space<vmem>>, vector<1x1x4x128xf32>
    %148 = vector.shape_cast %147 : vector<1x1x4x128xf32> to vector<4x128xf32>
    %c0_134 = arith.constant 0 : index
    %c0_135 = arith.constant 0 : index
    %c0_136 = arith.constant 0 : index
    %149 = vector.load %arg2[%c0_134, %c0_135, %c0_136] : memref<2x128x128xf32, #tpu.memory_space<vmem>>, vector<1x128x128xf32>
    %150 = vector.shape_cast %149 : vector<1x128x128xf32> to vector<128x128xf32>
    %cst_137 = arith.constant dense<0.000000e+00> : vector<4x128xf32>
    %151 = tpu.matmul %148, %150, %cst_137 {dimension_numbers = #tpu.dot_dimension_numbers<[1], [0], [0], [1], [0, 0, 1, 1], [], []>} : vector<4x128xf32>, vector<128x128xf32>, vector<4x128xf32> -> vector<4x128xf32>
    %152 = arith.addf %146, %151 : vector<4x128xf32>
    %c1_138 = arith.constant 1 : index
    %c0_139 = arith.constant 0 : index
    %c2_140 = arith.constant 2 : index
    %c0_141 = arith.constant 0 : index
    %153 = vector.load %arg1[%c1_138, %c0_139, %c2_140, %c0_141] : memref<2x2x7x128xf32, #tpu.memory_space<vmem>>, vector<1x1x4x128xf32>
    %154 = vector.shape_cast %153 : vector<1x1x4x128xf32> to vector<4x128xf32>
    %c1_142 = arith.constant 1 : index
    %c0_143 = arith.constant 0 : index
    %c0_144 = arith.constant 0 : index
    %155 = vector.load %arg2[%c1_142, %c0_143, %c0_144] : memref<2x128x128xf32, #tpu.memory_space<vmem>>, vector<1x128x128xf32>
    %156 = vector.shape_cast %155 : vector<1x128x128xf32> to vector<128x128xf32>
    %cst_145 = arith.constant dense<0.000000e+00> : vector<4x128xf32>
    %157 = tpu.matmul %154, %156, %cst_145 {dimension_numbers = #tpu.dot_dimension_numbers<[1], [0], [0], [1], [0, 0, 1, 1], [], []>} : vector<4x128xf32>, vector<128x128xf32>, vector<4x128xf32> -> vector<4x128xf32>
    %158 = arith.addf %152, %157 : vector<4x128xf32>
    %c0_146 = arith.constant 0 : index
    %c0_147 = arith.constant 0 : index
    %159 = vector.load %arg5[%c0_146, %c0_147] : memref<1x128xf32, #tpu.memory_space<vmem>>, vector<1x128xf32>
    %160 = vector.broadcast %159 : vector<1x128xf32> to vector<4x128xf32>
    %161 = arith.addf %158, %160 : vector<4x128xf32>
    %cst_148 = arith.constant 0.000000e+00 : f32
    %162 = vector.broadcast %cst_148 : f32 to vector<4x128xf32>
    %163 = arith.maximumf %161, %162 : vector<4x128xf32>
    %cst_149 = arith.constant 0.000000e+00 : f32
    %164 = vector.broadcast %cst_149 : f32 to vector<1x1xf32>
    %165 = vector.extract_strided_slice %163 {offsets = [3, 0], sizes = [1, 127], strides = [1, 1]} : vector<4x128xf32> to vector<1x127xf32>
    %166 = tpu.concatenate %164, %165 in 1 : vector<1x1xf32>, vector<1x127xf32> -> vector<1x128xf32>
    %167 = vector.extract_strided_slice %163 {offsets = [0, 1], sizes = [1, 127], strides = [1, 1]} : vector<4x128xf32> to vector<1x127xf32>
    %168 = tpu.concatenate %167, %164 in 1 : vector<1x127xf32>, vector<1x1xf32> -> vector<1x128xf32>
    %169 = vector.extract_strided_slice %163 {offsets = [0, 0], sizes = [3, 128], strides = [1, 1]} : vector<4x128xf32> to vector<3x128xf32>
    %170 = tpu.concatenate %166, %169 in 0 : vector<1x128xf32>, vector<3x128xf32> -> vector<4x128xf32>
    %171 = vector.extract_strided_slice %163 {offsets = [1, 0], sizes = [3, 128], strides = [1, 1]} : vector<4x128xf32> to vector<3x128xf32>
    %172 = tpu.concatenate %171, %168 in 0 : vector<3x128xf32>, vector<1x128xf32> -> vector<4x128xf32>
    %173 = arith.maximumf %163, %170 : vector<4x128xf32>
    %174 = arith.maximumf %173, %172 : vector<4x128xf32>
    %c1_150 = arith.constant 1 : index
    %c0_151 = arith.constant 0 : index
    %c0_152 = arith.constant 0 : index
    %175 = vector.load %arg8[%c1_150, %c0_151, %c0_152] : memref<2x24x128xf32, #tpu.memory_space<vmem>>, vector<1x4x128xf32>
    %176 = vector.shape_cast %175 : vector<1x4x128xf32> to vector<4x128xf32>
    %177 = vector.shape_cast %174 : vector<4x128xf32> to vector<1x4x128xf32>
    tpu.vector_store %arg8[%c1_150, %c0_151, %c0_152], %177 {strides = array<i32>} : memref<2x24x128xf32, #tpu.memory_space<vmem>>, vector<1x4x128xf32>,
    %cst_153 = arith.constant 0.000000e+00 : f32
    %178 = vector.broadcast %cst_153 : f32 to vector<4x128xf32>
    %c1_154 = arith.constant 1 : index
    %c0_155 = arith.constant 0 : index
    %c1_156 = arith.constant 1 : index
    %c0_157 = arith.constant 0 : index
    %179 = vector.load %arg1[%c1_154, %c0_155, %c1_156, %c0_157] : memref<2x2x7x128xf32, #tpu.memory_space<vmem>>, vector<1x1x4x128xf32>
    %180 = vector.shape_cast %179 : vector<1x1x4x128xf32> to vector<4x128xf32>
    %c0_158 = arith.constant 0 : index
    %c0_159 = arith.constant 0 : index
    %c0_160 = arith.constant 0 : index
    %181 = vector.load %arg3[%c0_158, %c0_159, %c0_160] : memref<4x128x128xf32, #tpu.memory_space<vmem>>, vector<1x128x128xf32>
    %182 = vector.shape_cast %181 : vector<1x128x128xf32> to vector<128x128xf32>
    %cst_161 = arith.constant dense<0.000000e+00> : vector<4x128xf32>
    %183 = tpu.matmul %180, %182, %cst_161 {dimension_numbers = #tpu.dot_dimension_numbers<[1], [0], [0], [1], [0, 0, 1, 1], [], []>} : vector<4x128xf32>, vector<128x128xf32>, vector<4x128xf32> -> vector<4x128xf32>
    %184 = arith.addf %178, %183 : vector<4x128xf32>
    %c1_162 = arith.constant 1 : index
    %c1_163 = arith.constant 1 : index
    %c1_164 = arith.constant 1 : index
    %c0_165 = arith.constant 0 : index
    %185 = vector.load %arg1[%c1_162, %c1_163, %c1_164, %c0_165] : memref<2x2x7x128xf32, #tpu.memory_space<vmem>>, vector<1x1x4x128xf32>
    %186 = vector.shape_cast %185 : vector<1x1x4x128xf32> to vector<4x128xf32>
    %c1_166 = arith.constant 1 : index
    %c0_167 = arith.constant 0 : index
    %c0_168 = arith.constant 0 : index
    %187 = vector.load %arg3[%c1_166, %c0_167, %c0_168] : memref<4x128x128xf32, #tpu.memory_space<vmem>>, vector<1x128x128xf32>
    %188 = vector.shape_cast %187 : vector<1x128x128xf32> to vector<128x128xf32>
    %cst_169 = arith.constant dense<0.000000e+00> : vector<4x128xf32>
    %189 = tpu.matmul %186, %188, %cst_169 {dimension_numbers = #tpu.dot_dimension_numbers<[1], [0], [0], [1], [0, 0, 1, 1], [], []>} : vector<4x128xf32>, vector<128x128xf32>, vector<4x128xf32> -> vector<4x128xf32>
    %190 = arith.addf %184, %189 : vector<4x128xf32>
    %c1_170 = arith.constant 1 : index
    %c0_171 = arith.constant 0 : index
    %c2_172 = arith.constant 2 : index
    %c0_173 = arith.constant 0 : index
    %191 = vector.load %arg1[%c1_170, %c0_171, %c2_172, %c0_173] : memref<2x2x7x128xf32, #tpu.memory_space<vmem>>, vector<1x1x4x128xf32>
    %192 = vector.shape_cast %191 : vector<1x1x4x128xf32> to vector<4x128xf32>
    %c2_174 = arith.constant 2 : index
    %c0_175 = arith.constant 0 : index
    %c0_176 = arith.constant 0 : index
    %193 = vector.load %arg3[%c2_174, %c0_175, %c0_176] : memref<4x128x128xf32, #tpu.memory_space<vmem>>, vector<1x128x128xf32>
    %194 = vector.shape_cast %193 : vector<1x128x128xf32> to vector<128x128xf32>
    %cst_177 = arith.constant dense<0.000000e+00> : vector<4x128xf32>
    %195 = tpu.matmul %192, %194, %cst_177 {dimension_numbers = #tpu.dot_dimension_numbers<[1], [0], [0], [1], [0, 0, 1, 1], [], []>} : vector<4x128xf32>, vector<128x128xf32>, vector<4x128xf32> -> vector<4x128xf32>
    %196 = arith.addf %190, %195 : vector<4x128xf32>
    %c1_178 = arith.constant 1 : index
    %c1_179 = arith.constant 1 : index
    %c2_180 = arith.constant 2 : index
    %c0_181 = arith.constant 0 : index
    %197 = vector.load %arg1[%c1_178, %c1_179, %c2_180, %c0_181] : memref<2x2x7x128xf32, #tpu.memory_space<vmem>>, vector<1x1x4x128xf32>
    %198 = vector.shape_cast %197 : vector<1x1x4x128xf32> to vector<4x128xf32>
    %c3_182 = arith.constant 3 : index
    %c0_183 = arith.constant 0 : index
    %c0_184 = arith.constant 0 : index
    %199 = vector.load %arg3[%c3_182, %c0_183, %c0_184] : memref<4x128x128xf32, #tpu.memory_space<vmem>>, vector<1x128x128xf32>
    %200 = vector.shape_cast %199 : vector<1x128x128xf32> to vector<128x128xf32>
    %cst_185 = arith.constant dense<0.000000e+00> : vector<4x128xf32>
    %201 = tpu.matmul %198, %200, %cst_185 {dimension_numbers = #tpu.dot_dimension_numbers<[1], [0], [0], [1], [0, 0, 1, 1], [], []>} : vector<4x128xf32>, vector<128x128xf32>, vector<4x128xf32> -> vector<4x128xf32>
    %202 = arith.addf %196, %201 : vector<4x128xf32>
    %c0_186 = arith.constant 0 : index
    %c0_187 = arith.constant 0 : index
    %203 = vector.load %arg6[%c0_186, %c0_187] : memref<1x128xf32, #tpu.memory_space<vmem>>, vector<1x128xf32>
    %204 = vector.broadcast %203 : vector<1x128xf32> to vector<4x128xf32>
    %205 = arith.addf %202, %204 : vector<4x128xf32>
    %cst_188 = arith.constant 0.000000e+00 : f32
    %206 = vector.broadcast %cst_188 : f32 to vector<4x128xf32>
    %207 = arith.maximumf %205, %206 : vector<4x128xf32>
    %cst_189 = arith.constant 0.000000e+00 : f32
    %208 = vector.broadcast %cst_189 : f32 to vector<1x1xf32>
    %209 = vector.extract_strided_slice %207 {offsets = [3, 0], sizes = [1, 127], strides = [1, 1]} : vector<4x128xf32> to vector<1x127xf32>
    %210 = tpu.concatenate %208, %209 in 1 : vector<1x1xf32>, vector<1x127xf32> -> vector<1x128xf32>
    %211 = vector.extract_strided_slice %207 {offsets = [0, 1], sizes = [1, 127], strides = [1, 1]} : vector<4x128xf32> to vector<1x127xf32>
    %212 = tpu.concatenate %211, %208 in 1 : vector<1x127xf32>, vector<1x1xf32> -> vector<1x128xf32>
    %213 = vector.extract_strided_slice %207 {offsets = [0, 0], sizes = [3, 128], strides = [1, 1]} : vector<4x128xf32> to vector<3x128xf32>
    %214 = tpu.concatenate %210, %213 in 0 : vector<1x128xf32>, vector<3x128xf32> -> vector<4x128xf32>
    %215 = vector.extract_strided_slice %207 {offsets = [1, 0], sizes = [3, 128], strides = [1, 1]} : vector<4x128xf32> to vector<3x128xf32>
    %216 = tpu.concatenate %215, %212 in 0 : vector<3x128xf32>, vector<1x128xf32> -> vector<4x128xf32>
    %217 = arith.maximumf %207, %214 : vector<4x128xf32>
    %218 = arith.maximumf %217, %216 : vector<4x128xf32>
    %c1_190 = arith.constant 1 : index
    %c8_191 = arith.constant 8 : index
    %c0_192 = arith.constant 0 : index
    %219 = vector.load %arg8[%c1_190, %c8_191, %c0_192] : memref<2x24x128xf32, #tpu.memory_space<vmem>>, vector<1x4x128xf32>
    %220 = vector.shape_cast %219 : vector<1x4x128xf32> to vector<4x128xf32>
    %221 = vector.shape_cast %218 : vector<4x128xf32> to vector<1x4x128xf32>
    tpu.vector_store %arg8[%c1_190, %c8_191, %c0_192], %221 {strides = array<i32>} : memref<2x24x128xf32, #tpu.memory_space<vmem>>, vector<1x4x128xf32>,
    %cst_193 = arith.constant 0.000000e+00 : f32
    %222 = vector.broadcast %cst_193 : f32 to vector<4x128xf32>
    %c1_194 = arith.constant 1 : index
    %c0_195 = arith.constant 0 : index
    %c0_196 = arith.constant 0 : index
    %c0_197 = arith.constant 0 : index
    %223 = vector.load %arg1[%c1_194, %c0_195, %c0_196, %c0_197] : memref<2x2x7x128xf32, #tpu.memory_space<vmem>>, vector<1x1x4x128xf32>
    %224 = vector.shape_cast %223 : vector<1x1x4x128xf32> to vector<4x128xf32>
    %c0_198 = arith.constant 0 : index
    %c0_199 = arith.constant 0 : index
    %c0_200 = arith.constant 0 : index
    %225 = vector.load %arg4[%c0_198, %c0_199, %c0_200] : memref<8x128x128xf32, #tpu.memory_space<vmem>>, vector<1x128x128xf32>
    %226 = vector.shape_cast %225 : vector<1x128x128xf32> to vector<128x128xf32>
    %cst_201 = arith.constant dense<0.000000e+00> : vector<4x128xf32>
    %227 = tpu.matmul %224, %226, %cst_201 {dimension_numbers = #tpu.dot_dimension_numbers<[1], [0], [0], [1], [0, 0, 1, 1], [], []>} : vector<4x128xf32>, vector<128x128xf32>, vector<4x128xf32> -> vector<4x128xf32>
    %228 = arith.addf %222, %227 : vector<4x128xf32>
    %c1_202 = arith.constant 1 : index
    %c1_203 = arith.constant 1 : index
    %c0_204 = arith.constant 0 : index
    %c0_205 = arith.constant 0 : index
    %229 = vector.load %arg1[%c1_202, %c1_203, %c0_204, %c0_205] : memref<2x2x7x128xf32, #tpu.memory_space<vmem>>, vector<1x1x4x128xf32>
    %230 = vector.shape_cast %229 : vector<1x1x4x128xf32> to vector<4x128xf32>
    %c1_206 = arith.constant 1 : index
    %c0_207 = arith.constant 0 : index
    %c0_208 = arith.constant 0 : index
    %231 = vector.load %arg4[%c1_206, %c0_207, %c0_208] : memref<8x128x128xf32, #tpu.memory_space<vmem>>, vector<1x128x128xf32>
    %232 = vector.shape_cast %231 : vector<1x128x128xf32> to vector<128x128xf32>
    %cst_209 = arith.constant dense<0.000000e+00> : vector<4x128xf32>
    %233 = tpu.matmul %230, %232, %cst_209 {dimension_numbers = #tpu.dot_dimension_numbers<[1], [0], [0], [1], [0, 0, 1, 1], [], []>} : vector<4x128xf32>, vector<128x128xf32>, vector<4x128xf32> -> vector<4x128xf32>
    %234 = arith.addf %228, %233 : vector<4x128xf32>
    %c1_210 = arith.constant 1 : index
    %c0_211 = arith.constant 0 : index
    %c1_212 = arith.constant 1 : index
    %c0_213 = arith.constant 0 : index
    %235 = vector.load %arg1[%c1_210, %c0_211, %c1_212, %c0_213] : memref<2x2x7x128xf32, #tpu.memory_space<vmem>>, vector<1x1x4x128xf32>
    %236 = vector.shape_cast %235 : vector<1x1x4x128xf32> to vector<4x128xf32>
    %c2_214 = arith.constant 2 : index
    %c0_215 = arith.constant 0 : index
    %c0_216 = arith.constant 0 : index
    %237 = vector.load %arg4[%c2_214, %c0_215, %c0_216] : memref<8x128x128xf32, #tpu.memory_space<vmem>>, vector<1x128x128xf32>
    %238 = vector.shape_cast %237 : vector<1x128x128xf32> to vector<128x128xf32>
    %cst_217 = arith.constant dense<0.000000e+00> : vector<4x128xf32>
    %239 = tpu.matmul %236, %238, %cst_217 {dimension_numbers = #tpu.dot_dimension_numbers<[1], [0], [0], [1], [0, 0, 1, 1], [], []>} : vector<4x128xf32>, vector<128x128xf32>, vector<4x128xf32> -> vector<4x128xf32>
    %240 = arith.addf %234, %239 : vector<4x128xf32>
    %c1_218 = arith.constant 1 : index
    %c1_219 = arith.constant 1 : index
    %c1_220 = arith.constant 1 : index
    %c0_221 = arith.constant 0 : index
    %241 = vector.load %arg1[%c1_218, %c1_219, %c1_220, %c0_221] : memref<2x2x7x128xf32, #tpu.memory_space<vmem>>, vector<1x1x4x128xf32>
    %242 = vector.shape_cast %241 : vector<1x1x4x128xf32> to vector<4x128xf32>
    %c3_222 = arith.constant 3 : index
    %c0_223 = arith.constant 0 : index
    %c0_224 = arith.constant 0 : index
    %243 = vector.load %arg4[%c3_222, %c0_223, %c0_224] : memref<8x128x128xf32, #tpu.memory_space<vmem>>, vector<1x128x128xf32>
    %244 = vector.shape_cast %243 : vector<1x128x128xf32> to vector<128x128xf32>
    %cst_225 = arith.constant dense<0.000000e+00> : vector<4x128xf32>
    %245 = tpu.matmul %242, %244, %cst_225 {dimension_numbers = #tpu.dot_dimension_numbers<[1], [0], [0], [1], [0, 0, 1, 1], [], []>} : vector<4x128xf32>, vector<128x128xf32>, vector<4x128xf32> -> vector<4x128xf32>
    %246 = arith.addf %240, %245 : vector<4x128xf32>
    %c1_226 = arith.constant 1 : index
    %c0_227 = arith.constant 0 : index
    %c2_228 = arith.constant 2 : index
    %c0_229 = arith.constant 0 : index
    %247 = vector.load %arg1[%c1_226, %c0_227, %c2_228, %c0_229] : memref<2x2x7x128xf32, #tpu.memory_space<vmem>>, vector<1x1x4x128xf32>
    %248 = vector.shape_cast %247 : vector<1x1x4x128xf32> to vector<4x128xf32>
    %c4_230 = arith.constant 4 : index
    %c0_231 = arith.constant 0 : index
    %c0_232 = arith.constant 0 : index
    %249 = vector.load %arg4[%c4_230, %c0_231, %c0_232] : memref<8x128x128xf32, #tpu.memory_space<vmem>>, vector<1x128x128xf32>
    %250 = vector.shape_cast %249 : vector<1x128x128xf32> to vector<128x128xf32>
    %cst_233 = arith.constant dense<0.000000e+00> : vector<4x128xf32>
    %251 = tpu.matmul %248, %250, %cst_233 {dimension_numbers = #tpu.dot_dimension_numbers<[1], [0], [0], [1], [0, 0, 1, 1], [], []>} : vector<4x128xf32>, vector<128x128xf32>, vector<4x128xf32> -> vector<4x128xf32>
    %252 = arith.addf %246, %251 : vector<4x128xf32>
    %c1_234 = arith.constant 1 : index
    %c1_235 = arith.constant 1 : index
    %c2_236 = arith.constant 2 : index
    %c0_237 = arith.constant 0 : index
    %253 = vector.load %arg1[%c1_234, %c1_235, %c2_236, %c0_237] : memref<2x2x7x128xf32, #tpu.memory_space<vmem>>, vector<1x1x4x128xf32>
    %254 = vector.shape_cast %253 : vector<1x1x4x128xf32> to vector<4x128xf32>
    %c5_238 = arith.constant 5 : index
    %c0_239 = arith.constant 0 : index
    %c0_240 = arith.constant 0 : index
    %255 = vector.load %arg4[%c5_238, %c0_239, %c0_240] : memref<8x128x128xf32, #tpu.memory_space<vmem>>, vector<1x128x128xf32>
    %256 = vector.shape_cast %255 : vector<1x128x128xf32> to vector<128x128xf32>
    %cst_241 = arith.constant dense<0.000000e+00> : vector<4x128xf32>
    %257 = tpu.matmul %254, %256, %cst_241 {dimension_numbers = #tpu.dot_dimension_numbers<[1], [0], [0], [1], [0, 0, 1, 1], [], []>} : vector<4x128xf32>, vector<128x128xf32>, vector<4x128xf32> -> vector<4x128xf32>
    %258 = arith.addf %252, %257 : vector<4x128xf32>
    %c1_242 = arith.constant 1 : index
    %c0_243 = arith.constant 0 : index
    %c3_244 = arith.constant 3 : index
    %c0_245 = arith.constant 0 : index
    %259 = vector.load %arg1[%c1_242, %c0_243, %c3_244, %c0_245] : memref<2x2x7x128xf32, #tpu.memory_space<vmem>>, vector<1x1x4x128xf32>
    %260 = vector.shape_cast %259 : vector<1x1x4x128xf32> to vector<4x128xf32>
    %c6_246 = arith.constant 6 : index
    %c0_247 = arith.constant 0 : index
    %c0_248 = arith.constant 0 : index
    %261 = vector.load %arg4[%c6_246, %c0_247, %c0_248] : memref<8x128x128xf32, #tpu.memory_space<vmem>>, vector<1x128x128xf32>
    %262 = vector.shape_cast %261 : vector<1x128x128xf32> to vector<128x128xf32>
    %cst_249 = arith.constant dense<0.000000e+00> : vector<4x128xf32>
    %263 = tpu.matmul %260, %262, %cst_249 {dimension_numbers = #tpu.dot_dimension_numbers<[1], [0], [0], [1], [0, 0, 1, 1], [], []>} : vector<4x128xf32>, vector<128x128xf32>, vector<4x128xf32> -> vector<4x128xf32>
    %264 = arith.addf %258, %263 : vector<4x128xf32>
    %c1_250 = arith.constant 1 : index
    %c1_251 = arith.constant 1 : index
    %c3_252 = arith.constant 3 : index
    %c0_253 = arith.constant 0 : index
    %265 = vector.load %arg1[%c1_250, %c1_251, %c3_252, %c0_253] : memref<2x2x7x128xf32, #tpu.memory_space<vmem>>, vector<1x1x4x128xf32>
    %266 = vector.shape_cast %265 : vector<1x1x4x128xf32> to vector<4x128xf32>
    %c7_254 = arith.constant 7 : index
    %c0_255 = arith.constant 0 : index
    %c0_256 = arith.constant 0 : index
    %267 = vector.load %arg4[%c7_254, %c0_255, %c0_256] : memref<8x128x128xf32, #tpu.memory_space<vmem>>, vector<1x128x128xf32>
    %268 = vector.shape_cast %267 : vector<1x128x128xf32> to vector<128x128xf32>
    %cst_257 = arith.constant dense<0.000000e+00> : vector<4x128xf32>
    %269 = tpu.matmul %266, %268, %cst_257 {dimension_numbers = #tpu.dot_dimension_numbers<[1], [0], [0], [1], [0, 0, 1, 1], [], []>} : vector<4x128xf32>, vector<128x128xf32>, vector<4x128xf32> -> vector<4x128xf32>
    %270 = arith.addf %264, %269 : vector<4x128xf32>
    %c0_258 = arith.constant 0 : index
    %c0_259 = arith.constant 0 : index
    %271 = vector.load %arg7[%c0_258, %c0_259] : memref<1x128xf32, #tpu.memory_space<vmem>>, vector<1x128xf32>
    %272 = vector.broadcast %271 : vector<1x128xf32> to vector<4x128xf32>
    %273 = arith.addf %270, %272 : vector<4x128xf32>
    %cst_260 = arith.constant 0.000000e+00 : f32
    %274 = vector.broadcast %cst_260 : f32 to vector<4x128xf32>
    %275 = arith.maximumf %273, %274 : vector<4x128xf32>
    %cst_261 = arith.constant 0.000000e+00 : f32
    %276 = vector.broadcast %cst_261 : f32 to vector<1x1xf32>
    %277 = vector.extract_strided_slice %275 {offsets = [3, 0], sizes = [1, 127], strides = [1, 1]} : vector<4x128xf32> to vector<1x127xf32>
    %278 = tpu.concatenate %276, %277 in 1 : vector<1x1xf32>, vector<1x127xf32> -> vector<1x128xf32>
    %279 = vector.extract_strided_slice %275 {offsets = [0, 1], sizes = [1, 127], strides = [1, 1]} : vector<4x128xf32> to vector<1x127xf32>
    %280 = tpu.concatenate %279, %276 in 1 : vector<1x127xf32>, vector<1x1xf32> -> vector<1x128xf32>
    %281 = vector.extract_strided_slice %275 {offsets = [0, 0], sizes = [3, 128], strides = [1, 1]} : vector<4x128xf32> to vector<3x128xf32>
    %282 = tpu.concatenate %278, %281 in 0 : vector<1x128xf32>, vector<3x128xf32> -> vector<4x128xf32>
    %283 = vector.extract_strided_slice %275 {offsets = [1, 0], sizes = [3, 128], strides = [1, 1]} : vector<4x128xf32> to vector<3x128xf32>
    %284 = tpu.concatenate %283, %280 in 0 : vector<3x128xf32>, vector<1x128xf32> -> vector<4x128xf32>
    %285 = arith.maximumf %275, %282 : vector<4x128xf32>
    %286 = arith.maximumf %285, %284 : vector<4x128xf32>
    %c1_262 = arith.constant 1 : index
    %c16_263 = arith.constant 16 : index
    %c0_264 = arith.constant 0 : index
    %287 = vector.load %arg8[%c1_262, %c16_263, %c0_264] : memref<2x24x128xf32, #tpu.memory_space<vmem>>, vector<1x4x128xf32>
    %288 = vector.shape_cast %287 : vector<1x4x128xf32> to vector<4x128xf32>
    %289 = vector.shape_cast %286 : vector<4x128xf32> to vector<1x4x128xf32>
    tpu.vector_store %arg8[%c1_262, %c16_263, %c0_264], %289 {strides = array<i32>} : memref<2x24x128xf32, #tpu.memory_space<vmem>>, vector<1x4x128xf32>,
    return
  }
  func.func @transform_0(%arg0: i32) -> (i32, i32, i32, i32) {
    %c0_i32 = arith.constant 0 : i32
    %c0_i32_0 = arith.constant 0 : i32
    %c0_i32_1 = arith.constant 0 : i32
    %c0_i32_2 = arith.constant 0 : i32
    return %arg0, %c0_i32, %c0_i32_0, %c0_i32_1 : i32, i32, i32, i32
  }
  func.func @transform_1(%arg0: i32) -> (i32, i32, i32) {
    %c0_i32 = arith.constant 0 : i32
    %c0_i32_0 = arith.constant 0 : i32
    %c0_i32_1 = arith.constant 0 : i32
    %c0_i32_2 = arith.constant 0 : i32
    return %c0_i32, %c0_i32_0, %c0_i32_1 : i32, i32, i32
  }
  func.func @transform_2(%arg0: i32) -> (i32, i32, i32) {
    %c0_i32 = arith.constant 0 : i32
    %c0_i32_0 = arith.constant 0 : i32
    %c0_i32_1 = arith.constant 0 : i32
    %c0_i32_2 = arith.constant 0 : i32
    return %c0_i32, %c0_i32_0, %c0_i32_1 : i32, i32, i32
  }
  func.func @transform_3(%arg0: i32) -> (i32, i32, i32) {
    %c0_i32 = arith.constant 0 : i32
    %c0_i32_0 = arith.constant 0 : i32
    %c0_i32_1 = arith.constant 0 : i32
    %c0_i32_2 = arith.constant 0 : i32
    return %c0_i32, %c0_i32_0, %c0_i32_1 : i32, i32, i32
  }
  func.func @transform_4(%arg0: i32) -> (i32, i32) {
    %c0_i32 = arith.constant 0 : i32
    %c0_i32_0 = arith.constant 0 : i32
    %c0_i32_1 = arith.constant 0 : i32
    return %c0_i32, %c0_i32_0 : i32, i32
  }
  func.func @transform_5(%arg0: i32) -> (i32, i32) {
    %c0_i32 = arith.constant 0 : i32
    %c0_i32_0 = arith.constant 0 : i32
    %c0_i32_1 = arith.constant 0 : i32
    return %c0_i32, %c0_i32_0 : i32, i32
  }
  func.func @transform_6(%arg0: i32) -> (i32, i32) {
    %c0_i32 = arith.constant 0 : i32
    %c0_i32_0 = arith.constant 0 : i32
    %c0_i32_1 = arith.constant 0 : i32
    return %c0_i32, %c0_i32_0 : i32, i32
  }
  func.func @transform_7(%arg0: i32) -> (i32, i32, i32) {
    %c0_i32 = arith.constant 0 : i32
    %c0_i32_0 = arith.constant 0 : i32
    %c0_i32_1 = arith.constant 0 : i32
    return %arg0, %c0_i32, %c0_i32_0 : i32, i32, i32
  }
}

module attributes {stable_mosaic.version = 11 : i64} {
  func.func @_linear_kernel(%arg0: i32, %arg1: i32, %arg2: memref<2x128xbf16, #tpu.memory_space<vmem>>, %arg3: memref<128x128xbf16, #tpu.memory_space<vmem>>, %arg4: memref<1x128xf32, #tpu.memory_space<vmem>>, %arg5: memref<2x128xf32, #tpu.memory_space<vmem>>, %arg6: memref<2x128xf32, #tpu.memory_space<vmem>>) attributes {dimension_semantics = [#tpu.dimension_semantics<parallel>, #tpu.dimension_semantics<arbitrary>], iteration_bounds = array<i64: 1, 1>, scalar_prefetch = 0 : i64, scratch_operands = 1 : i64, tpu.core_type = #tpu.core_type<tc>, window_params = [{transform_indices = @transform_0, window_bounds = array<i64: 2, 128>}, {transform_indices = @transform_1, window_bounds = array<i64: 128, 128>}, {transform_indices = @transform_2, window_bounds = array<i64: 1, 128>}, {transform_indices = @transform_3, window_bounds = array<i64: 2, 128>}]} {
    %c0_i32 = arith.constant 0 : i32
    %0 = arith.cmpi eq, %arg1, %c0_i32 : i32
    %1 = arith.extui %0 : i1 to i32
    %c0_i32_0 = arith.constant 0 : i32
    %2 = arith.cmpi ne, %1, %c0_i32_0 : i32
    scf.if %2 {
      %cst_10 = arith.constant 0.000000e+00 : f32
      %12 = vector.broadcast %cst_10 : f32 to vector<2x128xf32>
      %c0_11 = arith.constant 0 : index
      %c0_12 = arith.constant 0 : index
      %13 = vector.load %arg6[%c0_11, %c0_12] : memref<2x128xf32, #tpu.memory_space<vmem>>, vector<2x128xf32>
      tpu.vector_store %arg6[%c0_11, %c0_12], %12 {strides = array<i32>} : memref<2x128xf32, #tpu.memory_space<vmem>>, vector<2x128xf32>,
    } else {
    }
    %c0 = arith.constant 0 : index
    %c0_1 = arith.constant 0 : index
    %3 = vector.load %arg6[%c0, %c0_1] : memref<2x128xf32, #tpu.memory_space<vmem>>, vector<2x128xf32>
    %c0_2 = arith.constant 0 : index
    %c0_3 = arith.constant 0 : index
    %4 = vector.load %arg2[%c0_2, %c0_3] : memref<2x128xbf16, #tpu.memory_space<vmem>>, vector<2x128xbf16>
    %c0_4 = arith.constant 0 : index
    %c0_5 = arith.constant 0 : index
    %5 = vector.load %arg3[%c0_4, %c0_5] : memref<128x128xbf16, #tpu.memory_space<vmem>>, vector<128x128xbf16>
    %cst = arith.constant dense<0.000000e+00> : vector<2x128xf32>
    %6 = tpu.matmul %4, %5, %cst {dimension_numbers = #tpu.dot_dimension_numbers<[1], [0], [0], [1], [0, 0, 1, 1], [], []>} : vector<2x128xbf16>, vector<128x128xbf16>, vector<2x128xf32> -> vector<2x128xf32>
    %7 = arith.addf %3, %6 : vector<2x128xf32>
    %c0_6 = arith.constant 0 : index
    %c0_7 = arith.constant 0 : index
    %8 = vector.load %arg6[%c0_6, %c0_7] : memref<2x128xf32, #tpu.memory_space<vmem>>, vector<2x128xf32>
    tpu.vector_store %arg6[%c0_6, %c0_7], %7 {strides = array<i32>} : memref<2x128xf32, #tpu.memory_space<vmem>>, vector<2x128xf32>,
    %c0_i32_8 = arith.constant 0 : i32
    %9 = arith.cmpi eq, %arg1, %c0_i32_8 : i32
    %10 = arith.extui %9 : i1 to i32
    %c0_i32_9 = arith.constant 0 : i32
    %11 = arith.cmpi ne, %10, %c0_i32_9 : i32
    scf.if %11 {
      %c0_10 = arith.constant 0 : index
      %c0_11 = arith.constant 0 : index
      %12 = vector.load %arg6[%c0_10, %c0_11] : memref<2x128xf32, #tpu.memory_space<vmem>>, vector<2x128xf32>
      %c0_12 = arith.constant 0 : index
      %c0_13 = arith.constant 0 : index
      %13 = vector.load %arg4[%c0_12, %c0_13] : memref<1x128xf32, #tpu.memory_space<vmem>>, vector<1x128xf32>
      %14 = vector.broadcast %13 : vector<1x128xf32> to vector<2x128xf32>
      %15 = arith.addf %12, %14 : vector<2x128xf32>
      %c0_14 = arith.constant 0 : index
      %c0_15 = arith.constant 0 : index
      %16 = vector.load %arg5[%c0_14, %c0_15] : memref<2x128xf32, #tpu.memory_space<vmem>>, vector<2x128xf32>
      tpu.vector_store %arg5[%c0_14, %c0_15], %15 {strides = array<i32>} : memref<2x128xf32, #tpu.memory_space<vmem>>, vector<2x128xf32>,
    } else {
    }
    return
  }
  func.func @transform_0(%arg0: i32, %arg1: i32) -> (i32, i32) {
    %c0_i32 = arith.constant 0 : i32
    %c0_i32_0 = arith.constant 0 : i32
    return %c0_i32, %arg1 : i32, i32
  }
  func.func @transform_1(%arg0: i32, %arg1: i32) -> (i32, i32) {
    %c0_i32 = arith.constant 0 : i32
    return %arg1, %arg0 : i32, i32
  }
  func.func @transform_2(%arg0: i32, %arg1: i32) -> (i32, i32) {
    %c0_i32 = arith.constant 0 : i32
    %c0_i32_0 = arith.constant 0 : i32
    return %c0_i32, %arg0 : i32, i32
  }
  func.func @transform_3(%arg0: i32, %arg1: i32) -> (i32, i32) {
    %c0_i32 = arith.constant 0 : i32
    %c0_i32_0 = arith.constant 0 : i32
    return %c0_i32, %arg0 : i32, i32
  }
}

module attributes {stable_mosaic.version = 11 : i64} {
  func.func @_linear_kernel(%arg0: i32, %arg1: i32, %arg2: memref<2x3072xbf16, #tpu.memory_space<vmem>>, %arg3: memref<3072x128xbf16, #tpu.memory_space<vmem>>, %arg4: memref<1x128xf32, #tpu.memory_space<vmem>>, %arg5: memref<2x128xf32, #tpu.memory_space<vmem>>, %arg6: memref<2x128xf32, #tpu.memory_space<vmem>>) attributes {dimension_semantics = [#tpu.dimension_semantics<parallel>, #tpu.dimension_semantics<arbitrary>], iteration_bounds = array<i64: 1, 1>, scalar_prefetch = 0 : i64, scratch_operands = 1 : i64, tpu.core_type = #tpu.core_type<tc>, window_params = [{transform_indices = @transform_0, window_bounds = array<i64: 2, 3072>}, {transform_indices = @transform_1, window_bounds = array<i64: 3072, 128>}, {transform_indices = @transform_2, window_bounds = array<i64: 1, 128>}, {transform_indices = @transform_3, window_bounds = array<i64: 2, 128>}]} {
    %c0_i32 = arith.constant 0 : i32
    %0 = arith.cmpi eq, %arg1, %c0_i32 : i32
    %1 = arith.extui %0 : i1 to i32
    %c0_i32_0 = arith.constant 0 : i32
    %2 = arith.cmpi ne, %1, %c0_i32_0 : i32
    scf.if %2 {
      %cst_10 = arith.constant 0.000000e+00 : f32
      %12 = vector.broadcast %cst_10 : f32 to vector<2x128xf32>
      %c0_11 = arith.constant 0 : index
      %c0_12 = arith.constant 0 : index
      %13 = vector.load %arg6[%c0_11, %c0_12] : memref<2x128xf32, #tpu.memory_space<vmem>>, vector<2x128xf32>
      tpu.vector_store %arg6[%c0_11, %c0_12], %12 {strides = array<i32>} : memref<2x128xf32, #tpu.memory_space<vmem>>, vector<2x128xf32>,
    } else {
    }
    %c0 = arith.constant 0 : index
    %c0_1 = arith.constant 0 : index
    %3 = vector.load %arg6[%c0, %c0_1] : memref<2x128xf32, #tpu.memory_space<vmem>>, vector<2x128xf32>
    %c0_2 = arith.constant 0 : index
    %c0_3 = arith.constant 0 : index
    %4 = vector.load %arg2[%c0_2, %c0_3] : memref<2x3072xbf16, #tpu.memory_space<vmem>>, vector<2x3072xbf16>
    %c0_4 = arith.constant 0 : index
    %c0_5 = arith.constant 0 : index
    %5 = vector.load %arg3[%c0_4, %c0_5] : memref<3072x128xbf16, #tpu.memory_space<vmem>>, vector<3072x128xbf16>
    %cst = arith.constant dense<0.000000e+00> : vector<2x128xf32>
    %6 = tpu.matmul %4, %5, %cst {dimension_numbers = #tpu.dot_dimension_numbers<[1], [0], [0], [1], [0, 0, 1, 1], [], []>} : vector<2x3072xbf16>, vector<3072x128xbf16>, vector<2x128xf32> -> vector<2x128xf32>
    %7 = arith.addf %3, %6 : vector<2x128xf32>
    %c0_6 = arith.constant 0 : index
    %c0_7 = arith.constant 0 : index
    %8 = vector.load %arg6[%c0_6, %c0_7] : memref<2x128xf32, #tpu.memory_space<vmem>>, vector<2x128xf32>
    tpu.vector_store %arg6[%c0_6, %c0_7], %7 {strides = array<i32>} : memref<2x128xf32, #tpu.memory_space<vmem>>, vector<2x128xf32>,
    %c0_i32_8 = arith.constant 0 : i32
    %9 = arith.cmpi eq, %arg1, %c0_i32_8 : i32
    %10 = arith.extui %9 : i1 to i32
    %c0_i32_9 = arith.constant 0 : i32
    %11 = arith.cmpi ne, %10, %c0_i32_9 : i32
    scf.if %11 {
      %c0_10 = arith.constant 0 : index
      %c0_11 = arith.constant 0 : index
      %12 = vector.load %arg6[%c0_10, %c0_11] : memref<2x128xf32, #tpu.memory_space<vmem>>, vector<2x128xf32>
      %c0_12 = arith.constant 0 : index
      %c0_13 = arith.constant 0 : index
      %13 = vector.load %arg4[%c0_12, %c0_13] : memref<1x128xf32, #tpu.memory_space<vmem>>, vector<1x128xf32>
      %14 = vector.broadcast %13 : vector<1x128xf32> to vector<2x128xf32>
      %15 = arith.addf %12, %14 : vector<2x128xf32>
      %cst_14 = arith.constant 0.000000e+00 : f32
      %16 = vector.broadcast %cst_14 : f32 to vector<2x128xf32>
      %17 = arith.maximumf %15, %16 : vector<2x128xf32>
      %c0_15 = arith.constant 0 : index
      %c0_16 = arith.constant 0 : index
      %18 = vector.load %arg5[%c0_15, %c0_16] : memref<2x128xf32, #tpu.memory_space<vmem>>, vector<2x128xf32>
      tpu.vector_store %arg5[%c0_15, %c0_16], %17 {strides = array<i32>} : memref<2x128xf32, #tpu.memory_space<vmem>>, vector<2x128xf32>,
    } else {
    }
    return
  }
  func.func @transform_0(%arg0: i32, %arg1: i32) -> (i32, i32) {
    %c0_i32 = arith.constant 0 : i32
    %c0_i32_0 = arith.constant 0 : i32
    return %c0_i32, %arg1 : i32, i32
  }
  func.func @transform_1(%arg0: i32, %arg1: i32) -> (i32, i32) {
    %c0_i32 = arith.constant 0 : i32
    return %arg1, %arg0 : i32, i32
  }
  func.func @transform_2(%arg0: i32, %arg1: i32) -> (i32, i32) {
    %c0_i32 = arith.constant 0 : i32
    %c0_i32_0 = arith.constant 0 : i32
    return %c0_i32, %arg0 : i32, i32
  }
  func.func @transform_3(%arg0: i32, %arg1: i32) -> (i32, i32) {
    %c0_i32 = arith.constant 0 : i32
    %c0_i32_0 = arith.constant 0 : i32
    return %c0_i32, %arg0 : i32, i32
  }
}

</mosaic_0001>

<bundles_post_ra>
// kernel: _lambda_.5
= control target key start
LH: loop header
LB: loop body
LE: loop exit
PB: predicated region body
PF: predicated region fallthrough
CT: control target
= control target key end

     0   :  { %v227_v1 = vmov 0.0   ;;  %vm228_vm0 = vmmov 0   ;;  %s283_s0 = inlined_call_operand.vmem [shape: bf16[2,128], index: 0, kind: input, shape index: {}]   ;;  %s284_s1 = inlined_call_operand.vmem [shape: bf16[128,128], index: 1, kind: input, shape index: {}]   ;;  %s285_s2 = inlined_call_operand.vmem [shape: f32[1,128], index: 2, kind: input, shape index: {}]   ;;  %s286_s3 = inlined_call_operand.hbm [shape: f32[2,128], index: 3, kind: output, shape index: {}]  }
   0x1   :  { %v197_v0 = vld [vmem:[%s284_s1 + $0x38] sm:$0xff]   ;;  %174 = vmatprep.subr.bf16.mxu0 %v227_v1  ;;  %20 = vst [vmem:[#allocation2] sm:$0x3] %v227_v1  ;;  %v198_v2 = vld [vmem:[%s284_s1 + $0x30] sm:$0xff]   ;;  %190 = vmatprep.mubr.msk.bf16.mxu0 %vm228_vm0, %v227_v1  ;;  %v199_v3 = vld [vmem:[%s284_s1 + $0x28] sm:$0xff]  }
   0x2   :  { %175 = vmatpush3.bf16.msra.mxu0 %v197_v0 }
   0x3   :  { %176 = vmatprep.subr.bf16.mxu0 %v227_v1 }
   0x6   :  { %177 = vmatpush3.bf16.msra.mxu0 %v198_v2 }
   0x7   :  { %178 = vmatprep.subr.bf16.mxu0 %v227_v1 }
   0x8   :  { %8 = vsyncpa [#allocation4], 0  ;;  %v200_v4 = vld [vmem:[%s284_s1 + $0x20] sm:$0xff]   ;;  %v201_v5 = vld [vmem:[%s284_s1 + $0x18] sm:$0xff]   ;;  %s229_s5 = smov [#allocation3]  }
   0x9   :  { %v202_v6 = vld [vmem:[%s284_s1 + $0x10] sm:$0xff]   ;;  %v203_v7 = vld [vmem:[%s284_s1 + $0x8] sm:$0xff]   ;;  %v204_v8 = vld [vmem:[%s284_s1] sm:$0xff]   ;;  %s148_s1 = sshll.u32 %s229_s5, 4  ;;  %s149_s1 = int_to_ptr.vmem [resolvable:$true] %s148_s1 }
   0xa   :  { %179 = vmatpush3.bf16.msra.mxu0 %v199_v3  ;;  %v22_v9 = vld [vmem:[%s283_s0] sm:$0x1]  ;;  %s205_s6 = scalar_lea.vmem %s149_s1, 32  ;;  %p210_p1 = scmp.lt.s32.totalorder %s149_s1, %s149_s1 }
   0xb   :  { %180 = vmatprep.subr.bf16.mxu0 %v227_v1  ;;  %v21_v10 = vld [vmem:[#allocation2] sm:$0x3]  ;;  %p206_p0 = scmp.ne.s32.totalorder %s149_s1, %s205_s6  ;;  %p211_p2 = scmp.lt.s32.totalorder %s205_s6, %s205_s6 }
   0xc   :  { %v164_v16 = vld [vmem:[%s285_s2] ss:$0 sm:$0xff] }
   0xd   :  { %p212_p3 = por %p211_p2, %p210_p1 }
   0xe   :  { %181 = vmatpush3.bf16.msra.mxu0 %v200_v4 }
   0xf   :  { %182 = vmatprep.subr.bf16.mxu0 %v227_v1  ;;  %p213_p4 = pnand %p212_p3, %p206_p0 }
  0x12   :  { %183 = vmatpush3.bf16.msra.mxu0 %v201_v5 }
  0x13   :  { %184 = vmatprep.subr.bf16.mxu0 %v227_v1 }
  0x16   :  { %185 = vmatpush3.bf16.msra.mxu0 %v202_v6 }
  0x17   :  { %186 = vmatprep.subr.bf16.mxu0 %v227_v1 }
  0x1a   :  { %187 = vmatpush3.bf16.msra.mxu0 %v203_v7 }
  0x1b   :  { %188 = vmatprep.subr.bf16.mxu0 %v227_v1 }
  0x1e   :  { %189 = vmatpush3.bf16.msra.mxu0 %v204_v8 }
  0x21   :  { %191 = vmatmul.mubr.bf16.vlgmr.msra.gmra.mxu0 %v22_v9 }
  0xe1   :  { %v121_v11 = vpop.f32.mrf.mxu0 }
  0xe2   :  { %v127_v12 = vadd.f32 %v121_v11, %v21_v10 }
  0xe3   :  { %v192_v13 = vpop.f32.mrf.mxu0 }
  0xe4   :  { %128 = vst [vmem:[#allocation2] sm:$0x3] %v127_v12 }
  0xe5   :  { %v124_v14 = vpop.f32.mrf.mxu0 }
  0xe7   :  { %v193_v15 = vpop.f32.mrf.mxu0 }
  0xeb   :  { %v132_v17 = vld [vmem:[#allocation2] sm:$0x3] }
  0xec   :  { %v140_v18 = vadd.f32 %v164_v16, %v132_v17 }
  0xee   :  { %141 = vst [vmem:[#allocation3] sm:$0x3] %v140_v18 }
  0xef   :  { %216 = shalt.err (!%p213_p4)
}
  0xf0   :  { %151 = dma.vmem_to_hbm [thread:$0]  %s149_s1, 32, %s286_s3, [#allocation4]  }
  0xf1   :  { %225 = dma.done.wait [#allocation4], 32  }
  0xf2   :  { %226 = vsyncadd [#allocation4], 4294967264 }
  0xf3   :  { %155 = vsyncpa [#allocation4], 1 }

// kernel: _lambda_.3
= control target key start
LH: loop header
LB: loop body
LE: loop exit
PB: predicated region body
PF: predicated region fallthrough
CT: control target
= control target key end

     0   :  { %12 = vsyncpa [#allocation3], 0  ;;  %s5206_s0 = inlined_call_operand.vmem [shape: f32[2,2,7,128], index: 0, kind: input, shape index: {}]   ;;  %s5207_s1 = inlined_call_operand.hbm [shape: f32[2,128,128], index: 1, kind: input, shape index: {}]   ;;  %s5208_s2 = inlined_call_operand.hbm [shape: f32[4,128,128], index: 2, kind: input, shape index: {}]   ;;  %s5209_s3 = inlined_call_operand.hbm [shape: f32[8,128,128], index: 3, kind: input, shape index: {}]   ;;  %s5210_s4 = inlined_call_operand.hbm [shape: f32[1,128], index: 4, kind: input, shape index: {}]   ;;  %s5211_s5 = inlined_call_operand.hbm [shape: f32[1,128], index: 5, kind: input, shape index: {}]   ;;  %s5212_s6 = inlined_call_operand.hbm [shape: f32[1,128], index: 6, kind: input, shape index: {}]   ;;  %s5213_s7 = inlined_call_operand.vmem [shape: f32[2,24,128], index: 7, kind: output, shape index: {}]  }
   0x1   :  { %13 = vsyncpa [#allocation5], 0 }
   0x2   :  { %14 = vsyncpa [#allocation8], 0 }
   0x3   :  { %15 = vsyncpa [#allocation11], 0  ;;  %s4401_s24 = smov [#allocation4]   ;;  %s4402_s26 = smov [#allocation7]  }
   0x4   :  { %s35_s25 = sshll.u32 %s4401_s24, 4  ;;  %s60_s27 = sshll.u32 %s4402_s26, 4  ;;  %s36_s25 = int_to_ptr.vmem [resolvable:$true] %s35_s25  ;;  %s61_s27 = int_to_ptr.vmem [resolvable:$true] %s60_s27 }
   0x5   :  { %s4281_s28 = scalar_lea.vmem %s36_s25, 8192  ;;  %p4286_p1 = scmp.lt.s32.totalorder %s36_s25, %s36_s25 }
   0x6   :  { %p4282_p0 = scmp.ne.s32.totalorder %s36_s25, %s4281_s28  ;;  %p4287_p2 = scmp.lt.s32.totalorder %s4281_s28, %s4281_s28 }
   0x8   :  { %p4288_p3 = por %p4287_p2, %p4286_p1 }
   0xa   :  { %p4289_p4 = pnand %p4288_p3, %p4282_p0 }
   0xc   :  { %4292 = shalt.err (!%p4289_p4)
}
   0xd   :  { %s4403_s29 = smov 128   ;;  %s4404_s30 = smov 8  }
   0xe   :  { %41 = dma.hbm_to_vmem [thread:$0]  %s5208_s2, 8192, %s36_s25, [#allocation5], %s4403_s29, %s4403_s29, %s4404_s30  }
   0xf   :  { %s4301_s10 = scalar_lea.vmem %s61_s27, 16  ;;  %s4305_s11 = scalar_lea.vmem %s61_s27, 32 }
  0x10   :  { %p4302_p5 = scmp.ne.s32.totalorder %s61_s27, %s4301_s10  ;;  %p4306_p6 = scmp.lt.s32.totalorder %s61_s27, %s61_s27 }
  0x11   :  { %p4307_p7 = scmp.lt.s32.totalorder %s4305_s11, %s4301_s10 }
  0x13   :  { %p4308_p8 = por %p4307_p7, %p4306_p6 }
  0x15   :  { %p4309_p9 = pnand %p4308_p8, %p4302_p5 }
  0x17   :  { %4312 = shalt.err (!%p4309_p9)
}
  0x18   :  { %63 = dma.hbm_to_vmem [thread:$0]  %s5210_s4, 16, %s61_s27, [#allocation8]  }
  0x19   :  { %s4405_s14 = smov [#allocation2]   ;;  %s4406_s16 = smov [#allocation6]  }
  0x1a   :  { %s23_s15 = sshll.u32 %s4405_s14, 4  ;;  %s47_s17 = sshll.u32 %s4406_s16, 4  ;;  %s24_s15 = int_to_ptr.vmem [resolvable:$true] %s23_s15  ;;  %s48_s17 = int_to_ptr.vmem [resolvable:$true] %s47_s17 }
  0x1b   :  { %s4321_s18 = scalar_lea.vmem %s24_s15, 4096  ;;  %p4326_p11 = scmp.lt.s32.totalorder %s24_s15, %s24_s15 }
  0x1c   :  { %p4322_p10 = scmp.ne.s32.totalorder %s24_s15, %s4321_s18  ;;  %p4327_p12 = scmp.lt.s32.totalorder %s4321_s18, %s4321_s18 }
  0x1e   :  { %p4328_p13 = por %p4327_p12, %p4326_p11 }
  0x20   :  { %p4329_p0 = pnand %p4328_p13, %p4322_p10 }
  0x22   :  { %4332 = shalt.err (!%p4329_p0)
}
  0x23   :  { %29 = dma.hbm_to_vmem [thread:$0]  %s5207_s1, 4096, %s24_s15, [#allocation3], %s4403_s29, %s4403_s29, %s4404_s30  }
  0x24   :  { %s4341_s4 = scalar_lea.vmem %s48_s17, 16384  ;;  %p4346_p2 = scmp.lt.s32.totalorder %s48_s17, %s48_s17 }
  0x25   :  { %p4342_p1 = scmp.ne.s32.totalorder %s48_s17, %s4341_s4  ;;  %p4347_p3 = scmp.lt.s32.totalorder %s4341_s4, %s4341_s4 }
  0x27   :  { %p4348_p4 = por %p4347_p3, %p4346_p2 }
  0x29   :  { %p4349_p5 = pnand %p4348_p4, %p4342_p1 }
  0x2b   :  { %4352 = shalt.err (!%p4349_p5)
}
  0x2c   :  { %53 = dma.hbm_to_vmem [thread:$0]  %s5209_s3, 16384, %s48_s17, [#allocation5], %s4403_s29, %s4403_s29, %s4404_s30  }
  0x2d   :  { %s4407_s22 = smov [#allocation9]   ;;  %s4408_s24 = smov [#allocation10]  }
  0x2e   :  { %s70_s23 = sshll.u32 %s4407_s22, 4  ;;  %s80_s25 = sshll.u32 %s4408_s24, 4  ;;  %s71_s23 = int_to_ptr.vmem [resolvable:$true] %s70_s23  ;;  %s81_s25 = int_to_ptr.vmem [resolvable:$true] %s80_s25 }
  0x2f   :  { %s4361_s1 = scalar_lea.vmem %s71_s23, 16  ;;  %s4365_s26 = scalar_lea.vmem %s71_s23, 32 }
  0x30   :  { %p4362_p6 = scmp.ne.s32.totalorder %s71_s23, %s4361_s1  ;;  %p4366_p7 = scmp.lt.s32.totalorder %s71_s23, %s71_s23 }
  0x31   :  { %p4367_p8 = scmp.lt.s32.totalorder %s4365_s26, %s4361_s1 }
  0x33   :  { %p4368_p9 = por %p4367_p8, %p4366_p7 }
  0x35   :  { %p4369_p10 = pnand %p4368_p9, %p4362_p6 }
  0x37   :  { %4372 = shalt.err (!%p4369_p10)
}
  0x38   :  { %73 = dma.hbm_to_vmem [thread:$0]  %s5211_s5, 16, %s71_s23, [#allocation8]  }
  0x39   :  { %s4381_s8 = scalar_lea.vmem %s81_s25, 16  ;;  %s4385_s3 = scalar_lea.vmem %s81_s25, 32 }
  0x3a   :  { %p4382_p11 = scmp.ne.s32.totalorder %s81_s25, %s4381_s8  ;;  %p4386_p12 = scmp.lt.s32.totalorder %s81_s25, %s81_s25 }
  0x3b   :  { %p4387_p13 = scmp.lt.s32.totalorder %s4385_s3, %s4381_s8 }
  0x3d   :  { %p4388_p0 = por %p4387_p13, %p4386_p12 }
  0x3f   :  { %p4389_p1 = pnand %p4388_p0, %p4382_p11 }
  0x41   :  { %4392 = shalt.err (!%p4389_p1)
}
  0x42   :  { %83 = dma.hbm_to_vmem [thread:$0]  %s5212_s6, 16, %s81_s25, [#allocation11]  }
  0x43   :  { %4393 = dma.done.wait [#allocation3], 4096  }
  0x44   :  { %4394 = vsyncadd [#allocation3], 4294963200 }
  0x45   :  { %4395 = dma.done.wait [#allocation5], 24576  }
  0x46   :  { %4396 = vsyncadd [#allocation5], 4294942720 }
  0x47   :  { %4397 = dma.done.wait [#allocation8], 32  }
  0x48   :  { %4398 = vsyncadd [#allocation8], 4294967264 }
  0x49   :  { %4399 = dma.done.wait [#allocation11], 16  }
  0x4a   :  { %4400 = vsyncadd [#allocation11], 4294967280  ;;  %v4409_v0 = vmov 0.0   ;;  %vm4410_vm0 = vmmov 0   ;;  %v143_v1 = vld [vmem:[#allocation2 + $0xf8] sm:$0xff]  ;;  %v142_v3 = vld [vmem:[#allocation2 + $0xf0] sm:$0xff] }
  0x4b   :  { %3279 = vmatprep.subr.mxu0 %v4409_v0  ;;  %102 = vst [vmem:[%s5213_s7] sm:$0xff] %v4409_v0  ;;  %103 = vst [vmem:[%s5213_s7 + $0x8] sm:$0xff] %v4409_v0  ;;  %3314 = vmatprep.subr.mxu1 %v4409_v0  ;;  %v125_v2 = vld [vmem:[#allocation2 + $0x78] sm:$0xff]  ;;  %v124_v4 = vld [vmem:[#allocation2 + $0x70] sm:$0xff]  ;;  %s4411_s19 = smov 127   ;;  %s4412_s4 = smov 1   ;;  %vm303_vm1 = vcmask 1039360  }
  0x4c   :  { %104 = vst [vmem:[%s5213_s7 + $0x10] sm:$0xff] %v4409_v0  ;;  %105 = vst [vmem:[%s5213_s7 + $0x18] sm:$0xff] %v4409_v0  ;;  %3311 = vmatprep.mubr.msk.f32.mxu0 %vm4410_vm0, %v4409_v0  ;;  %3346 = vmatprep.mubr.msk.f32.mxu1 %vm4410_vm0, %v4409_v0  ;;  %v141_v5 = vld [vmem:[#allocation2 + $0xe8] sm:$0xff]  ;;  %v140_v7 = vld [vmem:[#allocation2 + $0xe0] sm:$0xff]  ;;  %vm298_vm2 = vcmask 7168   ;;  %vm307_vm3 = vcmask 1040384  }
  0x4d   :  { %106 = vst [vmem:[%s5213_s7 + $0x20] sm:$0xff] %v4409_v0  ;;  %107 = vst [vmem:[%s5213_s7 + $0x28] sm:$0xff] %v4409_v0  ;;  %3280 = vmatpush3.msra.mxu0 %v143_v1  ;;  %3315 = vmatpush3.msra.mxu1 %v125_v2  ;;  %v123_v6 = vld [vmem:[#allocation2 + $0x68] sm:$0xff]  ;;  %v122_v8 = vld [vmem:[#allocation2 + $0x60] sm:$0xff]  ;;  %vm314_vm4 = vcmask 1042432  }
  0x4e   :  { %3281 = vmatprep.subr.mxu0 %v4409_v0  ;;  %3316 = vmatprep.subr.mxu1 %v4409_v0  ;;  %v139_v9 = vld [vmem:[#allocation2 + $0xd8] sm:$0xff]  ;;  %v138_v11 = vld [vmem:[#allocation2 + $0xd0] sm:$0xff]  ;;  %v137_v13 = vld [vmem:[#allocation2 + $0xc8] sm:$0xff] }
  0x4f   :  { %3282 = vmatpush3.msra.mxu0 %v142_v3  ;;  %3317 = vmatpush3.msra.mxu1 %v124_v4  ;;  %v121_v10 = vld [vmem:[#allocation2 + $0x58] sm:$0xff]  ;;  %v120_v12 = vld [vmem:[#allocation2 + $0x50] sm:$0xff]  ;;  %v119_v14 = vld [vmem:[#allocation2 + $0x48] sm:$0xff] }
  0x50   :  { %3283 = vmatprep.subr.mxu0 %v4409_v0  ;;  %3318 = vmatprep.subr.mxu1 %v4409_v0  ;;  %v136_v15 = vld [vmem:[#allocation2 + $0xc0] sm:$0xff]  ;;  %v135_v17 = vld [vmem:[#allocation2 + $0xb8] sm:$0xff]  ;;  %v134_v19 = vld [vmem:[#allocation2 + $0xb0] sm:$0xff] }
  0x51   :  { %3284 = vmatpush3.msra.mxu0 %v141_v5  ;;  %3319 = vmatpush3.msra.mxu1 %v123_v6  ;;  %v118_v16 = vld [vmem:[#allocation2 + $0x40] sm:$0xff]  ;;  %v117_v18 = vld [vmem:[#allocation2 + $0x38] sm:$0xff]  ;;  %v116_v20 = vld [vmem:[#allocation2 + $0x30] sm:$0xff] }
  0x52   :  { %3285 = vmatprep.subr.mxu0 %v4409_v0  ;;  %3320 = vmatprep.subr.mxu1 %v4409_v0  ;;  %v133_v21 = vld [vmem:[#allocation2 + $0xa8] sm:$0xff]  ;;  %v132_v23 = vld [vmem:[#allocation2 + $0xa0] sm:$0xff]  ;;  %v131_v25 = vld [vmem:[#allocation2 + $0x98] sm:$0xff] }
  0x53   :  { %3286 = vmatpush3.msra.mxu0 %v140_v7  ;;  %3321 = vmatpush3.msra.mxu1 %v122_v8  ;;  %v115_v22 = vld [vmem:[#allocation2 + $0x28] sm:$0xff]  ;;  %v114_v24 = vld [vmem:[#allocation2 + $0x20] sm:$0xff]  ;;  %v113_v26 = vld [vmem:[#allocation2 + $0x18] sm:$0xff] }
  0x54   :  { %3287 = vmatprep.subr.mxu0 %v4409_v0  ;;  %3322 = vmatprep.subr.mxu1 %v4409_v0  ;;  %v130_v27 = vld [vmem:[#allocation2 + $0x90] sm:$0xff]  ;;  %v129_v29 = vld [vmem:[#allocation2 + $0x88] sm:$0xff]  ;;  %v128_v31 = vld [vmem:[#allocation2 + $0x80] sm:$0xff] }
  0x55   :  { %3288 = vmatpush3.msra.mxu0 %v139_v9  ;;  %3323 = vmatpush3.msra.mxu1 %v121_v10  ;;  %v112_v28 = vld [vmem:[#allocation2 + $0x10] sm:$0xff]  ;;  %v111_v30 = vld [vmem:[#allocation2 + $0x8] sm:$0xff]  ;;  %v110_v32 = vld [vmem:[#allocation2] sm:$0xff] }
  0x56   :  { %3289 = vmatprep.subr.mxu0 %v4409_v0  ;;  %3324 = vmatprep.subr.mxu1 %v4409_v0  ;;  %v126_v33 = vld [vmem:[%s5206_s0 + $0x2] sm:$0xf]  ;;  %v2773_v34 = vld [vmem:[%s5206_s0 + $0x9] sm:$0xf]  ;;  %v353_v35 = vld [vmem:[#allocation4 + $0xf8] sm:$0xff] }
  0x57   :  { %3290 = vmatpush3.msra.mxu0 %v138_v11  ;;  %3325 = vmatpush3.msra.mxu1 %v120_v12  ;;  %v335_v36 = vld [vmem:[#allocation4 + $0x78] sm:$0xff]  ;;  %v352_v37 = vld [vmem:[#allocation4 + $0xf0] sm:$0xff]  ;;  %v351_v39 = vld [vmem:[#allocation4 + $0xe8] sm:$0xff] }
  0x58   :  { %3291 = vmatprep.subr.mxu0 %v4409_v0  ;;  %3326 = vmatprep.subr.mxu1 %v4409_v0  ;;  %v334_v38 = vld [vmem:[#allocation4 + $0x70] sm:$0xff]  ;;  %v333_v40 = vld [vmem:[#allocation4 + $0x68] sm:$0xff]  ;;  %v350_v41 = vld [vmem:[#allocation4 + $0xe0] sm:$0xff] }
  0x59   :  { %3292 = vmatpush3.msra.mxu0 %v137_v13  ;;  %3327 = vmatpush3.msra.mxu1 %v119_v14  ;;  %v332_v42 = vld [vmem:[#allocation4 + $0x60] sm:$0xff]  ;;  %v349_v43 = vld [vmem:[#allocation4 + $0xd8] sm:$0xff]  ;;  %v348_v45 = vld [vmem:[#allocation4 + $0xd0] sm:$0xff] }
  0x5a   :  { %3293 = vmatprep.subr.mxu0 %v4409_v0  ;;  %3328 = vmatprep.subr.mxu1 %v4409_v0  ;;  %v331_v44 = vld [vmem:[#allocation4 + $0x58] sm:$0xff]  ;;  %v330_v46 = vld [vmem:[#allocation4 + $0x50] sm:$0xff]  ;;  %v347_v47 = vld [vmem:[#allocation4 + $0xc8] sm:$0xff] }
  0x5b   :  { %3294 = vmatpush3.msra.mxu0 %v136_v15  ;;  %3329 = vmatpush3.msra.mxu1 %v118_v16  ;;  %v329_v48 = vld [vmem:[#allocation4 + $0x48] sm:$0xff]  ;;  %v346_v49 = vld [vmem:[#allocation4 + $0xc0] sm:$0xff]  ;;  %v345_v51 = vld [vmem:[#allocation4 + $0xb8] sm:$0xff] }
  0x5c   :  { %3295 = vmatprep.subr.mxu0 %v4409_v0  ;;  %3330 = vmatprep.subr.mxu1 %v4409_v0  ;;  %v328_v50 = vld [vmem:[#allocation4 + $0x40] sm:$0xff]  ;;  %v327_v52 = vld [vmem:[#allocation4 + $0x38] sm:$0xff]  ;;  %v344_v53 = vld [vmem:[#allocation4 + $0xb0] sm:$0xff] }
  0x5d   :  { %3296 = vmatpush3.msra.mxu0 %v135_v17  ;;  %3331 = vmatpush3.msra.mxu1 %v117_v18  ;;  %v326_v54 = vld [vmem:[#allocation4 + $0x30] sm:$0xff]  ;;  %v343_v55 = vld [vmem:[#allocation4 + $0xa8] sm:$0xff]  ;;  %v342_v57 = vld [vmem:[#allocation4 + $0xa0] sm:$0xff] }
  0x5e   :  { %3297 = vmatprep.subr.mxu0 %v4409_v0  ;;  %3332 = vmatprep.subr.mxu1 %v4409_v0  ;;  %v325_v56 = vld [vmem:[#allocation4 + $0x28] sm:$0xff]  ;;  %v324_v58 = vld [vmem:[#allocation4 + $0x20] sm:$0xff]  ;;  %v341_v59 = vld [vmem:[#allocation4 + $0x98] sm:$0xff] }
  0x5f   :  { %3298 = vmatpush3.msra.mxu0 %v134_v19  ;;  %3333 = vmatpush3.msra.mxu1 %v116_v20  ;;  %v323_v60 = vld [vmem:[#allocation4 + $0x18] sm:$0xff]  ;;  %v340_v61 = vld [vmem:[#allocation4 + $0x90] sm:$0xff]  ;;  %v339_v63 = vld [vmem:[#allocation4 + $0x88] sm:$0xff] }
  0x60   :  { %3299 = vmatprep.subr.mxu0 %v4409_v0  ;;  %3334 = vmatprep.subr.mxu1 %v4409_v0  ;;  %v322_v62 = vld [vmem:[#allocation4 + $0x10] sm:$0xff]  ;;  %v321_v1 = vld [vmem:[#allocation4 + $0x8] sm:$0xff]  ;;  %v338_v2 = vld [vmem:[#allocation4 + $0x80] sm:$0xff] }
  0x61   :  { %3300 = vmatpush3.msra.mxu0 %v133_v21  ;;  %3335 = vmatpush3.msra.mxu1 %v115_v22  ;;  %v320_v3 = vld [vmem:[#allocation4] sm:$0xff]  ;;  %v2775_v4 = vld [vmem:[%s5206_s0 + $0x9] sm:$0xf]  ;;  %v511_v6 = vld [vmem:[#allocation4 + $0x178] sm:$0xff] }
  0x62   :  { %3301 = vmatprep.subr.mxu0 %v4409_v0  ;;  %3336 = vmatprep.subr.mxu1 %v4409_v0  ;;  %v319_v5 = vld [vmem:[%s5206_s0 + $0x1] sm:$0xf]  ;;  %v600_v7 = vld [vmem:[#allocation4 + $0x1f8] sm:$0xff]  ;;  %v510_v8 = vld [vmem:[#allocation4 + $0x170] sm:$0xff] }
  0x63   :  { %3302 = vmatpush3.msra.mxu0 %v132_v23  ;;  %3337 = vmatpush3.msra.mxu1 %v114_v24  ;;  %v599_v9 = vld [vmem:[#allocation4 + $0x1f0] sm:$0xff]  ;;  %v509_v10 = vld [vmem:[#allocation4 + $0x168] sm:$0xff]  ;;  %v508_v12 = vld [vmem:[#allocation4 + $0x160] sm:$0xff] }
  0x64   :  { %3303 = vmatprep.subr.mxu0 %v4409_v0  ;;  %3338 = vmatprep.subr.mxu1 %v4409_v0  ;;  %v598_v11 = vld [vmem:[#allocation4 + $0x1e8] sm:$0xff]  ;;  %v597_v13 = vld [vmem:[#allocation4 + $0x1e0] sm:$0xff]  ;;  %v507_v14 = vld [vmem:[#allocation4 + $0x158] sm:$0xff] }
  0x65   :  { %3304 = vmatpush3.msra.mxu0 %v131_v25  ;;  %3339 = vmatpush3.msra.mxu1 %v113_v26  ;;  %v596_v15 = vld [vmem:[#allocation4 + $0x1d8] sm:$0xff]  ;;  %v506_v16 = vld [vmem:[#allocation4 + $0x150] sm:$0xff]  ;;  %v505_v18 = vld [vmem:[#allocation4 + $0x148] sm:$0xff] }
  0x66   :  { %3305 = vmatprep.subr.mxu0 %v4409_v0  ;;  %3340 = vmatprep.subr.mxu1 %v4409_v0  ;;  %v595_v17 = vld [vmem:[#allocation4 + $0x1d0] sm:$0xff]  ;;  %v594_v19 = vld [vmem:[#allocation4 + $0x1c8] sm:$0xff]  ;;  %v504_v20 = vld [vmem:[#allocation4 + $0x140] sm:$0xff] }
  0x67   :  { %3306 = vmatpush3.msra.mxu0 %v130_v27  ;;  %3341 = vmatpush3.msra.mxu1 %v112_v28  ;;  %v593_v21 = vld [vmem:[#allocation4 + $0x1c0] sm:$0xff]  ;;  %v503_v22 = vld [vmem:[#allocation4 + $0x138] sm:$0xff]  ;;  %v502_v24 = vld [vmem:[#allocation4 + $0x130] sm:$0xff] }
  0x68   :  { %3307 = vmatprep.subr.mxu0 %v4409_v0  ;;  %3342 = vmatprep.subr.mxu1 %v4409_v0  ;;  %v592_v23 = vld [vmem:[#allocation4 + $0x1b8] sm:$0xff]  ;;  %v591_v25 = vld [vmem:[#allocation4 + $0x1b0] sm:$0xff]  ;;  %v501_v26 = vld [vmem:[#allocation4 + $0x128] sm:$0xff] }
  0x69   :  { %3308 = vmatpush3.msra.mxu0 %v129_v29  ;;  %3343 = vmatpush3.msra.mxu1 %v111_v30  ;;  %v590_v27 = vld [vmem:[#allocation4 + $0x1a8] sm:$0xff]  ;;  %v500_v28 = vld [vmem:[#allocation4 + $0x120] sm:$0xff]  ;;  %v499_v30 = vld [vmem:[#allocation4 + $0x118] sm:$0xff] }
  0x6a   :  { %3309 = vmatprep.subr.mxu0 %v4409_v0  ;;  %3344 = vmatprep.subr.mxu1 %v4409_v0  ;;  %v589_v29 = vld [vmem:[#allocation4 + $0x1a0] sm:$0xff] }
  0x6b   :  { %3310 = vmatpush3.msra.mxu0 %v128_v31  ;;  %3345 = vmatpush3.msra.mxu1 %v110_v32  ;;  %v588_v31 = vld [vmem:[#allocation4 + $0x198] sm:$0xff]  ;;  %v498_v32 = vld [vmem:[#allocation4 + $0x110] sm:$0xff] }
  0x6c   :  { %3312 = vmatmul.mubr.f32.vlgmr.msra.gmra.mxu0 %v126_v33  ;;  %3347 = vmatmul.mubr.f32.vlgmr.msra.gmra.mxu1 %v2773_v34  ;;  %v587_v33 = vld [vmem:[#allocation4 + $0x190] sm:$0xff]  ;;  %v497_v34 = vld [vmem:[#allocation4 + $0x108] sm:$0xff] }
  0x6d   :  { %3349 = vmatprep.subr.mxu0 %v4409_v0  ;;  %3384 = vmatprep.subr.mxu1 %v4409_v0 }
  0x6e   :  { %3350 = vmatpush3.msra.mxu0 %v353_v35  ;;  %3385 = vmatpush3.msra.mxu1 %v335_v36  ;;  %v586_v35 = vld [vmem:[#allocation4 + $0x188] sm:$0xff]  ;;  %v496_v36 = vld [vmem:[#allocation4 + $0x100] sm:$0xff] }
  0x6f   :  { %3351 = vmatprep.subr.mxu0 %v4409_v0  ;;  %3386 = vmatprep.subr.mxu1 %v4409_v0 }
  0x70   :  { %3352 = vmatpush3.msra.mxu0 %v352_v37  ;;  %3387 = vmatpush3.msra.mxu1 %v334_v38  ;;  %v585_v37 = vld [vmem:[#allocation4 + $0x180] sm:$0xff] }
  0x71   :  { %3353 = vmatprep.subr.mxu0 %v4409_v0  ;;  %3388 = vmatprep.subr.mxu1 %v4409_v0  ;;  %v494_v38 = vld [vmem:[%s5206_s0 + $0x2] sm:$0xf] }
  0x72   :  { %3354 = vmatpush3.msra.mxu0 %v351_v39  ;;  %3389 = vmatpush3.msra.mxu1 %v333_v40  ;;  %v2776_v39 = vld [vmem:[%s5206_s0 + $0xa] sm:$0xf]  ;;  %v737_v40 = vld [vmem:[#allocation6 + $0xf8] sm:$0xff] }
  0x73   :  { %3355 = vmatprep.subr.mxu0 %v4409_v0  ;;  %3390 = vmatprep.subr.mxu1 %v4409_v0 }
  0x74   :  { %3356 = vmatpush3.msra.mxu0 %v350_v41  ;;  %3391 = vmatpush3.msra.mxu1 %v332_v42  ;;  %v719_v41 = vld [vmem:[#allocation6 + $0x78] sm:$0xff]  ;;  %v736_v42 = vld [vmem:[#allocation6 + $0xf0] sm:$0xff] }
  0x75   :  { %3357 = vmatprep.subr.mxu0 %v4409_v0  ;;  %3392 = vmatprep.subr.mxu1 %v4409_v0 }
  0x76   :  { %3358 = vmatpush3.msra.mxu0 %v349_v43  ;;  %3393 = vmatpush3.msra.mxu1 %v331_v44  ;;  %v718_v43 = vld [vmem:[#allocation6 + $0x70] sm:$0xff]  ;;  %v735_v44 = vld [vmem:[#allocation6 + $0xe8] sm:$0xff] }
  0x77   :  { %3359 = vmatprep.subr.mxu0 %v4409_v0  ;;  %3394 = vmatprep.subr.mxu1 %v4409_v0 }
  0x78   :  { %3360 = vmatpush3.msra.mxu0 %v348_v45  ;;  %3395 = vmatpush3.msra.mxu1 %v330_v46  ;;  %v717_v45 = vld [vmem:[#allocation6 + $0x68] sm:$0xff]  ;;  %v734_v46 = vld [vmem:[#allocation6 + $0xe0] sm:$0xff] }
  0x79   :  { %3361 = vmatprep.subr.mxu0 %v4409_v0  ;;  %3396 = vmatprep.subr.mxu1 %v4409_v0 }
  0x7a   :  { %3362 = vmatpush3.msra.mxu0 %v347_v47  ;;  %3397 = vmatpush3.msra.mxu1 %v329_v48  ;;  %v716_v47 = vld [vmem:[#allocation6 + $0x60] sm:$0xff]  ;;  %v733_v48 = vld [vmem:[#allocation6 + $0xd8] sm:$0xff] }
  0x7b   :  { %3363 = vmatprep.subr.mxu0 %v4409_v0  ;;  %3398 = vmatprep.subr.mxu1 %v4409_v0 }
  0x7c   :  { %3364 = vmatpush3.msra.mxu0 %v346_v49  ;;  %3399 = vmatpush3.msra.mxu1 %v328_v50  ;;  %v715_v49 = vld [vmem:[#allocation6 + $0x58] sm:$0xff]  ;;  %v732_v50 = vld [vmem:[#allocation6 + $0xd0] sm:$0xff] }
  0x7d   :  { %3365 = vmatprep.subr.mxu0 %v4409_v0  ;;  %3400 = vmatprep.subr.mxu1 %v4409_v0 }
  0x7e   :  { %3366 = vmatpush3.msra.mxu0 %v345_v51  ;;  %3401 = vmatpush3.msra.mxu1 %v327_v52  ;;  %v714_v51 = vld [vmem:[#allocation6 + $0x50] sm:$0xff]  ;;  %v731_v52 = vld [vmem:[#allocation6 + $0xc8] sm:$0xff] }
  0x7f   :  { %3367 = vmatprep.subr.mxu0 %v4409_v0  ;;  %3402 = vmatprep.subr.mxu1 %v4409_v0 }
  0x80   :  { %3368 = vmatpush3.msra.mxu0 %v344_v53  ;;  %3403 = vmatpush3.msra.mxu1 %v326_v54  ;;  %v713_v53 = vld [vmem:[#allocation6 + $0x48] sm:$0xff]  ;;  %v730_v54 = vld [vmem:[#allocation6 + $0xc0] sm:$0xff] }
  0x81   :  { %3369 = vmatprep.subr.mxu0 %v4409_v0  ;;  %3404 = vmatprep.subr.mxu1 %v4409_v0 }
  0x82   :  { %3370 = vmatpush3.msra.mxu0 %v343_v55  ;;  %3405 = vmatpush3.msra.mxu1 %v325_v56  ;;  %v712_v55 = vld [vmem:[#allocation6 + $0x40] sm:$0xff]  ;;  %v729_v56 = vld [vmem:[#allocation6 + $0xb8] sm:$0xff] }
  0x83   :  { %3371 = vmatprep.subr.mxu0 %v4409_v0  ;;  %3406 = vmatprep.subr.mxu1 %v4409_v0 }
  0x84   :  { %3372 = vmatpush3.msra.mxu0 %v342_v57  ;;  %3407 = vmatpush3.msra.mxu1 %v324_v58  ;;  %v711_v57 = vld [vmem:[#allocation6 + $0x38] sm:$0xff]  ;;  %v728_v58 = vld [vmem:[#allocation6 + $0xb0] sm:$0xff] }
  0x85   :  { %3373 = vmatprep.subr.mxu0 %v4409_v0  ;;  %3408 = vmatprep.subr.mxu1 %v4409_v0 }
  0x86   :  { %3374 = vmatpush3.msra.mxu0 %v341_v59  ;;  %3409 = vmatpush3.msra.mxu1 %v323_v60  ;;  %v710_v59 = vld [vmem:[#allocation6 + $0x30] sm:$0xff]  ;;  %v727_v60 = vld [vmem:[#allocation6 + $0xa8] sm:$0xff] }
  0x87   :  { %3375 = vmatprep.subr.mxu0 %v4409_v0  ;;  %3410 = vmatprep.subr.mxu1 %v4409_v0 }
  0x88   :  { %3376 = vmatpush3.msra.mxu0 %v340_v61  ;;  %3411 = vmatpush3.msra.mxu1 %v322_v62  ;;  %v709_v61 = vld [vmem:[#allocation6 + $0x28] sm:$0xff]  ;;  %v726_v62 = vld [vmem:[#allocation6 + $0xa0] sm:$0xff] }
  0x89   :  { %3377 = vmatprep.subr.mxu0 %v4409_v0  ;;  %3412 = vmatprep.subr.mxu1 %v4409_v0 }
  0x8a   :  { %3378 = vmatpush3.msra.mxu0 %v339_v63  ;;  %3413 = vmatpush3.msra.mxu1 %v321_v1  ;;  %v708_v63 = vld [vmem:[#allocation6 + $0x20] sm:$0xff]  ;;  %v725_v1 = vld [vmem:[#allocation6 + $0x98] sm:$0xff] }
  0x8b   :  { %3379 = vmatprep.subr.mxu0 %v4409_v0  ;;  %3414 = vmatprep.subr.mxu1 %v4409_v0 }
  0x8c   :  { %3380 = vmatpush3.msra.mxu0 %v338_v2  ;;  %3381 = vmatprep.mubr.msk.f32.mxu0 %vm4410_vm0, %v4409_v0  ;;  %v707_v2 = vld [vmem:[#allocation6 + $0x18] sm:$0xff] }
  0x8d   :  { %3415 = vmatpush3.msra.mxu1 %v320_v3  ;;  %3382 = vmatmul.mubr.f32.vlgmr.msra.gmra.mxu0 %v2775_v4  ;;  %v724_v3 = vld [vmem:[#allocation6 + $0x90] sm:$0xff] }
  0x8e   :  { %3416 = vmatprep.mubr.msk.f32.mxu1 %vm4410_vm0, %v4409_v0  ;;  %3419 = vmatprep.subr.mxu0 %v4409_v0  ;;  %v706_v4 = vld [vmem:[#allocation6 + $0x10] sm:$0xff] }
  0x8f   :  { %3454 = vmatprep.subr.mxu1 %v4409_v0  ;;  %3417 = vmatmul.mubr.f32.vlgmr.msra.gmra.mxu1 %v319_v5  ;;  %v723_v5 = vld [vmem:[#allocation6 + $0x88] sm:$0xff] }
  0x90   :  { %3420 = vmatpush3.msra.mxu0 %v511_v6  ;;  %3455 = vmatpush3.msra.mxu1 %v600_v7  ;;  %v705_v6 = vld [vmem:[#allocation6 + $0x8] sm:$0xff]  ;;  %v722_v7 = vld [vmem:[#allocation6 + $0x80] sm:$0xff] }
  0x91   :  { %3421 = vmatprep.subr.mxu0 %v4409_v0  ;;  %3456 = vmatprep.subr.mxu1 %v4409_v0 }
  0x92   :  { %3422 = vmatpush3.msra.mxu0 %v510_v8  ;;  %3457 = vmatpush3.msra.mxu1 %v599_v9  ;;  %v704_v8 = vld [vmem:[#allocation6] sm:$0xff]  ;;  %v2778_v9 = vld [vmem:[%s5206_s0 + $0x8] sm:$0xf] }
  0x93   :  { %3423 = vmatprep.subr.mxu0 %v4409_v0  ;;  %3458 = vmatprep.subr.mxu1 %v4409_v0 }
  0x94   :  { %3424 = vmatpush3.msra.mxu0 %v509_v10  ;;  %3459 = vmatpush3.msra.mxu1 %v598_v11  ;;  %v703_v10 = vld [vmem:[%s5206_s0] sm:$0xf]  ;;  %v895_v11 = vld [vmem:[#allocation6 + $0x178] sm:$0xff] }
  0x95   :  { %3425 = vmatprep.subr.mxu0 %v4409_v0  ;;  %3460 = vmatprep.subr.mxu1 %v4409_v0 }
  0x96   :  { %3426 = vmatpush3.msra.mxu0 %v508_v12  ;;  %3461 = vmatpush3.msra.mxu1 %v597_v13  ;;  %v984_v12 = vld [vmem:[#allocation6 + $0x1f8] sm:$0xff]  ;;  %v894_v13 = vld [vmem:[#allocation6 + $0x170] sm:$0xff] }
  0x97   :  { %3427 = vmatprep.subr.mxu0 %v4409_v0  ;;  %3462 = vmatprep.subr.mxu1 %v4409_v0 }
  0x98   :  { %3428 = vmatpush3.msra.mxu0 %v507_v14  ;;  %3463 = vmatpush3.msra.mxu1 %v596_v15  ;;  %v983_v14 = vld [vmem:[#allocation6 + $0x1f0] sm:$0xff]  ;;  %v893_v15 = vld [vmem:[#allocation6 + $0x168] sm:$0xff] }
  0x99   :  { %3429 = vmatprep.subr.mxu0 %v4409_v0  ;;  %3464 = vmatprep.subr.mxu1 %v4409_v0 }
  0x9a   :  { %3430 = vmatpush3.msra.mxu0 %v506_v16  ;;  %3465 = vmatpush3.msra.mxu1 %v595_v17  ;;  %v982_v16 = vld [vmem:[#allocation6 + $0x1e8] sm:$0xff]  ;;  %v892_v17 = vld [vmem:[#allocation6 + $0x160] sm:$0xff] }
  0x9b   :  { %3431 = vmatprep.subr.mxu0 %v4409_v0  ;;  %3466 = vmatprep.subr.mxu1 %v4409_v0 }
  0x9c   :  { %3432 = vmatpush3.msra.mxu0 %v505_v18  ;;  %3467 = vmatpush3.msra.mxu1 %v594_v19  ;;  %v981_v18 = vld [vmem:[#allocation6 + $0x1e0] sm:$0xff]  ;;  %v891_v19 = vld [vmem:[#allocation6 + $0x158] sm:$0xff] }
  0x9d   :  { %3433 = vmatprep.subr.mxu0 %v4409_v0  ;;  %3468 = vmatprep.subr.mxu1 %v4409_v0 }
  0x9e   :  { %3434 = vmatpush3.msra.mxu0 %v504_v20  ;;  %3469 = vmatpush3.msra.mxu1 %v593_v21  ;;  %v980_v20 = vld [vmem:[#allocation6 + $0x1d8] sm:$0xff]  ;;  %v890_v21 = vld [vmem:[#allocation6 + $0x150] sm:$0xff] }
  0x9f   :  { %3435 = vmatprep.subr.mxu0 %v4409_v0  ;;  %3470 = vmatprep.subr.mxu1 %v4409_v0 }
  0xa0   :  { %3436 = vmatpush3.msra.mxu0 %v503_v22  ;;  %3471 = vmatpush3.msra.mxu1 %v592_v23  ;;  %v979_v22 = vld [vmem:[#allocation6 + $0x1d0] sm:$0xff]  ;;  %v889_v23 = vld [vmem:[#allocation6 + $0x148] sm:$0xff] }
  0xa1   :  { %3437 = vmatprep.subr.mxu0 %v4409_v0  ;;  %3472 = vmatprep.subr.mxu1 %v4409_v0 }
  0xa2   :  { %3438 = vmatpush3.msra.mxu0 %v502_v24  ;;  %3473 = vmatpush3.msra.mxu1 %v591_v25  ;;  %v978_v24 = vld [vmem:[#allocation6 + $0x1c8] sm:$0xff]  ;;  %v888_v25 = vld [vmem:[#allocation6 + $0x140] sm:$0xff] }
  0xa3   :  { %3439 = vmatprep.subr.mxu0 %v4409_v0  ;;  %3474 = vmatprep.subr.mxu1 %v4409_v0 }
  0xa4   :  { %3440 = vmatpush3.msra.mxu0 %v501_v26  ;;  %3475 = vmatpush3.msra.mxu1 %v590_v27  ;;  %v977_v26 = vld [vmem:[#allocation6 + $0x1c0] sm:$0xff]  ;;  %v887_v27 = vld [vmem:[#allocation6 + $0x138] sm:$0xff] }
  0xa5   :  { %3441 = vmatprep.subr.mxu0 %v4409_v0  ;;  %3476 = vmatprep.subr.mxu1 %v4409_v0 }
  0xa6   :  { %3442 = vmatpush3.msra.mxu0 %v500_v28  ;;  %3477 = vmatpush3.msra.mxu1 %v589_v29  ;;  %v976_v28 = vld [vmem:[#allocation6 + $0x1b8] sm:$0xff]  ;;  %v886_v29 = vld [vmem:[#allocation6 + $0x130] sm:$0xff] }
  0xa7   :  { %3443 = vmatprep.subr.mxu0 %v4409_v0  ;;  %3478 = vmatprep.subr.mxu1 %v4409_v0 }
  0xa8   :  { %3444 = vmatpush3.msra.mxu0 %v499_v30  ;;  %3479 = vmatpush3.msra.mxu1 %v588_v31  ;;  %v975_v30 = vld [vmem:[#allocation6 + $0x1b0] sm:$0xff]  ;;  %v885_v31 = vld [vmem:[#allocation6 + $0x128] sm:$0xff] }
  0xa9   :  { %3445 = vmatprep.subr.mxu0 %v4409_v0  ;;  %3480 = vmatprep.subr.mxu1 %v4409_v0 }
  0xaa   :  { %3446 = vmatpush3.msra.mxu0 %v498_v32  ;;  %3481 = vmatpush3.msra.mxu1 %v587_v33  ;;  %v974_v32 = vld [vmem:[#allocation6 + $0x1a8] sm:$0xff]  ;;  %v884_v33 = vld [vmem:[#allocation6 + $0x120] sm:$0xff] }
  0xab   :  { %3447 = vmatprep.subr.mxu0 %v4409_v0  ;;  %3482 = vmatprep.subr.mxu1 %v4409_v0 }
  0xac   :  { %3448 = vmatpush3.msra.mxu0 %v497_v34  ;;  %3483 = vmatpush3.msra.mxu1 %v586_v35  ;;  %v973_v34 = vld [vmem:[#allocation6 + $0x1a0] sm:$0xff]  ;;  %v883_v35 = vld [vmem:[#allocation6 + $0x118] sm:$0xff] }
  0xad   :  { %3449 = vmatprep.subr.mxu0 %v4409_v0  ;;  %3484 = vmatprep.subr.mxu1 %v4409_v0 }
  0xae   :  { %3450 = vmatpush3.msra.mxu0 %v496_v36  ;;  %3451 = vmatprep.mubr.msk.f32.mxu0 %vm4410_vm0, %v4409_v0  ;;  %v972_v36 = vld [vmem:[#allocation6 + $0x198] sm:$0xff] }
  0xaf   :  { %3485 = vmatpush3.msra.mxu1 %v585_v37  ;;  %3452 = vmatmul.mubr.f32.vlgmr.msra.gmra.mxu0 %v494_v38  ;;  %v882_v37 = vld [vmem:[#allocation6 + $0x110] sm:$0xff] }
  0xb0   :  { %3486 = vmatprep.mubr.msk.f32.mxu1 %vm4410_vm0, %v4409_v0  ;;  %3489 = vmatprep.subr.mxu0 %v4409_v0  ;;  %v971_v38 = vld [vmem:[#allocation6 + $0x190] sm:$0xff] }
  0xb1   :  { %3524 = vmatprep.subr.mxu1 %v4409_v0  ;;  %3487 = vmatmul.mubr.f32.vlgmr.msra.gmra.mxu1 %v2776_v39  ;;  %v881_v39 = vld [vmem:[#allocation6 + $0x108] sm:$0xff] }
  0xb2   :  { %3490 = vmatpush3.msra.mxu0 %v737_v40  ;;  %3525 = vmatpush3.msra.mxu1 %v719_v41  ;;  %v970_v40 = vld [vmem:[#allocation6 + $0x188] sm:$0xff]  ;;  %v880_v41 = vld [vmem:[#allocation6 + $0x100] sm:$0xff] }
  0xb3   :  { %3491 = vmatprep.subr.mxu0 %v4409_v0  ;;  %3526 = vmatprep.subr.mxu1 %v4409_v0 }
  0xb4   :  { %3492 = vmatpush3.msra.mxu0 %v736_v42  ;;  %3527 = vmatpush3.msra.mxu1 %v718_v43  ;;  %v969_v42 = vld [vmem:[#allocation6 + $0x180] sm:$0xff] }
  0xb5   :  { %3493 = vmatprep.subr.mxu0 %v4409_v0  ;;  %3528 = vmatprep.subr.mxu1 %v4409_v0  ;;  %v878_v43 = vld [vmem:[%s5206_s0 + $0x1] sm:$0xf] }
  0xb6   :  { %3494 = vmatpush3.msra.mxu0 %v735_v44  ;;  %3529 = vmatpush3.msra.mxu1 %v717_v45  ;;  %v2779_v44 = vld [vmem:[%s5206_s0 + $0x9] sm:$0xf]  ;;  %v1073_v45 = vld [vmem:[#allocation6 + $0x278] sm:$0xff] }
  0xb7   :  { %3495 = vmatprep.subr.mxu0 %v4409_v0  ;;  %3530 = vmatprep.subr.mxu1 %v4409_v0 }
  0xb8   :  { %3496 = vmatpush3.msra.mxu0 %v734_v46  ;;  %3531 = vmatpush3.msra.mxu1 %v716_v47  ;;  %v1162_v46 = vld [vmem:[#allocation6 + $0x2f8] sm:$0xff]  ;;  %v4715_v47 = vld [vmem:[%s5213_s7] sm:$0xff] }
  0xb9   :  { %3497 = vmatprep.subr.mxu0 %v4409_v0  ;;  %3532 = vmatprep.subr.mxu1 %v4409_v0 }
  0xba   :  { %3498 = vmatpush3.msra.mxu0 %v733_v48  ;;  %3533 = vmatpush3.msra.mxu1 %v715_v49  ;;  %v1161_v48 = vld [vmem:[#allocation6 + $0x2f0] sm:$0xff]  ;;  %v1071_v49 = vld [vmem:[#allocation6 + $0x268] sm:$0xff] }
  0xbb   :  { %3499 = vmatprep.subr.mxu0 %v4409_v0  ;;  %3534 = vmatprep.subr.mxu1 %v4409_v0 }
  0xbc   :  { %3500 = vmatpush3.msra.mxu0 %v732_v50  ;;  %3535 = vmatpush3.msra.mxu1 %v714_v51  ;;  %v1160_v50 = vld [vmem:[#allocation6 + $0x2e8] sm:$0xff]  ;;  %v1070_v51 = vld [vmem:[#allocation6 + $0x260] sm:$0xff] }
  0xbd   :  { %3501 = vmatprep.subr.mxu0 %v4409_v0  ;;  %3536 = vmatprep.subr.mxu1 %v4409_v0 }
  0xbe   :  { %3502 = vmatpush3.msra.mxu0 %v731_v52  ;;  %3537 = vmatpush3.msra.mxu1 %v713_v53  ;;  %v1159_v52 = vld [vmem:[#allocation6 + $0x2e0] sm:$0xff]  ;;  %v1069_v53 = vld [vmem:[#allocation6 + $0x258] sm:$0xff] }
  0xbf   :  { %3503 = vmatprep.subr.mxu0 %v4409_v0  ;;  %3538 = vmatprep.subr.mxu1 %v4409_v0 }
  0xc0   :  { %3504 = vmatpush3.msra.mxu0 %v730_v54  ;;  %3539 = vmatpush3.msra.mxu1 %v712_v55  ;;  %v1158_v54 = vld [vmem:[#allocation6 + $0x2d8] sm:$0xff]  ;;  %v1068_v55 = vld [vmem:[#allocation6 + $0x250] sm:$0xff] }
  0xc1   :  { %3505 = vmatprep.subr.mxu0 %v4409_v0  ;;  %3540 = vmatprep.subr.mxu1 %v4409_v0 }
  0xc2   :  { %3506 = vmatpush3.msra.mxu0 %v729_v56  ;;  %3541 = vmatpush3.msra.mxu1 %v711_v57  ;;  %v1157_v56 = vld [vmem:[#allocation6 + $0x2d0] sm:$0xff]  ;;  %v1067_v57 = vld [vmem:[#allocation6 + $0x248] sm:$0xff] }
  0xc3   :  { %3507 = vmatprep.subr.mxu0 %v4409_v0  ;;  %3542 = vmatprep.subr.mxu1 %v4409_v0 }
  0xc4   :  { %3508 = vmatpush3.msra.mxu0 %v728_v58  ;;  %3543 = vmatpush3.msra.mxu1 %v710_v59  ;;  %v1156_v58 = vld [vmem:[#allocation6 + $0x2c8] sm:$0xff]  ;;  %v1066_v59 = vld [vmem:[#allocation6 + $0x240] sm:$0xff] }
  0xc5   :  { %3509 = vmatprep.subr.mxu0 %v4409_v0  ;;  %3544 = vmatprep.subr.mxu1 %v4409_v0 }
  0xc6   :  { %3510 = vmatpush3.msra.mxu0 %v727_v60  ;;  %3545 = vmatpush3.msra.mxu1 %v709_v61  ;;  %v1155_v60 = vld [vmem:[#allocation6 + $0x2c0] sm:$0xff]  ;;  %v1065_v61 = vld [vmem:[#allocation6 + $0x238] sm:$0xff] }
  0xc7   :  { %3511 = vmatprep.subr.mxu0 %v4409_v0  ;;  %3546 = vmatprep.subr.mxu1 %v4409_v0 }
  0xc8   :  { %3512 = vmatpush3.msra.mxu0 %v726_v62  ;;  %3547 = vmatpush3.msra.mxu1 %v708_v63  ;;  %v1154_v62 = vld [vmem:[#allocation6 + $0x2b8] sm:$0xff]  ;;  %v1064_v63 = vld [vmem:[#allocation6 + $0x230] sm:$0xff] }
  0xc9   :  { %3513 = vmatprep.subr.mxu0 %v4409_v0  ;;  %3548 = vmatprep.subr.mxu1 %v4409_v0 }
  0xca   :  { %3514 = vmatpush3.msra.mxu0 %v725_v1  ;;  %3549 = vmatpush3.msra.mxu1 %v707_v2  ;;  %v1153_v1 = vld [vmem:[#allocation6 + $0x2b0] sm:$0xff]  ;;  %v1063_v2 = vld [vmem:[#allocation6 + $0x228] sm:$0xff] }
  0xcb   :  { %3515 = vmatprep.subr.mxu0 %v4409_v0  ;;  %3550 = vmatprep.subr.mxu1 %v4409_v0 }
  0xcc   :  { %3516 = vmatpush3.msra.mxu0 %v724_v3  ;;  %3551 = vmatpush3.msra.mxu1 %v706_v4  ;;  %v1152_v3 = vld [vmem:[#allocation6 + $0x2a8] sm:$0xff]  ;;  %v1062_v4 = vld [vmem:[#allocation6 + $0x220] sm:$0xff] }
  0xcd   :  { %3517 = vmatprep.subr.mxu0 %v4409_v0  ;;  %3552 = vmatprep.subr.mxu1 %v4409_v0 }
  0xce   :  { %3518 = vmatpush3.msra.mxu0 %v723_v5  ;;  %3553 = vmatpush3.msra.mxu1 %v705_v6  ;;  %v1151_v5 = vld [vmem:[#allocation6 + $0x2a0] sm:$0xff]  ;;  %v1061_v6 = vld [vmem:[#allocation6 + $0x218] sm:$0xff] }
  0xcf   :  { %3519 = vmatprep.subr.mxu0 %v4409_v0  ;;  %3554 = vmatprep.subr.mxu1 %v4409_v0 }
  0xd0   :  { %3520 = vmatpush3.msra.mxu0 %v722_v7  ;;  %3521 = vmatprep.mubr.msk.f32.mxu0 %vm4410_vm0, %v4409_v0  ;;  %v1150_v7 = vld [vmem:[#allocation6 + $0x298] sm:$0xff] }
  0xd1   :  { %3555 = vmatpush3.msra.mxu1 %v704_v8  ;;  %3522 = vmatmul.mubr.f32.vlgmr.msra.gmra.mxu0 %v2778_v9  ;;  %v1060_v8 = vld [vmem:[#allocation6 + $0x210] sm:$0xff] }
  0xd2   :  { %3556 = vmatprep.mubr.msk.f32.mxu1 %vm4410_vm0, %v4409_v0  ;;  %3559 = vmatprep.subr.mxu0 %v4409_v0  ;;  %v1149_v9 = vld [vmem:[#allocation6 + $0x290] sm:$0xff] }
  0xd3   :  { %3594 = vmatprep.subr.mxu1 %v4409_v0  ;;  %3557 = vmatmul.mubr.f32.vlgmr.msra.gmra.mxu1 %v703_v10  ;;  %v1059_v10 = vld [vmem:[#allocation6 + $0x208] sm:$0xff] }
  0xd4   :  { %3560 = vmatpush3.msra.mxu0 %v895_v11  ;;  %3595 = vmatpush3.msra.mxu1 %v984_v12  ;;  %v1148_v11 = vld [vmem:[#allocation6 + $0x288] sm:$0xff]  ;;  %v1058_v12 = vld [vmem:[#allocation6 + $0x200] sm:$0xff] }
  0xd5   :  { %3561 = vmatprep.subr.mxu0 %v4409_v0  ;;  %3596 = vmatprep.subr.mxu1 %v4409_v0 }
  0xd6   :  { %3562 = vmatpush3.msra.mxu0 %v894_v13  ;;  %3597 = vmatpush3.msra.mxu1 %v983_v14  ;;  %v1147_v13 = vld [vmem:[#allocation6 + $0x280] sm:$0xff] }
  0xd7   :  { %3563 = vmatprep.subr.mxu0 %v4409_v0  ;;  %3598 = vmatprep.subr.mxu1 %v4409_v0  ;;  %v1056_v14 = vld [vmem:[%s5206_s0 + $0x2] sm:$0xf] }
  0xd8   :  { %3564 = vmatpush3.msra.mxu0 %v893_v15  ;;  %3599 = vmatpush3.msra.mxu1 %v982_v16  ;;  %v2780_v15 = vld [vmem:[%s5206_s0 + $0xa] sm:$0xf]  ;;  %v1251_v16 = vld [vmem:[#allocation6 + $0x378] sm:$0xff] }
  0xd9   :  { %3565 = vmatprep.subr.mxu0 %v4409_v0  ;;  %3600 = vmatprep.subr.mxu1 %v4409_v0 }
  0xda   :  { %3566 = vmatpush3.msra.mxu0 %v892_v17  ;;  %3601 = vmatpush3.msra.mxu1 %v981_v18  ;;  %v1340_v17 = vld [vmem:[#allocation6 + $0x3f8] sm:$0xff]  ;;  %v1250_v18 = vld [vmem:[#allocation6 + $0x370] sm:$0xff] }
  0xdb   :  { %3567 = vmatprep.subr.mxu0 %v4409_v0  ;;  %3602 = vmatprep.subr.mxu1 %v4409_v0 }
  0xdc   :  { %3568 = vmatpush3.msra.mxu0 %v891_v19  ;;  %3603 = vmatpush3.msra.mxu1 %v980_v20  ;;  %v1339_v19 = vld [vmem:[#allocation6 + $0x3f0] sm:$0xff]  ;;  %v1249_v20 = vld [vmem:[#allocation6 + $0x368] sm:$0xff] }
  0xdd   :  { %3569 = vmatprep.subr.mxu0 %v4409_v0  ;;  %3604 = vmatprep.subr.mxu1 %v4409_v0 }
  0xde   :  { %3570 = vmatpush3.msra.mxu0 %v890_v21  ;;  %3605 = vmatpush3.msra.mxu1 %v979_v22  ;;  %v1338_v21 = vld [vmem:[#allocation6 + $0x3e8] sm:$0xff]  ;;  %v1248_v22 = vld [vmem:[#allocation6 + $0x360] sm:$0xff] }
  0xdf   :  { %3571 = vmatprep.subr.mxu0 %v4409_v0  ;;  %3606 = vmatprep.subr.mxu1 %v4409_v0 }
  0xe0   :  { %3572 = vmatpush3.msra.mxu0 %v889_v23  ;;  %3607 = vmatpush3.msra.mxu1 %v978_v24  ;;  %v1337_v23 = vld [vmem:[#allocation6 + $0x3e0] sm:$0xff]  ;;  %v1247_v24 = vld [vmem:[#allocation6 + $0x358] sm:$0xff] }
  0xe1   :  { %3573 = vmatprep.subr.mxu0 %v4409_v0  ;;  %3608 = vmatprep.subr.mxu1 %v4409_v0 }
  0xe2   :  { %3574 = vmatpush3.msra.mxu0 %v888_v25  ;;  %3609 = vmatpush3.msra.mxu1 %v977_v26  ;;  %v1336_v25 = vld [vmem:[#allocation6 + $0x3d8] sm:$0xff]  ;;  %v1246_v26 = vld [vmem:[#allocation6 + $0x350] sm:$0xff] }
  0xe3   :  { %3575 = vmatprep.subr.mxu0 %v4409_v0  ;;  %3610 = vmatprep.subr.mxu1 %v4409_v0 }
  0xe4   :  { %3576 = vmatpush3.msra.mxu0 %v887_v27  ;;  %3611 = vmatpush3.msra.mxu1 %v976_v28  ;;  %v1335_v27 = vld [vmem:[#allocation6 + $0x3d0] sm:$0xff]  ;;  %v1245_v28 = vld [vmem:[#allocation6 + $0x348] sm:$0xff] }
  0xe5   :  { %3577 = vmatprep.subr.mxu0 %v4409_v0  ;;  %3612 = vmatprep.subr.mxu1 %v4409_v0 }
  0xe6   :  { %3578 = vmatpush3.msra.mxu0 %v886_v29  ;;  %3613 = vmatpush3.msra.mxu1 %v975_v30  ;;  %v1334_v29 = vld [vmem:[#allocation6 + $0x3c8] sm:$0xff]  ;;  %v1244_v30 = vld [vmem:[#allocation6 + $0x340] sm:$0xff] }
  0xe7   :  { %3579 = vmatprep.subr.mxu0 %v4409_v0  ;;  %3614 = vmatprep.subr.mxu1 %v4409_v0 }
  0xe8   :  { %3580 = vmatpush3.msra.mxu0 %v885_v31  ;;  %3615 = vmatpush3.msra.mxu1 %v974_v32  ;;  %v1333_v31 = vld [vmem:[#allocation6 + $0x3c0] sm:$0xff]  ;;  %v1243_v32 = vld [vmem:[#allocation6 + $0x338] sm:$0xff] }
  0xe9   :  { %3581 = vmatprep.subr.mxu0 %v4409_v0  ;;  %3616 = vmatprep.subr.mxu1 %v4409_v0 }
  0xea   :  { %3582 = vmatpush3.msra.mxu0 %v884_v33  ;;  %3617 = vmatpush3.msra.mxu1 %v973_v34  ;;  %v1332_v33 = vld [vmem:[#allocation6 + $0x3b8] sm:$0xff]  ;;  %v1242_v34 = vld [vmem:[#allocation6 + $0x330] sm:$0xff] }
  0xeb   :  { %3583 = vmatprep.subr.mxu0 %v4409_v0  ;;  %3618 = vmatprep.subr.mxu1 %v4409_v0 }
  0xec   :  { %3584 = vmatpush3.msra.mxu0 %v883_v35  ;;  %3619 = vmatpush3.msra.mxu1 %v972_v36  ;;  %v1331_v35 = vld [vmem:[#allocation6 + $0x3b0] sm:$0xff]  ;;  %v1241_v36 = vld [vmem:[#allocation6 + $0x328] sm:$0xff] }
  0xed   :  { %3585 = vmatprep.subr.mxu0 %v4409_v0  ;;  %3620 = vmatprep.subr.mxu1 %v4409_v0 }
  0xee   :  { %3586 = vmatpush3.msra.mxu0 %v882_v37  ;;  %3621 = vmatpush3.msra.mxu1 %v971_v38  ;;  %v1330_v37 = vld [vmem:[#allocation6 + $0x3a8] sm:$0xff]  ;;  %v1240_v38 = vld [vmem:[#allocation6 + $0x320] sm:$0xff] }
  0xef   :  { %3587 = vmatprep.subr.mxu0 %v4409_v0  ;;  %3622 = vmatprep.subr.mxu1 %v4409_v0 }
  0xf0   :  { %3588 = vmatpush3.msra.mxu0 %v881_v39  ;;  %3623 = vmatpush3.msra.mxu1 %v970_v40  ;;  %v1329_v39 = vld [vmem:[#allocation6 + $0x3a0] sm:$0xff] }
  0xf1   :  { %3589 = vmatprep.subr.mxu0 %v4409_v0  ;;  %3624 = vmatprep.subr.mxu1 %v4409_v0 }
  0xf2   :  { %3590 = vmatpush3.msra.mxu0 %v880_v41  ;;  %3591 = vmatprep.mubr.msk.f32.mxu0 %vm4410_vm0, %v4409_v0  ;;  %v1072_v0 = vld [vmem:[#allocation6 + $0x270] sm:$0xff] }
  0xf3   :  { %3625 = vmatpush3.msra.mxu1 %v969_v42  ;;  %3592 = vmatmul.mubr.f32.vlgmr.msra.gmra.mxu0 %v878_v43  ;;  %v1239_v42 = vld [vmem:[#allocation6 + $0x318] sm:$0xff] }
  0xf4   :  { %3626 = vmatprep.mubr.msk.f32.mxu1 %vm4410_vm0, %v4715_v47  ;;  %3629 = vmatprep.subr.mxu0 %v4715_v47  ;;  %v1328_v43 = vld [vmem:[#allocation6 + $0x398] sm:$0xff] }
  0xf5   :  { %3664 = vmatprep.subr.mxu1 %v4715_v47  ;;  %3627 = vmatmul.mubr.f32.vlgmr.msra.gmra.mxu1 %v2779_v44 }
  0xf6   :  { %3630 = vmatpush3.msra.mxu0 %v1073_v45  ;;  %3665 = vmatpush3.msra.mxu1 %v1162_v46  ;;  %v1238_v46 = vld [vmem:[#allocation6 + $0x310] sm:$0xff] }
  0xf7   :  { %3631 = vmatprep.subr.mxu0 %v4715_v47  ;;  %3666 = vmatprep.subr.mxu1 %v4715_v47 }
  0xf8   :  { %3632 = vmatpush3.msra.mxu0 %v1072_v0  ;;  %3667 = vmatpush3.msra.mxu1 %v1161_v48  ;;  %v1327_v0 = vld [vmem:[#allocation6 + $0x390] sm:$0xff]  ;;  %v1237_v48 = vld [vmem:[#allocation6 + $0x308] sm:$0xff] }
  0xf9   :  { %3633 = vmatprep.subr.mxu0 %v4715_v47  ;;  %3668 = vmatprep.subr.mxu1 %v4715_v47 }
  0xfa   :  { %3634 = vmatpush3.msra.mxu0 %v1071_v49  ;;  %3669 = vmatpush3.msra.mxu1 %v1160_v50  ;;  %v1326_v49 = vld [vmem:[#allocation6 + $0x388] sm:$0xff]  ;;  %v1236_v50 = vld [vmem:[#allocation6 + $0x300] sm:$0xff] }
  0xfb   :  { %3635 = vmatprep.subr.mxu0 %v4715_v47  ;;  %3670 = vmatprep.subr.mxu1 %v4715_v47 }
  0xfc   :  { %3636 = vmatpush3.msra.mxu0 %v1070_v51  ;;  %3671 = vmatpush3.msra.mxu1 %v1159_v52  ;;  %v1325_v51 = vld [vmem:[#allocation6 + $0x380] sm:$0xff] }
  0xfd   :  { %3637 = vmatprep.subr.mxu0 %v4715_v47  ;;  %3672 = vmatprep.subr.mxu1 %v4715_v47  ;;  %v1234_v52 = vld [vmem:[%s5206_s0 + $0x3] sm:$0xf] }
  0xfe   :  { %3638 = vmatpush3.msra.mxu0 %v1069_v53  ;;  %3673 = vmatpush3.msra.mxu1 %v1158_v54  ;;  %v2774_v54 = vld [vmem:[#allocation7] ss:$0 sm:$0xff] }
  0xff   :  { %3639 = vmatprep.subr.mxu0 %v4715_v47  ;;  %3674 = vmatprep.subr.mxu1 %v4715_v47 }
 0x100   :  { %3640 = vmatpush3.msra.mxu0 %v1068_v55  ;;  %3675 = vmatpush3.msra.mxu1 %v1157_v56  ;;  %v2781_v55 = vld [vmem:[%s5206_s0 + $0xb] sm:$0xf]  ;;  %v1478_v56 = vld [vmem:[#allocation2 + $0xf8] sm:$0xff] }
 0x101   :  { %3641 = vmatprep.subr.mxu0 %v4715_v47  ;;  %3676 = vmatprep.subr.mxu1 %v4715_v47 }
 0x102   :  { %3642 = vmatpush3.msra.mxu0 %v1067_v57  ;;  %3677 = vmatpush3.msra.mxu1 %v1156_v58  ;;  %v1460_v57 = vld [vmem:[#allocation2 + $0x78] sm:$0xff] }
 0x103   :  { %3643 = vmatprep.subr.mxu0 %v4715_v47  ;;  %3678 = vmatprep.subr.mxu1 %v4715_v47 }
 0x104   :  { %3644 = vmatpush3.msra.mxu0 %v1066_v59  ;;  %3679 = vmatpush3.msra.mxu1 %v1155_v60  ;;  %v1477_v59 = vld [vmem:[#allocation2 + $0xf0] sm:$0xff] }
 0x105   :  { %3645 = vmatprep.subr.mxu0 %v4715_v47  ;;  %3680 = vmatprep.subr.mxu1 %v4715_v47  ;;  %v1459_v60 = vld [vmem:[#allocation2 + $0x70] sm:$0xff] }
 0x106   :  { %3646 = vmatpush3.msra.mxu0 %v1065_v61  ;;  %3681 = vmatpush3.msra.mxu1 %v1154_v62  ;;  %v1476_v61 = vld [vmem:[#allocation2 + $0xe8] sm:$0xff] }
 0x107   :  { %3647 = vmatprep.subr.mxu0 %v4715_v47  ;;  %3682 = vmatprep.subr.mxu1 %v4715_v47  ;;  %v1458_v62 = vld [vmem:[#allocation2 + $0x68] sm:$0xff] }
 0x108   :  { %3648 = vmatpush3.msra.mxu0 %v1064_v63  ;;  %3683 = vmatpush3.msra.mxu1 %v1153_v1  ;;  %v1475_v1 = vld [vmem:[#allocation2 + $0xe0] sm:$0xff] }
 0x109   :  { %3649 = vmatprep.subr.mxu0 %v4715_v47  ;;  %3684 = vmatprep.subr.mxu1 %v4715_v47 }
 0x10a   :  { %3650 = vmatpush3.msra.mxu0 %v1063_v2  ;;  %3685 = vmatpush3.msra.mxu1 %v1152_v3  ;;  %v1457_v2 = vld [vmem:[#allocation2 + $0x60] sm:$0xff]  ;;  %v1474_v3 = vld [vmem:[#allocation2 + $0xd8] sm:$0xff] }
 0x10b   :  { %3651 = vmatprep.subr.mxu0 %v4715_v47  ;;  %3686 = vmatprep.subr.mxu1 %v4715_v47 }
 0x10c   :  { %3652 = vmatpush3.msra.mxu0 %v1062_v4  ;;  %3687 = vmatpush3.msra.mxu1 %v1151_v5  ;;  %v1456_v4 = vld [vmem:[#allocation2 + $0x58] sm:$0xff]  ;;  %v1473_v5 = vld [vmem:[#allocation2 + $0xd0] sm:$0xff] }
 0x10d   :  { %3653 = vmatprep.subr.mxu0 %v4715_v47  ;;  %3688 = vmatprep.subr.mxu1 %v4715_v47 }
 0x10e   :  { %3654 = vmatpush3.msra.mxu0 %v1061_v6  ;;  %3689 = vmatpush3.msra.mxu1 %v1150_v7  ;;  %v1455_v7 = vld [vmem:[#allocation2 + $0x50] sm:$0xff] }
 0x10f   :  { %3655 = vmatprep.subr.mxu0 %v4715_v47  ;;  %3690 = vmatprep.subr.mxu1 %v4715_v47 }
 0x110   :  { %3656 = vmatpush3.msra.mxu0 %v1060_v8  ;;  %3691 = vmatpush3.msra.mxu1 %v1149_v9  ;;  %v1472_v8 = vld [vmem:[#allocation2 + $0xc8] sm:$0xff] }
 0x111   :  { %3657 = vmatprep.subr.mxu0 %v4715_v47  ;;  %3692 = vmatprep.subr.mxu1 %v4715_v47  ;;  %v1454_v9 = vld [vmem:[#allocation2 + $0x48] sm:$0xff] }
 0x112   :  { %3658 = vmatpush3.msra.mxu0 %v1059_v10  ;;  %3693 = vmatpush3.msra.mxu1 %v1148_v11  ;;  %v1471_v10 = vld [vmem:[#allocation2 + $0xc0] sm:$0xff] }
 0x113   :  { %3659 = vmatprep.subr.mxu0 %v4715_v47  ;;  %3694 = vmatprep.subr.mxu1 %v4715_v47  ;;  %v1453_v11 = vld [vmem:[#allocation2 + $0x40] sm:$0xff] }
 0x114   :  { %3660 = vmatpush3.msra.mxu0 %v1058_v12  ;;  %3661 = vmatprep.mubr.msk.f32.mxu0 %vm4410_vm0, %v4715_v47  ;;  %v1470_v12 = vld [vmem:[#allocation2 + $0xb8] sm:$0xff] }
 0x115   :  { %3695 = vmatpush3.msra.mxu1 %v1147_v13  ;;  %3662 = vmatmul.mubr.f32.vlgmr.msra.gmra.mxu0 %v1056_v14  ;;  %v1452_v13 = vld [vmem:[#allocation2 + $0x38] sm:$0xff]  ;;  %v1469_v14 = vld [vmem:[#allocation2 + $0xb0] sm:$0xff] }
 0x116   :  { %3696 = vmatprep.mubr.msk.f32.mxu1 %vm4410_vm0, %v4715_v47  ;;  %3699 = vmatprep.subr.mxu0 %v4715_v47 }
 0x117   :  { %3734 = vmatprep.subr.mxu1 %v4715_v47  ;;  %3697 = vmatmul.mubr.f32.vlgmr.msra.gmra.mxu1 %v2780_v15  ;;  %v1451_v15 = vld [vmem:[#allocation2 + $0x30] sm:$0xff] }
 0x118   :  { %3700 = vmatpush3.msra.mxu0 %v1251_v16  ;;  %3735 = vmatpush3.msra.mxu1 %v1340_v17  ;;  %v1468_v16 = vld [vmem:[#allocation2 + $0xa8] sm:$0xff] }
 0x119   :  { %3701 = vmatprep.subr.mxu0 %v4715_v47  ;;  %3736 = vmatprep.subr.mxu1 %v4715_v47  ;;  %v1450_v17 = vld [vmem:[#allocation2 + $0x28] sm:$0xff] }
 0x11a   :  { %3702 = vmatpush3.msra.mxu0 %v1250_v18  ;;  %3737 = vmatpush3.msra.mxu1 %v1339_v19  ;;  %v1467_v19 = vld [vmem:[#allocation2 + $0xa0] sm:$0xff] }
 0x11b   :  { %3703 = vmatprep.subr.mxu0 %v4715_v47  ;;  %3738 = vmatprep.subr.mxu1 %v4715_v47 }
 0x11c   :  { %3704 = vmatpush3.msra.mxu0 %v1249_v20  ;;  %3739 = vmatpush3.msra.mxu1 %v1338_v21  ;;  %v1449_v20 = vld [vmem:[#allocation2 + $0x20] sm:$0xff] }
 0x11d   :  { %3705 = vmatprep.subr.mxu0 %v4715_v47  ;;  %3740 = vmatprep.subr.mxu1 %v4715_v47 }
 0x11e   :  { %3706 = vmatpush3.msra.mxu0 %v1248_v22  ;;  %3741 = vmatpush3.msra.mxu1 %v1337_v23  ;;  %v1466_v23 = vld [vmem:[#allocation2 + $0x98] sm:$0xff] }
 0x11f   :  { %3707 = vmatprep.subr.mxu0 %v4715_v47  ;;  %3742 = vmatprep.subr.mxu1 %v4715_v47 }
 0x120   :  { %3708 = vmatpush3.msra.mxu0 %v1247_v24  ;;  %3743 = vmatpush3.msra.mxu1 %v1336_v25  ;;  %v1448_v24 = vld [vmem:[#allocation2 + $0x18] sm:$0xff] }
 0x121   :  { %3709 = vmatprep.subr.mxu0 %v4715_v47  ;;  %3744 = vmatprep.subr.mxu1 %v4715_v47 }
 0x122   :  { %3710 = vmatpush3.msra.mxu0 %v1246_v26  ;;  %3745 = vmatpush3.msra.mxu1 %v1335_v27  ;;  %v1465_v26 = vld [vmem:[#allocation2 + $0x90] sm:$0xff] }
 0x123   :  { %3711 = vmatprep.subr.mxu0 %v4715_v47  ;;  %3746 = vmatprep.subr.mxu1 %v4715_v47  ;;  %v1447_v27 = vld [vmem:[#allocation2 + $0x10] sm:$0xff] }
 0x124   :  { %3712 = vmatpush3.msra.mxu0 %v1245_v28  ;;  %3747 = vmatpush3.msra.mxu1 %v1334_v29  ;;  %v1464_v28 = vld [vmem:[#allocation2 + $0x88] sm:$0xff] }
 0x125   :  { %3713 = vmatprep.subr.mxu0 %v4715_v47  ;;  %3748 = vmatprep.subr.mxu1 %v4715_v47  ;;  %v1446_v29 = vld [vmem:[#allocation2 + $0x8] sm:$0xff] }
 0x126   :  { %3714 = vmatpush3.msra.mxu0 %v1244_v30  ;;  %3749 = vmatpush3.msra.mxu1 %v1333_v31  ;;  %v1463_v30 = vld [vmem:[#allocation2 + $0x80] sm:$0xff] }
 0x127   :  { %3715 = vmatprep.subr.mxu0 %v4715_v47  ;;  %3750 = vmatprep.subr.mxu1 %v4715_v47  ;;  %v1445_v31 = vld [vmem:[#allocation2] sm:$0xff] }
 0x128   :  { %3716 = vmatpush3.msra.mxu0 %v1243_v32  ;;  %3751 = vmatpush3.msra.mxu1 %v1332_v33  ;;  %v2784_v32 = vld [vmem:[%s5206_s0 + $0x12] sm:$0xf]  ;;  %v2783_v33 = vld [vmem:[%s5206_s0 + $0x19] sm:$0xf] }
 0x129   :  { %3717 = vmatprep.subr.mxu0 %v4715_v47  ;;  %3752 = vmatprep.subr.mxu1 %v4715_v47 }
 0x12a   :  { %3718 = vmatpush3.msra.mxu0 %v1242_v34  ;;  %3753 = vmatpush3.msra.mxu1 %v1331_v35  ;;  %v1684_v34 = vld [vmem:[#allocation4 + $0xf8] sm:$0xff] }
 0x12b   :  { %3719 = vmatprep.subr.mxu0 %v4715_v47  ;;  %3754 = vmatprep.subr.mxu1 %v4715_v47  ;;  %v1667_v35 = vld [vmem:[#allocation4 + $0x78] sm:$0xff] }
 0x12c   :  { %3720 = vmatpush3.msra.mxu0 %v1241_v36  ;;  %3755 = vmatpush3.msra.mxu1 %v1330_v37  ;;  %v210_v40 = vpop.f32.mrf.mxu0  ;;  %v280_v41 = vpop.f32.mrf.mxu1  ;;  %v1683_v36 = vld [vmem:[#allocation4 + $0xf0] sm:$0xff] }
 0x12d   :  { %3721 = vmatprep.subr.mxu0 %v4715_v47  ;;  %3756 = vmatprep.subr.mxu1 %v4715_v47  ;;  %v281_v53 = vadd.f32 %v280_v41, %v210_v40  ;;  %v1666_v37 = vld [vmem:[#allocation4 + $0x70] sm:$0xff]  ;;  %v1681_v40 = vld [vmem:[#allocation4 + $0xe0] sm:$0xff] }
 0x12e   :  { %3722 = vmatpush3.msra.mxu0 %v1240_v38  ;;  %3757 = vmatpush3.msra.mxu1 %v1329_v39  ;;  %v3313_v44 = vpop.f32.mrf.mxu0  ;;  %v3348_v45 = vpop.f32.mrf.mxu1  ;;  %v1682_v38 = vld [vmem:[#allocation4 + $0xe8] sm:$0xff]  ;;  %v1664_v41 = vld [vmem:[#allocation4 + $0x60] sm:$0xff] }
 0x12f   :  { %3723 = vmatprep.subr.mxu0 %v4715_v47  ;;  %3758 = vmatprep.subr.mxu1 %v4715_v47  ;;  %v291_v58 = vadd.f32 %v2774_v54, %v281_v53  ;;  %v1665_v39 = vld [vmem:[#allocation4 + $0x68] sm:$0xff]  ;;  %v1679_v44 = vld [vmem:[#allocation4 + $0xd0] sm:$0xff] }
 0x130   :  { %3724 = vmatpush3.msra.mxu0 %v1239_v42  ;;  %3759 = vmatpush3.msra.mxu1 %v1328_v43  ;;  %v1680_v42 = vld [vmem:[#allocation4 + $0xd8] sm:$0xff]  ;;  %v1662_v45 = vld [vmem:[#allocation4 + $0x50] sm:$0xff]  ;;  %v1674_v54 = vld [vmem:[#allocation4 + $0xa8] sm:$0xff] }
 0x131   :  { %3725 = vmatprep.subr.mxu0 %v4715_v47  ;;  %3760 = vmatprep.subr.mxu1 %v4715_v47  ;;  %v4807_v63 = vmax.f32 %v291_v58, 0.0  ;;  %v1663_v43 = vld [vmem:[#allocation4 + $0x58] sm:$0xff]  ;;  %v1658_v53 = vld [vmem:[#allocation4 + $0x30] sm:$0xff]  ;;  %v1656_v58 = vld [vmem:[#allocation4 + $0x20] sm:$0xff] }
 0x132   :  { %3726 = vmatpush3.msra.mxu0 %v1238_v46  ;;  %3761 = vmatpush3.msra.mxu1 %v1327_v0  ;;  %v1678_v46 = vld [vmem:[#allocation4 + $0xc8] sm:$0xff] }
 0x133   :  { %3727 = vmatprep.subr.mxu0 %v4715_v47  ;;  %3762 = vmatprep.subr.mxu1 %v4715_v47  ;;  %v294_v6 = vrot.slane %v4807_v63, 3  ;;  %v1661_v0 = vld [vmem:[#allocation4 + $0x48] sm:$0xff] }
 0x134   :  { %3728 = vmatpush3.msra.mxu0 %v1237_v48  ;;  %3763 = vmatpush3.msra.mxu1 %v1326_v49  ;;  %v1677_v48 = vld [vmem:[#allocation4 + $0xc0] sm:$0xff] }
 0x135   :  { %3729 = vmatprep.subr.mxu0 %v4715_v47  ;;  %3764 = vmatprep.subr.mxu1 %v4715_v47  ;;  %v1660_v49 = vld [vmem:[#allocation4 + $0x40] sm:$0xff] }
 0x136   :  { %3730 = vmatpush3.msra.mxu0 %v1236_v50  ;;  %3731 = vmatprep.mubr.msk.f32.mxu0 %vm4410_vm0, %v4715_v47  ;;  %v1676_v50 = vld [vmem:[#allocation4 + $0xb8] sm:$0xff] }
 0x137   :  { %3765 = vmatpush3.msra.mxu1 %v1325_v51  ;;  %3732 = vmatmul.mubr.f32.vlgmr.msra.gmra.mxu0 %v1234_v52  ;;  %v1659_v51 = vld [vmem:[#allocation4 + $0x38] sm:$0xff]  ;;  %v1675_v52 = vld [vmem:[#allocation4 + $0xb0] sm:$0xff] }
 0x138   :  { %3766 = vmatprep.mubr.msk.f32.mxu1 %vm4410_vm0, %v4715_v47  ;;  %3769 = vmatprep.subr.mxu0 %v4715_v47 }
 0x139   :  { %3804 = vmatprep.subr.mxu1 %v4715_v47  ;;  %3767 = vmatmul.mubr.f32.vlgmr.msra.gmra.mxu1 %v2781_v55  ;;  %v1657_v55 = vld [vmem:[#allocation4 + $0x28] sm:$0xff] }
 0x13a   :  { %3770 = vmatpush3.msra.mxu0 %v1478_v56  ;;  %3805 = vmatpush3.msra.mxu1 %v1460_v57  ;;  %v1673_v57 = vld [vmem:[#allocation4 + $0xa0] sm:$0xff] }
 0x13b   :  { %3771 = vmatprep.subr.mxu0 %v4715_v47  ;;  %3806 = vmatprep.subr.mxu1 %v4715_v47 }
 0x13c   :  { %3772 = vmatpush3.msra.mxu0 %v1477_v59  ;;  %3807 = vmatpush3.msra.mxu1 %v1459_v60 }
 0x13d   :  { %3773 = vmatprep.subr.mxu0 %v4715_v47  ;;  %3808 = vmatprep.subr.mxu1 %v4715_v47 }
 0x13e   :  { %3774 = vmatpush3.msra.mxu0 %v1476_v61  ;;  %3809 = vmatpush3.msra.mxu1 %v1458_v62  ;;  %v1672_v61 = vld [vmem:[#allocation4 + $0x98] sm:$0xff] }
 0x13f   :  { %3775 = vmatprep.subr.mxu0 %v4715_v47  ;;  %3810 = vmatprep.subr.mxu1 %v4715_v47  ;;  %v1655_v62 = vld [vmem:[#allocation4 + $0x18] sm:$0xff] }
 0x140   :  { %3776 = vmatpush3.msra.mxu0 %v1475_v1  ;;  %3811 = vmatpush3.msra.mxu1 %v1457_v2  ;;  %v1671_v2 = vld [vmem:[#allocation4 + $0x90] sm:$0xff] }
 0x141   :  { %300 = vrot.lane.b32.xlu0 %v4807_v63, %s4411_s19  ;;  %3777 = vmatprep.subr.mxu0 %v4715_v47 }
 0x142   :  { %3812 = vmatprep.subr.mxu1 %v4715_v47  ;;  %3778 = vmatpush3.msra.mxu0 %v1474_v3  ;;  %v1654_v3 = vld [vmem:[#allocation4 + $0x10] sm:$0xff] }
 0x143   :  { %3813 = vmatpush3.msra.mxu1 %v1456_v4  ;;  %3779 = vmatprep.subr.mxu0 %v4715_v47 }
 0x144   :  { %3814 = vmatprep.subr.mxu1 %v4715_v47  ;;  %3780 = vmatpush3.msra.mxu0 %v1473_v5  ;;  %v1670_v5 = vld [vmem:[#allocation4 + $0x88] sm:$0xff] }
 0x145   :  { %3815 = vmatpush3.msra.mxu1 %v1455_v7  ;;  %295 = vrot.lane.b32.xlu0 %v294_v6, %s4412_s4  ;;  %v1653_v6 = vld [vmem:[#allocation4 + $0x8] sm:$0xff]  ;;  %v1669_v7 = vld [vmem:[#allocation4 + $0x80] sm:$0xff] }
 0x146   :  { %3781 = vmatprep.subr.mxu0 %v4715_v47  ;;  %3816 = vmatprep.subr.mxu1 %v4715_v47 }
 0x147   :  { %3782 = vmatpush3.msra.mxu0 %v1472_v8  ;;  %3817 = vmatpush3.msra.mxu1 %v1454_v9  ;;  %v1652_v9 = vld [vmem:[#allocation4] sm:$0xff] }
 0x148   :  { %3783 = vmatprep.subr.mxu0 %v4715_v47  ;;  %3818 = vmatprep.subr.mxu1 %v4715_v47 }
 0x149   :  { %3784 = vmatpush3.msra.mxu0 %v1471_v10  ;;  %3819 = vmatpush3.msra.mxu1 %v1453_v11  ;;  %v2788_v10 = vld [vmem:[%s5206_s0 + $0x19] sm:$0xf]  ;;  %v2787_v11 = vld [vmem:[%s5206_s0 + $0x11] sm:$0xf] }
 0x14a   :  { %3785 = vmatprep.subr.mxu0 %v4715_v47  ;;  %3820 = vmatprep.subr.mxu1 %v4715_v47 }
 0x14b   :  { %3786 = vmatpush3.msra.mxu0 %v1470_v12  ;;  %3821 = vmatpush3.msra.mxu1 %v1452_v13  ;;  %v1841_v13 = vld [vmem:[#allocation4 + $0x178] sm:$0xff] }
 0x14c   :  { %3787 = vmatprep.subr.mxu0 %v4715_v47  ;;  %3822 = vmatprep.subr.mxu1 %v4715_v47 }
 0x14d   :  { %3788 = vmatpush3.msra.mxu0 %v1469_v14  ;;  %3823 = vmatpush3.msra.mxu1 %v1451_v15  ;;  %v4829_v18 = vpop.f32.mrf.mxu0  ;;  %v1929_v14 = vld [vmem:[#allocation4 + $0x1f8] sm:$0xff]  ;;  %v2777_v15 = vld [vmem:[#allocation9] ss:$0 sm:$0xff] }
 0x14e   :  { %3789 = vmatprep.subr.mxu0 %v4715_v47  ;;  %3824 = vmatprep.subr.mxu1 %v4715_v47 }
 0x14f   :  { %3790 = vmatpush3.msra.mxu0 %v1468_v16  ;;  %3825 = vmatpush3.msra.mxu1 %v1450_v17  ;;  %v4833_v21 = vpop.f32.mrf.mxu1  ;;  %v3383_v22 = vpop.f32.mrf.mxu0  ;;  %v1840_v16 = vld [vmem:[#allocation4 + $0x170] sm:$0xff] }
 0x150   :  { %3791 = vmatprep.subr.mxu0 %v4715_v47  ;;  %3826 = vmatprep.subr.mxu1 %v4715_v47  ;;  %v491_v4 = vadd.f32 %v4833_v21, %v4829_v18  ;;  %v1928_v17 = vld [vmem:[#allocation4 + $0x1f0] sm:$0xff]  ;;  %v1838_v21 = vld [vmem:[#allocation4 + $0x160] sm:$0xff] }
 0x151   :  { %3792 = vmatpush3.msra.mxu0 %v1467_v19  ;;  %3827 = vmatpush3.msra.mxu1 %v1449_v20  ;;  %v3418_v25 = vpop.f32.mrf.mxu1  ;;  %v1839_v19 = vld [vmem:[#allocation4 + $0x168] sm:$0xff]  ;;  %v1926_v22 = vld [vmem:[#allocation4 + $0x1e0] sm:$0xff] }
 0x152   :  { %3793 = vmatprep.subr.mxu0 %v4715_v47  ;;  %3828 = vmatprep.subr.mxu1 %v4715_v47  ;;  %v1927_v20 = vld [vmem:[#allocation4 + $0x1e8] sm:$0xff]  ;;  %v1925_v25 = vld [vmem:[#allocation4 + $0x1d8] sm:$0xff] }
 0x153   :  { %3794 = vmatpush3.msra.mxu0 %v1466_v23  ;;  %3829 = vmatpush3.msra.mxu1 %v1448_v24  ;;  %v1837_v24 = vld [vmem:[#allocation4 + $0x158] sm:$0xff] }
 0x154   :  { %3795 = vmatprep.subr.mxu0 %v4715_v47  ;;  %3830 = vmatprep.subr.mxu1 %v4715_v47 }
 0x155   :  { %3796 = vmatpush3.msra.mxu0 %v1465_v26  ;;  %3831 = vmatpush3.msra.mxu1 %v1447_v27  ;;  %v1836_v26 = vld [vmem:[#allocation4 + $0x150] sm:$0xff] }
 0x156   :  { %3797 = vmatprep.subr.mxu0 %v4715_v47  ;;  %3832 = vmatprep.subr.mxu1 %v4715_v47  ;;  %v1924_v27 = vld [vmem:[#allocation4 + $0x1d0] sm:$0xff] }
 0x157   :  { %3798 = vmatpush3.msra.mxu0 %v1464_v28  ;;  %3833 = vmatpush3.msra.mxu1 %v1446_v29  ;;  %v1835_v28 = vld [vmem:[#allocation4 + $0x148] sm:$0xff] }
 0x158   :  { %3799 = vmatprep.subr.mxu0 %v4715_v47  ;;  %3834 = vmatprep.subr.mxu1 %v4715_v47  ;;  %v1923_v29 = vld [vmem:[#allocation4 + $0x1c8] sm:$0xff] }
 0x159   :  { %3800 = vmatpush3.msra.mxu0 %v1463_v30  ;;  %3801 = vmatprep.mubr.msk.f32.mxu0 %vm4410_vm0, %v4715_v47 }
 0x15a   :  { %3835 = vmatpush3.msra.mxu1 %v1445_v31  ;;  %3836 = vmatprep.mubr.msk.f32.mxu1 %vm4410_vm0, %v4715_v47  ;;  %v1834_v31 = vld [vmem:[#allocation4 + $0x140] sm:$0xff] }
 0x15b   :  { %3802 = vmatmul.mubr.f32.vlgmr.msra.gmra.mxu0 %v2784_v32  ;;  %3837 = vmatmul.mubr.f32.vlgmr.msra.gmra.mxu1 %v2783_v33  ;;  %v1922_v32 = vld [vmem:[#allocation4 + $0x1c0] sm:$0xff]  ;;  %v1833_v33 = vld [vmem:[#allocation4 + $0x138] sm:$0xff] }
 0x15c   :  { %3839 = vmatprep.subr.mxu0 %v4715_v47  ;;  %3874 = vmatprep.subr.mxu1 %v4715_v47 }
 0x15d   :  { %3840 = vmatpush3.msra.mxu0 %v1684_v34  ;;  %3875 = vmatpush3.msra.mxu1 %v1667_v35  ;;  %v1921_v34 = vld [vmem:[#allocation4 + $0x1b8] sm:$0xff]  ;;  %v1832_v35 = vld [vmem:[#allocation4 + $0x130] sm:$0xff] }
 0x15e   :  { %3841 = vmatprep.subr.mxu0 %v4715_v47  ;;  %3876 = vmatprep.subr.mxu1 %v4715_v47 }
 0x15f   :  { %3842 = vmatpush3.msra.mxu0 %v1683_v36  ;;  %3877 = vmatpush3.msra.mxu1 %v1666_v37  ;;  %v1920_v36 = vld [vmem:[#allocation4 + $0x1b0] sm:$0xff]  ;;  %v1831_v37 = vld [vmem:[#allocation4 + $0x128] sm:$0xff] }
 0x160   :  { %3843 = vmatprep.subr.mxu0 %v4715_v47  ;;  %3878 = vmatprep.subr.mxu1 %v4715_v47 }
 0x161   :  { %3844 = vmatpush3.msra.mxu0 %v1682_v38  ;;  %3879 = vmatpush3.msra.mxu1 %v1665_v39  ;;  %v1919_v38 = vld [vmem:[#allocation4 + $0x1a8] sm:$0xff] }
 0x162   :  { %3845 = vmatprep.subr.mxu0 %v4715_v47  ;;  %3880 = vmatprep.subr.mxu1 %v4715_v47 }
 0x163   :  { %3846 = vmatpush3.msra.mxu0 %v1681_v40  ;;  %3881 = vmatpush3.msra.mxu1 %v1664_v41  ;;  %v1830_v40 = vld [vmem:[#allocation4 + $0x120] sm:$0xff] }
 0x164   :  { %3847 = vmatprep.subr.mxu0 %v4715_v47  ;;  %3882 = vmatprep.subr.mxu1 %v4715_v47  ;;  %v1918_v41 = vld [vmem:[#allocation4 + $0x1a0] sm:$0xff] }
 0x165   :  { %3848 = vmatpush3.msra.mxu0 %v1680_v42  ;;  %3883 = vmatpush3.msra.mxu1 %v1663_v43 }
 0x166   :  { %3849 = vmatprep.subr.mxu0 %v4715_v47  ;;  %3884 = vmatprep.subr.mxu1 %v4715_v47 }
 0x167   :  { %3850 = vmatpush3.msra.mxu0 %v1679_v44  ;;  %3885 = vmatpush3.msra.mxu1 %v1662_v45  ;;  %v1829_v45 = vld [vmem:[#allocation4 + $0x118] sm:$0xff] }
 0x168   :  { %3851 = vmatprep.subr.mxu0 %v4715_v47  ;;  %3886 = vmatprep.subr.mxu1 %v4715_v47 }
 0x169   :  { %3852 = vmatpush3.msra.mxu0 %v1678_v46  ;;  %3887 = vmatpush3.msra.mxu1 %v1661_v0  ;;  %v1917_v46 = vld [vmem:[#allocation4 + $0x198] sm:$0xff] }
 0x16a   :  { %3853 = vmatprep.subr.mxu0 %v4715_v47  ;;  %3888 = vmatprep.subr.mxu1 %v4715_v47 }
 0x16b   :  { %3854 = vmatpush3.msra.mxu0 %v1677_v48  ;;  %3889 = vmatpush3.msra.mxu1 %v1660_v49  ;;  %v4934_v48 = vld [vmem:[%s5213_s7] sm:$0xff]  ;;  %v1828_v49 = vld [vmem:[#allocation4 + $0x110] sm:$0xff] }
 0x16c   :  { %3855 = vmatprep.subr.mxu0 %v4715_v47  ;;  %3890 = vmatprep.subr.mxu1 %v4715_v47 }
 0x16d   :  { %3856 = vmatpush3.msra.mxu0 %v1676_v50  ;;  %3891 = vmatpush3.msra.mxu1 %v1659_v51  ;;  %v1916_v50 = vld [vmem:[#allocation4 + $0x190] sm:$0xff]  ;;  %v1915_v51 = vld [vmem:[#allocation4 + $0x188] sm:$0xff] }
 0x16e   :  { %3857 = vmatprep.subr.mxu0 %v4715_v47  ;;  %3892 = vmatprep.subr.mxu1 %v4715_v47 }
 0x16f   :  { %3858 = vmatpush3.msra.mxu0 %v1675_v52  ;;  %3893 = vmatpush3.msra.mxu1 %v1658_v53  ;;  %v578_v56 = vpop.f32.mrf.mxu0  ;;  %v1826_v52 = vld [vmem:[#allocation4 + $0x100] sm:$0xff] }
 0x170   :  { %3859 = vmatprep.subr.mxu0 %v4715_v47  ;;  %3894 = vmatprep.subr.mxu1 %v4715_v47  ;;  %v582_v8 = vadd.f32 %v578_v56, %v491_v4  ;;  %v1914_v53 = vld [vmem:[#allocation4 + $0x180] sm:$0xff]  ;;  %v2065_v56 = vld [vmem:[#allocation6 + $0xf8] sm:$0xff]  ;;  %v2060_v4 = vld [vmem:[#allocation6 + $0xd0] sm:$0xff] }
 0x171   :  { %3860 = vmatpush3.msra.mxu0 %v1674_v54  ;;  %3895 = vmatpush3.msra.mxu1 %v1657_v55  ;;  %v667_v59 = vpop.f32.mrf.mxu1  ;;  %v3453_v60 = vpop.f32.mrf.mxu0  ;;  %v2789_v54 = vld [vmem:[%s5206_s0 + $0x12] sm:$0xf]  ;;  %v2790_v55 = vld [vmem:[%s5206_s0 + $0x1a] sm:$0xf] }
 0x172   :  { %3861 = vmatprep.subr.mxu0 %v4715_v47  ;;  %3896 = vmatprep.subr.mxu1 %v4715_v47  ;;  %v671_v12 = vadd.f32 %v667_v59, %v582_v8  ;;  %v2047_v59 = vld [vmem:[#allocation6 + $0x70] sm:$0xff]  ;;  %v2063_v60 = vld [vmem:[#allocation6 + $0xe8] sm:$0xff]  ;;  %v2058_v8 = vld [vmem:[#allocation6 + $0xc0] sm:$0xff] }
 0x173   :  { %3862 = vmatpush3.msra.mxu0 %v1673_v57  ;;  %3897 = vmatpush3.msra.mxu1 %v1656_v58  ;;  %v3488_v1 = vpop.f32.mrf.mxu1  ;;  %v2048_v57 = vld [vmem:[#allocation6 + $0x78] sm:$0xff]  ;;  %v2064_v58 = vld [vmem:[#allocation6 + $0xf0] sm:$0xff] }
 0x174   :  { %3863 = vmatprep.subr.mxu0 %v4715_v47  ;;  %3898 = vmatprep.subr.mxu1 %v4715_v47  ;;  %v679_v18 = vadd.f32 %v2777_v15, %v671_v12  ;;  %v2045_v1 = vld [vmem:[#allocation6 + $0x60] sm:$0xff]  ;;  %v2056_v12 = vld [vmem:[#allocation6 + $0xb0] sm:$0xff]  ;;  %v2038_v15 = vld [vmem:[#allocation6 + $0x28] sm:$0xff] }
 0x175   :  { %3864 = vmatpush3.msra.mxu0 %v1672_v61  ;;  %3899 = vmatpush3.msra.mxu1 %v1655_v62  ;;  %v2046_v61 = vld [vmem:[#allocation6 + $0x68] sm:$0xff]  ;;  %v2062_v62 = vld [vmem:[#allocation6 + $0xe0] sm:$0xff] }
 0x176   :  { %3865 = vmatprep.subr.mxu0 %v4715_v47  ;;  %3900 = vmatprep.subr.mxu1 %v4715_v47  ;;  %v4905_v23 = vmax.f32 %v679_v18, 0.0 }
 0x177   :  { %3866 = vmatpush3.msra.mxu0 %v1671_v2  ;;  %3901 = vmatpush3.msra.mxu1 %v1654_v3  ;;  %v2061_v2 = vld [vmem:[#allocation6 + $0xd8] sm:$0xff] }
 0x178   :  { %3867 = vmatprep.subr.mxu0 %v4715_v47  ;;  %3902 = vmatprep.subr.mxu1 %v4715_v47  ;;  %v682_v30 = vrot.slane %v4905_v23, 3  ;;  %v2044_v3 = vld [vmem:[#allocation6 + $0x58] sm:$0xff] }
 0x179   :  { %3868 = vmatpush3.msra.mxu0 %v1670_v5  ;;  %3903 = vmatpush3.msra.mxu1 %v1653_v6  ;;  %v2043_v5 = vld [vmem:[#allocation6 + $0x50] sm:$0xff]  ;;  %v2059_v6 = vld [vmem:[#allocation6 + $0xc8] sm:$0xff] }
 0x17a   :  { %3869 = vmatprep.subr.mxu0 %v4715_v47  ;;  %3904 = vmatprep.subr.mxu1 %v4715_v47 }
 0x17b   :  { %3870 = vmatpush3.msra.mxu0 %v1669_v7  ;;  %3871 = vmatprep.mubr.msk.f32.mxu0 %vm4410_vm0, %v4715_v47  ;;  %v2042_v7 = vld [vmem:[#allocation6 + $0x48] sm:$0xff] }
 0x17c   :  { %3905 = vmatpush3.msra.mxu1 %v1652_v9  ;;  %3872 = vmatmul.mubr.f32.vlgmr.msra.gmra.mxu0 %v2788_v10  ;;  %v2041_v9 = vld [vmem:[#allocation6 + $0x40] sm:$0xff]  ;;  %v2057_v10 = vld [vmem:[#allocation6 + $0xb8] sm:$0xff] }
 0x17d   :  { %3906 = vmatprep.mubr.msk.f32.mxu1 %vm4410_vm0, %v4715_v47  ;;  %3909 = vmatprep.subr.mxu0 %v4715_v47 }
 0x17e   :  { %3944 = vmatprep.subr.mxu1 %v4715_v47  ;;  %3907 = vmatmul.mubr.f32.vlgmr.msra.gmra.mxu1 %v2787_v11  ;;  %v2040_v11 = vld [vmem:[#allocation6 + $0x38] sm:$0xff] }
 0x17f   :  { %3910 = vmatpush3.msra.mxu0 %v1841_v13  ;;  %3945 = vmatpush3.msra.mxu1 %v1929_v14  ;;  %v2039_v13 = vld [vmem:[#allocation6 + $0x30] sm:$0xff]  ;;  %v2055_v14 = vld [vmem:[#allocation6 + $0xa8] sm:$0xff] }
 0x180   :  { %3911 = vmatprep.subr.mxu0 %v4715_v47  ;;  %3946 = vmatprep.subr.mxu1 %v4715_v47 }
 0x181   :  { %3912 = vmatpush3.msra.mxu0 %v1840_v16  ;;  %3947 = vmatpush3.msra.mxu1 %v1928_v17 }
 0x182   :  { %3913 = vmatprep.subr.mxu0 %v4715_v47  ;;  %3948 = vmatprep.subr.mxu1 %v4715_v47 }
 0x183   :  { %3914 = vmatpush3.msra.mxu0 %v1839_v19  ;;  %3949 = vmatpush3.msra.mxu1 %v1927_v20  ;;  %v2054_v20 = vld [vmem:[#allocation6 + $0xa0] sm:$0xff] }
 0x184   :  { %3915 = vmatprep.subr.mxu0 %v4715_v47  ;;  %3950 = vmatprep.subr.mxu1 %v4715_v47 }
 0x185   :  { %3916 = vmatpush3.msra.mxu0 %v1838_v21  ;;  %3951 = vmatpush3.msra.mxu1 %v1926_v22  ;;  %v2037_v21 = vld [vmem:[#allocation6 + $0x20] sm:$0xff] }
 0x186   :  { %3917 = vmatprep.subr.mxu0 %v4715_v47  ;;  %3952 = vmatprep.subr.mxu1 %v4715_v47 }
 0x187   :  { %3918 = vmatpush3.msra.mxu0 %v1837_v24  ;;  %3953 = vmatpush3.msra.mxu1 %v1925_v25 }
 0x188   :  { %687 = vrot.lane.b32.xlu1 %v4905_v23, %s4411_s19  ;;  %3919 = vmatprep.subr.mxu0 %v4715_v47 }
 0x189   :  { %3954 = vmatprep.subr.mxu1 %v4715_v47  ;;  %3920 = vmatpush3.msra.mxu0 %v1836_v26  ;;  %v2053_v26 = vld [vmem:[#allocation6 + $0x98] sm:$0xff] }
 0x18a   :  { %3955 = vmatpush3.msra.mxu1 %v1924_v27  ;;  %3921 = vmatprep.subr.mxu0 %v4715_v47  ;;  %v2036_v27 = vld [vmem:[#allocation6 + $0x18] sm:$0xff] }
 0x18b   :  { %3956 = vmatprep.subr.mxu1 %v4715_v47  ;;  %3922 = vmatpush3.msra.mxu0 %v1835_v28 }
 0x18c   :  { %3957 = vmatpush3.msra.mxu1 %v1923_v29  ;;  %683 = vrot.lane.b32.xlu1 %v682_v30, %s4412_s4  ;;  %v305_v29 = vrot.slane %v4807_v63, 7 }
 0x18d   :  { %3923 = vmatprep.subr.mxu0 %v4715_v47  ;;  %3958 = vmatprep.subr.mxu1 %v4715_v47 }
 0x18e   :  { %3924 = vmatpush3.msra.mxu0 %v1834_v31  ;;  %3959 = vmatpush3.msra.mxu1 %v1922_v32 }
 0x18f   :  { %3925 = vmatprep.subr.mxu0 %v4715_v47  ;;  %3960 = vmatprep.subr.mxu1 %v4715_v47 }
 0x190   :  { %3926 = vmatpush3.msra.mxu0 %v1833_v33  ;;  %3961 = vmatpush3.msra.mxu1 %v1921_v34  ;;  %v309_v33 = vrot.slane %v4807_v63, 1  ;;  %v2052_v34 = vld [vmem:[#allocation6 + $0x90] sm:$0xff] }
 0x191   :  { %3927 = vmatprep.subr.mxu0 %v4715_v47  ;;  %3962 = vmatprep.subr.mxu1 %v4715_v47  ;;  %v804_v39 = vpop.f32.mrf.mxu0 }
 0x192   :  { %3928 = vmatpush3.msra.mxu0 %v1832_v35  ;;  %3963 = vmatpush3.msra.mxu1 %v1920_v36  ;;  %v2035_v35 = vld [vmem:[#allocation6 + $0x10] sm:$0xff] }
 0x193   :  { %3929 = vmatprep.subr.mxu0 %v4715_v47  ;;  %3964 = vmatprep.subr.mxu1 %v4715_v47  ;;  %v874_v42 = vpop.f32.mrf.mxu1  ;;  %v3523_v43 = vpop.f32.mrf.mxu0 }
 0x194   :  { %3930 = vmatpush3.msra.mxu0 %v1831_v37  ;;  %3965 = vmatpush3.msra.mxu1 %v1919_v38  ;;  %v4927_v44 = vadd.f32 %v874_v42, %v804_v39  ;;  %v2051_v39 = vld [vmem:[#allocation6 + $0x88] sm:$0xff]  ;;  %v2050_v42 = vld [vmem:[#allocation6 + $0x80] sm:$0xff]  ;;  %v2794_v43 = vld [vmem:[%s5206_s0 + $0x18] sm:$0xf] }
 0x195   :  { %3931 = vmatprep.subr.mxu0 %v4715_v47  ;;  %3966 = vmatprep.subr.mxu1 %v4715_v47  ;;  %v3558_v0 = vpop.f32.mrf.mxu1  ;;  %v1827_v47 = vld [vmem:[#allocation4 + $0x108] sm:$0xff] }
 0x196   :  { %3932 = vmatpush3.msra.mxu0 %v1830_v40  ;;  %3967 = vmatpush3.msra.mxu1 %v1918_v41  ;;  %v2034_v40 = vld [vmem:[#allocation6 + $0x8] sm:$0xff]  ;;  %v2221_v0 = vld [vmem:[#allocation6 + $0x170] sm:$0xff] }
 0x197   :  { %3933 = vmatprep.subr.mxu0 %v4934_v48  ;;  %3968 = vmatprep.subr.mxu1 %v4934_v48 }
 0x198   :  { %3934 = vmatpush3.msra.mxu0 %v1829_v45  ;;  %3969 = vmatpush3.msra.mxu1 %v1917_v46  ;;  %v2222_v45 = vld [vmem:[#allocation6 + $0x178] sm:$0xff] }
 0x199   :  { %3935 = vmatprep.subr.mxu0 %v4934_v48  ;;  %3970 = vmatprep.subr.mxu1 %v4934_v48  ;;  %v2310_v46 = vld [vmem:[#allocation6 + $0x1f8] sm:$0xff] }
 0x19a   :  { %3936 = vmatpush3.msra.mxu0 %v1828_v49  ;;  %3971 = vmatpush3.msra.mxu1 %v1916_v50  ;;  %v2309_v49 = vld [vmem:[#allocation6 + $0x1f0] sm:$0xff]  ;;  %v2220_v50 = vld [vmem:[#allocation6 + $0x168] sm:$0xff] }
 0x19b   :  { %3937 = vmatprep.subr.mxu0 %v4934_v48  ;;  %3972 = vmatprep.subr.mxu1 %v4934_v48 }
 0x19c   :  { %3938 = vmatpush3.msra.mxu0 %v1827_v47  ;;  %3973 = vmatpush3.msra.mxu1 %v1915_v51  ;;  %v2308_v47 = vld [vmem:[#allocation6 + $0x1e8] sm:$0xff]  ;;  %v2219_v51 = vld [vmem:[#allocation6 + $0x160] sm:$0xff] }
 0x19d   :  { %3939 = vmatprep.subr.mxu0 %v4934_v48  ;;  %3974 = vmatprep.subr.mxu1 %v4934_v48 }
 0x19e   :  { %3940 = vmatpush3.msra.mxu0 %v1826_v52  ;;  %3941 = vmatprep.mubr.msk.f32.mxu0 %vm4410_vm0, %v4934_v48  ;;  %v2307_v52 = vld [vmem:[#allocation6 + $0x1e0] sm:$0xff] }
 0x19f   :  { %3975 = vmatpush3.msra.mxu1 %v1914_v53  ;;  %3942 = vmatmul.mubr.f32.vlgmr.msra.gmra.mxu0 %v2789_v54  ;;  %v2218_v53 = vld [vmem:[#allocation6 + $0x158] sm:$0xff] }
 0x1a0   :  { %3976 = vmatprep.mubr.msk.f32.mxu1 %vm4410_vm0, %v4934_v48  ;;  %3979 = vmatprep.subr.mxu0 %v4934_v48  ;;  %v2306_v54 = vld [vmem:[#allocation6 + $0x1d8] sm:$0xff] }
 0x1a1   :  { %4014 = vmatprep.subr.mxu1 %v4934_v48  ;;  %3977 = vmatmul.mubr.f32.vlgmr.msra.gmra.mxu1 %v2790_v55  ;;  %v2217_v55 = vld [vmem:[#allocation6 + $0x150] sm:$0xff] }
 0x1a2   :  { %3980 = vmatpush3.msra.mxu0 %v2065_v56  ;;  %4015 = vmatpush3.msra.mxu1 %v2048_v57  ;;  %v2305_v56 = vld [vmem:[#allocation6 + $0x1d0] sm:$0xff]  ;;  %v2216_v57 = vld [vmem:[#allocation6 + $0x148] sm:$0xff] }
 0x1a3   :  { %3981 = vmatprep.subr.mxu0 %v4934_v48  ;;  %4016 = vmatprep.subr.mxu1 %v4934_v48 }
 0x1a4   :  { %3982 = vmatpush3.msra.mxu0 %v2064_v58  ;;  %4017 = vmatpush3.msra.mxu1 %v2047_v59  ;;  %v2304_v58 = vld [vmem:[#allocation6 + $0x1c8] sm:$0xff]  ;;  %v2215_v59 = vld [vmem:[#allocation6 + $0x140] sm:$0xff] }
 0x1a5   :  { %3983 = vmatprep.subr.mxu0 %v4934_v48  ;;  %4018 = vmatprep.subr.mxu1 %v4934_v48 }
 0x1a6   :  { %3984 = vmatpush3.msra.mxu0 %v2063_v60  ;;  %4019 = vmatpush3.msra.mxu1 %v2046_v61  ;;  %v2303_v60 = vld [vmem:[#allocation6 + $0x1c0] sm:$0xff]  ;;  %v2214_v61 = vld [vmem:[#allocation6 + $0x138] sm:$0xff] }
 0x1a7   :  { %3985 = vmatprep.subr.mxu0 %v4934_v48  ;;  %4020 = vmatprep.subr.mxu1 %v4934_v48 }
 0x1a8   :  { %3986 = vmatpush3.msra.mxu0 %v2062_v62  ;;  %4021 = vmatpush3.msra.mxu1 %v2045_v1  ;;  %v2302_v62 = vld [vmem:[#allocation6 + $0x1b8] sm:$0xff]  ;;  %v2213_v1 = vld [vmem:[#allocation6 + $0x130] sm:$0xff] }
 0x1a9   :  { %3987 = vmatprep.subr.mxu0 %v4934_v48  ;;  %4022 = vmatprep.subr.mxu1 %v4934_v48 }
 0x1aa   :  { %3988 = vmatpush3.msra.mxu0 %v2061_v2  ;;  %4023 = vmatpush3.msra.mxu1 %v2044_v3  ;;  %v2301_v2 = vld [vmem:[#allocation6 + $0x1b0] sm:$0xff]  ;;  %v2212_v3 = vld [vmem:[#allocation6 + $0x128] sm:$0xff] }
 0x1ab   :  { %3989 = vmatprep.subr.mxu0 %v4934_v48  ;;  %4024 = vmatprep.subr.mxu1 %v4934_v48 }
 0x1ac   :  { %3990 = vmatpush3.msra.mxu0 %v2060_v4  ;;  %4025 = vmatpush3.msra.mxu1 %v2043_v5  ;;  %v2300_v4 = vld [vmem:[#allocation6 + $0x1a8] sm:$0xff] }
 0x1ad   :  { %3991 = vmatprep.subr.mxu0 %v4934_v48  ;;  %4026 = vmatprep.subr.mxu1 %v4934_v48 }
 0x1ae   :  { %3992 = vmatpush3.msra.mxu0 %v2059_v6  ;;  %4027 = vmatpush3.msra.mxu1 %v2042_v7  ;;  %v2211_v6 = vld [vmem:[#allocation6 + $0x120] sm:$0xff] }
 0x1af   :  { %3993 = vmatprep.subr.mxu0 %v4934_v48  ;;  %4028 = vmatprep.subr.mxu1 %v4934_v48  ;;  %v2299_v7 = vld [vmem:[#allocation6 + $0x1a0] sm:$0xff] }
 0x1b0   :  { %3994 = vmatpush3.msra.mxu0 %v2058_v8  ;;  %4029 = vmatpush3.msra.mxu1 %v2041_v9 }
 0x1b1   :  { %3995 = vmatprep.subr.mxu0 %v4934_v48  ;;  %4030 = vmatprep.subr.mxu1 %v4934_v48 }
 0x1b2   :  { %3996 = vmatpush3.msra.mxu0 %v2057_v10  ;;  %4031 = vmatpush3.msra.mxu1 %v2040_v11  ;;  %v2210_v10 = vld [vmem:[#allocation6 + $0x118] sm:$0xff] }
 0x1b3   :  { %3997 = vmatprep.subr.mxu0 %v4934_v48  ;;  %4032 = vmatprep.subr.mxu1 %v4934_v48  ;;  %v301_v16 = vpop.permute.xlu0 %300  ;;  %v962_v17 = vpop.f32.mrf.mxu0  ;;  %v2298_v11 = vld [vmem:[#allocation6 + $0x198] sm:$0xff] }
 0x1b4   :  { %3998 = vmatpush3.msra.mxu0 %v2056_v12  ;;  %4033 = vmatpush3.msra.mxu1 %v2039_v13  ;;  %v304_v18 = vsel %vm303_vm1, %v301_v16, 0.0  ;;  %v966_v19 = vadd.f32 %v962_v17, %v4927_v44  ;;  %v2793_v44 = vld [vmem:[%s5206_s0 + $0x10] sm:$0xf]  ;;  %v2296_v16 = vld [vmem:[#allocation6 + $0x188] sm:$0xff]  ;;  %v2207_v17 = vld [vmem:[#allocation6 + $0x100] sm:$0xff] }
 0x1b5   :  { %3999 = vmatprep.subr.mxu0 %v4934_v48  ;;  %4034 = vmatprep.subr.mxu1 %v4934_v48  ;;  %v1051_v22 = vpop.f32.mrf.mxu1  ;;  %v3593_v24 = vpop.f32.mrf.mxu0  ;;  %v312_v28 = vrot.slane %v304_v18, 5  ;;  %v2209_v13 = vld [vmem:[#allocation6 + $0x110] sm:$0xff]  ;;  %v2295_v18 = vld [vmem:[#allocation6 + $0x180] sm:$0xff] }
 0x1b6   :  { %4000 = vmatpush3.msra.mxu0 %v2055_v14  ;;  %4035 = vmatpush3.msra.mxu1 %v2038_v15  ;;  %v4978_v25 = vadd.f32 %v1051_v22, %v966_v19  ;;  %v2297_v14 = vld [vmem:[#allocation6 + $0x190] sm:$0xff]  ;;  %v2208_v15 = vld [vmem:[#allocation6 + $0x108] sm:$0xff]  ;;  %v2486_v22 = vld [vmem:[#allocation6 + $0x2f8] sm:$0xff] }
 0x1b7   :  { %4001 = vmatprep.subr.mxu0 %v4934_v48  ;;  %4036 = vmatprep.subr.mxu1 %v4934_v48  ;;  %v296_v30 = vpop.permute.xlu0 %295  ;;  %v3628_v31 = vpop.f32.mrf.mxu1  ;;  %v315_v38 = vsel %vm314_vm4, %v309_v33, %v312_v28  ;;  %v2795_v19 = vld [vmem:[%s5206_s0 + $0x11] sm:$0xf]  ;;  %v2484_v28 = vld [vmem:[#allocation6 + $0x2e8] sm:$0xff] }
 0x1b8   :  { %4002 = vmatpush3.msra.mxu0 %v2054_v20  ;;  %4037 = vmatpush3.msra.mxu1 %v2037_v21  ;;  %v299_v32 = vsel %vm298_vm2, 0.0, %v296_v30  ;;  %v2796_v20 = vld [vmem:[%s5206_s0 + $0x19] sm:$0xf]  ;;  %v2397_v24 = vld [vmem:[#allocation6 + $0x270] sm:$0xff]  ;;  %v2483_v30 = vld [vmem:[#allocation6 + $0x2e0] sm:$0xff] }
 0x1b9   :  { %4003 = vmatprep.subr.mxu0 %v4934_v48  ;;  %4038 = vmatprep.subr.mxu1 %v4934_v48  ;;  %v308_v36 = vsel %vm307_vm3, %v299_v32, %v305_v29  ;;  %v2398_v21 = vld [vmem:[#allocation6 + $0x278] sm:$0xff]  ;;  %v2395_v29 = vld [vmem:[#allocation6 + $0x260] sm:$0xff]  ;;  %v2393_v33 = vld [vmem:[#allocation6 + $0x250] sm:$0xff] }
 0x1ba   :  { %4004 = vmatpush3.msra.mxu0 %v2053_v26  ;;  %4039 = vmatpush3.msra.mxu1 %v2036_v27  ;;  %v316_v37 = vmax.f32 %v4807_v63, %v308_v36  ;;  %v2033_v63 = vld [vmem:[#allocation6] sm:$0xff]  ;;  %v2485_v26 = vld [vmem:[#allocation6 + $0x2f0] sm:$0xff]  ;;  %v2396_v27 = vld [vmem:[#allocation6 + $0x268] sm:$0xff] }
 0x1bb   :  { %4005 = vmatprep.subr.mxu0 %v4934_v48  ;;  %4040 = vmatprep.subr.mxu1 %v4934_v48  ;;  %v2394_v31 = vld [vmem:[#allocation6 + $0x258] sm:$0xff]  ;;  %v2480_v36 = vld [vmem:[#allocation6 + $0x2c8] sm:$0xff] }
 0x1bc   :  { %4006 = vmatpush3.msra.mxu0 %v2052_v34  ;;  %4041 = vmatpush3.msra.mxu1 %v2035_v35  ;;  %v317_v41 = vmax.f32 %v316_v37, %v315_v38  ;;  %v2482_v32 = vld [vmem:[#allocation6 + $0x2d8] sm:$0xff]  ;;  %v2481_v34 = vld [vmem:[#allocation6 + $0x2d0] sm:$0xff]  ;;  %v2392_v35 = vld [vmem:[#allocation6 + $0x248] sm:$0xff] }
 0x1bd   :  { %4007 = vmatprep.subr.mxu0 %v4934_v48  ;;  %4042 = vmatprep.subr.mxu1 %v4934_v48  ;;  %v2391_v37 = vld [vmem:[#allocation6 + $0x240] sm:$0xff] }
 0x1be   :  { %4008 = vmatpush3.msra.mxu0 %v2051_v39  ;;  %4043 = vmatpush3.msra.mxu1 %v2034_v40  ;;  %318 = vst [vmem:[%s5213_s7] sm:$0xf] %v317_v41  ;;  %v2479_v38 = vld [vmem:[#allocation6 + $0x2c0] sm:$0xff]  ;;  %v2390_v39 = vld [vmem:[#allocation6 + $0x238] sm:$0xff]  ;;  %v2389_v41 = vld [vmem:[#allocation6 + $0x230] sm:$0xff] }
 0x1bf   :  { %4009 = vmatprep.subr.mxu0 %v4934_v48  ;;  %4044 = vmatprep.subr.mxu1 %v4934_v48  ;;  %v2478_v40 = vld [vmem:[#allocation6 + $0x2b8] sm:$0xff] }
 0x1c0   :  { %4010 = vmatpush3.msra.mxu0 %v2050_v42  ;;  %4011 = vmatprep.mubr.msk.f32.mxu0 %vm4410_vm0, %v4934_v48  ;;  %v2477_v42 = vld [vmem:[#allocation6 + $0x2b0] sm:$0xff] }
 0x1c1   :  { %4045 = vmatpush3.msra.mxu1 %v2033_v63  ;;  %4012 = vmatmul.mubr.f32.vlgmr.msra.gmra.mxu0 %v2794_v43  ;;  %v2388_v63 = vld [vmem:[#allocation6 + $0x228] sm:$0xff] }
 0x1c2   :  { %4046 = vmatprep.mubr.msk.f32.mxu1 %vm4410_vm0, %v4934_v48  ;;  %4049 = vmatprep.subr.mxu0 %v4934_v48  ;;  %v2476_v43 = vld [vmem:[#allocation6 + $0x2a8] sm:$0xff] }
 0x1c3   :  { %4084 = vmatprep.subr.mxu1 %v4934_v48  ;;  %4047 = vmatmul.mubr.f32.vlgmr.msra.gmra.mxu1 %v2793_v44 }
 0x1c4   :  { %4050 = vmatpush3.msra.mxu0 %v2222_v45  ;;  %4085 = vmatpush3.msra.mxu1 %v2310_v46  ;;  %v2387_v46 = vld [vmem:[#allocation6 + $0x220] sm:$0xff] }
 0x1c5   :  { %4051 = vmatprep.subr.mxu0 %v4934_v48  ;;  %4086 = vmatprep.subr.mxu1 %v4934_v48 }
 0x1c6   :  { %4052 = vmatpush3.msra.mxu0 %v2221_v0  ;;  %4087 = vmatpush3.msra.mxu1 %v2309_v49  ;;  %v2475_v0 = vld [vmem:[#allocation6 + $0x2a0] sm:$0xff] }
 0x1c7   :  { %4053 = vmatprep.subr.mxu0 %v4934_v48  ;;  %4088 = vmatprep.subr.mxu1 %v4934_v48 }
 0x1c8   :  { %4054 = vmatpush3.msra.mxu0 %v2220_v50  ;;  %4089 = vmatpush3.msra.mxu1 %v2308_v47 }
 0x1c9   :  { %4055 = vmatprep.subr.mxu0 %v4934_v48  ;;  %4090 = vmatprep.subr.mxu1 %v4934_v48 }
 0x1ca   :  { %4056 = vmatpush3.msra.mxu0 %v2219_v51  ;;  %4091 = vmatpush3.msra.mxu1 %v2307_v52  ;;  %v2386_v51 = vld [vmem:[#allocation6 + $0x218] sm:$0xff] }
 0x1cb   :  { %4057 = vmatprep.subr.mxu0 %v4934_v48  ;;  %4092 = vmatprep.subr.mxu1 %v4934_v48  ;;  %v2474_v52 = vld [vmem:[#allocation6 + $0x298] sm:$0xff] }
 0x1cc   :  { %4058 = vmatpush3.msra.mxu0 %v2218_v53  ;;  %4093 = vmatpush3.msra.mxu1 %v2306_v54 }
 0x1cd   :  { %4059 = vmatprep.subr.mxu0 %v4934_v48  ;;  %4094 = vmatprep.subr.mxu1 %v4934_v48 }
 0x1ce   :  { %4060 = vmatpush3.msra.mxu0 %v2217_v55  ;;  %4095 = vmatpush3.msra.mxu1 %v2305_v56  ;;  %v2385_v55 = vld [vmem:[#allocation6 + $0x210] sm:$0xff] }
 0x1cf   :  { %4061 = vmatprep.subr.mxu0 %v4934_v48  ;;  %4096 = vmatprep.subr.mxu1 %v4934_v48  ;;  %v2473_v56 = vld [vmem:[#allocation6 + $0x290] sm:$0xff] }
 0x1d0   :  { %4062 = vmatpush3.msra.mxu0 %v2216_v57  ;;  %4097 = vmatpush3.msra.mxu1 %v2304_v58  ;;  %v691_v58 = vrot.slane %v4905_v23, 7 }
 0x1d1   :  { %4063 = vmatprep.subr.mxu0 %v4934_v48  ;;  %4098 = vmatprep.subr.mxu1 %v4934_v48 }
 0x1d2   :  { %4064 = vmatpush3.msra.mxu0 %v2215_v59  ;;  %4099 = vmatpush3.msra.mxu1 %v2303_v60  ;;  %v2384_v60 = vld [vmem:[#allocation6 + $0x208] sm:$0xff] }
 0x1d3   :  { %4065 = vmatprep.subr.mxu0 %v4934_v48  ;;  %4100 = vmatprep.subr.mxu1 %v4934_v48 }
 0x1d4   :  { %4066 = vmatpush3.msra.mxu0 %v2214_v61  ;;  %4101 = vmatpush3.msra.mxu1 %v2302_v62  ;;  %v2472_v61 = vld [vmem:[#allocation6 + $0x288] sm:$0xff] }
 0x1d5   :  { %4067 = vmatprep.subr.mxu0 %v4934_v48  ;;  %4102 = vmatprep.subr.mxu1 %v4934_v48  ;;  %v5029_v5 = vpop.f32.mrf.mxu0 }
 0x1d6   :  { %4068 = vmatpush3.msra.mxu0 %v2213_v1  ;;  %4103 = vmatpush3.msra.mxu1 %v2301_v2  ;;  %v1144_v45 = vadd.f32 %v5029_v5, %v4978_v25  ;;  %v694_v2 = vrot.slane %v4905_v23, 1 }
 0x1d7   :  { %4069 = vmatprep.subr.mxu0 %v4934_v48  ;;  %4104 = vmatprep.subr.mxu1 %v4934_v48  ;;  %v5033_v8 = vpop.f32.mrf.mxu1  ;;  %v3663_v9 = vpop.f32.mrf.mxu0 }
 0x1d8   :  { %4070 = vmatpush3.msra.mxu0 %v2212_v3  ;;  %4105 = vmatpush3.msra.mxu1 %v2300_v4  ;;  %v1233_v54 = vadd.f32 %v5033_v8, %v1144_v45  ;;  %v2383_v4 = vld [vmem:[#allocation6 + $0x200] sm:$0xff]  ;;  %v2797_v8 = vld [vmem:[%s5206_s0 + $0x12] sm:$0xf] }
 0x1d9   :  { %4071 = vmatprep.subr.mxu0 %v4934_v48  ;;  %4106 = vmatprep.subr.mxu1 %v4934_v48  ;;  %v3698_v12 = vpop.f32.mrf.mxu1 }
 0x1da   :  { %4072 = vmatpush3.msra.mxu0 %v2211_v6  ;;  %4107 = vmatpush3.msra.mxu1 %v2299_v7  ;;  %v2471_v7 = vld [vmem:[#allocation6 + $0x280] sm:$0xff]  ;;  %v2574_v12 = vld [vmem:[#allocation6 + $0x378] sm:$0xff] }
 0x1db   :  { %4073 = vmatprep.subr.mxu0 %v4934_v48  ;;  %4108 = vmatprep.subr.mxu1 %v4934_v48 }
 0x1dc   :  { %4074 = vmatpush3.msra.mxu0 %v2210_v10  ;;  %4109 = vmatpush3.msra.mxu1 %v2298_v11  ;;  %v2798_v11 = vld [vmem:[%s5206_s0 + $0x1a] sm:$0xf] }
 0x1dd   :  { %4075 = vmatprep.subr.mxu0 %v4934_v48  ;;  %4110 = vmatprep.subr.mxu1 %v4934_v48 }
 0x1de   :  { %4076 = vmatpush3.msra.mxu0 %v2209_v13  ;;  %4111 = vmatpush3.msra.mxu1 %v2297_v14  ;;  %v2662_v13 = vld [vmem:[#allocation6 + $0x3f8] sm:$0xff] }
 0x1df   :  { %4077 = vmatprep.subr.mxu0 %v4934_v48  ;;  %4112 = vmatprep.subr.mxu1 %v4934_v48 }
 0x1e0   :  { %4078 = vmatpush3.msra.mxu0 %v2208_v15  ;;  %4113 = vmatpush3.msra.mxu1 %v2296_v16  ;;  %v2573_v15 = vld [vmem:[#allocation6 + $0x370] sm:$0xff] }
 0x1e1   :  { %4079 = vmatprep.subr.mxu0 %v4934_v48  ;;  %4114 = vmatprep.subr.mxu1 %v4934_v48  ;;  %v2661_v16 = vld [vmem:[#allocation6 + $0x3f0] sm:$0xff] }
 0x1e2   :  { %4080 = vmatpush3.msra.mxu0 %v2207_v17  ;;  %4081 = vmatprep.mubr.msk.f32.mxu0 %vm4410_vm0, %v4934_v48  ;;  %v2572_v17 = vld [vmem:[#allocation6 + $0x368] sm:$0xff] }
 0x1e3   :  { %4115 = vmatpush3.msra.mxu1 %v2295_v18  ;;  %4082 = vmatmul.mubr.f32.vlgmr.msra.gmra.mxu0 %v2795_v19  ;;  %v2660_v18 = vld [vmem:[#allocation6 + $0x3e8] sm:$0xff] }
 0x1e4   :  { %4116 = vmatprep.mubr.msk.f32.mxu1 %vm4410_vm0, %v4934_v48  ;;  %4119 = vmatprep.subr.mxu0 %v4934_v48 }
 0x1e5   :  { %4154 = vmatprep.subr.mxu1 %v4934_v48  ;;  %4117 = vmatmul.mubr.f32.vlgmr.msra.gmra.mxu1 %v2796_v20  ;;  %v2571_v20 = vld [vmem:[#allocation6 + $0x360] sm:$0xff] }
 0x1e6   :  { %4120 = vmatpush3.msra.mxu0 %v2398_v21  ;;  %4155 = vmatpush3.msra.mxu1 %v2486_v22  ;;  %v2659_v21 = vld [vmem:[#allocation6 + $0x3e0] sm:$0xff]  ;;  %v2570_v22 = vld [vmem:[#allocation6 + $0x358] sm:$0xff] }
 0x1e7   :  { %4121 = vmatprep.subr.mxu0 %v4934_v48  ;;  %4156 = vmatprep.subr.mxu1 %v4934_v48 }
 0x1e8   :  { %4122 = vmatpush3.msra.mxu0 %v2397_v24  ;;  %4157 = vmatpush3.msra.mxu1 %v2485_v26  ;;  %v2658_v24 = vld [vmem:[#allocation6 + $0x3d8] sm:$0xff]  ;;  %v2569_v26 = vld [vmem:[#allocation6 + $0x350] sm:$0xff] }
 0x1e9   :  { %4123 = vmatprep.subr.mxu0 %v4934_v48  ;;  %4158 = vmatprep.subr.mxu1 %v4934_v48 }
 0x1ea   :  { %4124 = vmatpush3.msra.mxu0 %v2396_v27  ;;  %4159 = vmatpush3.msra.mxu1 %v2484_v28  ;;  %v2657_v28 = vld [vmem:[#allocation6 + $0x3d0] sm:$0xff] }
 0x1eb   :  { %4125 = vmatprep.subr.mxu0 %v4934_v48  ;;  %4160 = vmatprep.subr.mxu1 %v4934_v48 }
 0x1ec   :  { %4126 = vmatpush3.msra.mxu0 %v2395_v29  ;;  %4161 = vmatpush3.msra.mxu1 %v2483_v30  ;;  %v2568_v29 = vld [vmem:[#allocation6 + $0x348] sm:$0xff] }
 0x1ed   :  { %4127 = vmatprep.subr.mxu0 %v4934_v48  ;;  %4162 = vmatprep.subr.mxu1 %v4934_v48  ;;  %v2656_v30 = vld [vmem:[#allocation6 + $0x3c8] sm:$0xff] }
 0x1ee   :  { %4128 = vmatpush3.msra.mxu0 %v2394_v31  ;;  %4163 = vmatpush3.msra.mxu1 %v2482_v32  ;;  %v2567_v31 = vld [vmem:[#allocation6 + $0x340] sm:$0xff] }
 0x1ef   :  { %4129 = vmatprep.subr.mxu0 %v4934_v48  ;;  %4164 = vmatprep.subr.mxu1 %v4934_v48  ;;  %v2655_v32 = vld [vmem:[#allocation6 + $0x3c0] sm:$0xff] }
 0x1f0   :  { %4130 = vmatpush3.msra.mxu0 %v2393_v33  ;;  %4165 = vmatpush3.msra.mxu1 %v2481_v34  ;;  %v2566_v33 = vld [vmem:[#allocation6 + $0x338] sm:$0xff] }
 0x1f1   :  { %4131 = vmatprep.subr.mxu0 %v4934_v48  ;;  %4166 = vmatprep.subr.mxu1 %v4934_v48  ;;  %v2654_v34 = vld [vmem:[#allocation6 + $0x3b8] sm:$0xff] }
 0x1f2   :  { %4132 = vmatpush3.msra.mxu0 %v2392_v35  ;;  %4167 = vmatpush3.msra.mxu1 %v2480_v36  ;;  %v2565_v35 = vld [vmem:[#allocation6 + $0x330] sm:$0xff] }
 0x1f3   :  { %4133 = vmatprep.subr.mxu0 %v4934_v48  ;;  %4168 = vmatprep.subr.mxu1 %v4934_v48  ;;  %v2653_v36 = vld [vmem:[#allocation6 + $0x3b0] sm:$0xff] }
 0x1f4   :  { %4134 = vmatpush3.msra.mxu0 %v2391_v37  ;;  %4169 = vmatpush3.msra.mxu1 %v2479_v38  ;;  %v2564_v37 = vld [vmem:[#allocation6 + $0x328] sm:$0xff] }
 0x1f5   :  { %4135 = vmatprep.subr.mxu0 %v4934_v48  ;;  %4170 = vmatprep.subr.mxu1 %v4934_v48  ;;  %v2652_v38 = vld [vmem:[#allocation6 + $0x3a8] sm:$0xff] }
 0x1f6   :  { %4136 = vmatpush3.msra.mxu0 %v2390_v39  ;;  %4171 = vmatpush3.msra.mxu1 %v2478_v40 }
 0x1f7   :  { %4137 = vmatprep.subr.mxu0 %v4934_v48  ;;  %4172 = vmatprep.subr.mxu1 %v4934_v48  ;;  %v1318_v44 = vpop.f32.mrf.mxu0 }
 0x1f8   :  { %4138 = vmatpush3.msra.mxu0 %v2389_v41  ;;  %4173 = vmatpush3.msra.mxu1 %v2477_v42  ;;  %v1322_v1 = vadd.f32 %v1318_v44, %v1233_v54  ;;  %v2785_v41 = vld [vmem:[#allocation7] ss:$0 sm:$0xff] }
 0x1f9   :  { %4139 = vmatprep.subr.mxu0 %v4934_v48  ;;  %4174 = vmatprep.subr.mxu1 %v4934_v48  ;;  %v1407_v49 = vpop.f32.mrf.mxu1  ;;  %v3733_v50 = vpop.f32.mrf.mxu0  ;;  %v2563_v42 = vld [vmem:[#allocation6 + $0x320] sm:$0xff] }
 0x1fa   :  { %4140 = vmatpush3.msra.mxu0 %v2388_v63  ;;  %4175 = vmatpush3.msra.mxu1 %v2476_v43  ;;  %v688_v47 = vpop.permute.xlu1 %687  ;;  %v1411_v10 = vadd.f32 %v1407_v49, %v1322_v1  ;;  %v2651_v63 = vld [vmem:[#allocation6 + $0x3a0] sm:$0xff]  ;;  %v2561_v50 = vld [vmem:[#allocation6 + $0x310] sm:$0xff] }
 0x1fb   :  { %4141 = vmatprep.subr.mxu0 %v4934_v48  ;;  %4176 = vmatprep.subr.mxu1 %v4934_v48  ;;  %v690_v53 = vsel %vm303_vm1, %v688_v47, 0.0  ;;  %v3768_v25 = vpop.f32.mrf.mxu1  ;;  %v2649_v47 = vld [vmem:[#allocation6 + $0x390] sm:$0xff]  ;;  %v2647_v54 = vld [vmem:[#allocation6 + $0x380] sm:$0xff] }
 0x1fc   :  { %4142 = vmatpush3.msra.mxu0 %v2387_v46  ;;  %4177 = vmatpush3.msra.mxu1 %v2475_v0  ;;  %v697_v57 = vrot.slane %v690_v53, 5  ;;  %v2562_v46 = vld [vmem:[#allocation6 + $0x318] sm:$0xff]  ;;  %v2559_v25 = vld [vmem:[#allocation6 + $0x300] sm:$0xff] }
 0x1fd   :  { %4143 = vmatprep.subr.mxu0 %v4934_v48  ;;  %4178 = vmatprep.subr.mxu1 %v4934_v48  ;;  %v2650_v0 = vld [vmem:[#allocation6 + $0x398] sm:$0xff] }
 0x1fe   :  { %4144 = vmatpush3.msra.mxu0 %v2386_v51  ;;  %4179 = vmatpush3.msra.mxu1 %v2474_v52  ;;  %v684_v59 = vpop.permute.xlu1 %683  ;;  %v699_v6 = vsel %vm314_vm4, %v694_v2, %v697_v57  ;;  %v2560_v51 = vld [vmem:[#allocation6 + $0x308] sm:$0xff] }
 0x1ff   :  { %4145 = vmatprep.subr.mxu0 %v4934_v48  ;;  %4180 = vmatprep.subr.mxu1 %v4934_v48  ;;  %v686_v62 = vsel %vm298_vm2, 0.0, %v684_v59  ;;  %v2648_v52 = vld [vmem:[#allocation6 + $0x388] sm:$0xff] }
 0x200   :  { %4146 = vmatpush3.msra.mxu0 %v2385_v55  ;;  %4181 = vmatpush3.msra.mxu1 %v2473_v56  ;;  %v693_v3 = vsel %vm307_vm3, %v686_v62, %v691_v58  ;;  %v2799_v55 = vld [vmem:[%s5206_s0 + $0x13] sm:$0xf]  ;;  %v2800_v56 = vld [vmem:[%s5206_s0 + $0x1b] sm:$0xf] }
 0x201   :  { %4147 = vmatprep.subr.mxu0 %v4934_v48  ;;  %4182 = vmatprep.subr.mxu1 %v4934_v48  ;;  %v700_v5 = vmax.f32 %v4905_v23, %v693_v3  ;;  %v5102_v23 = vld [vmem:[#allocation10] ss:$0 sm:$0xff] }
 0x202   :  { %4148 = vmatpush3.msra.mxu0 %v2384_v60  ;;  %4183 = vmatpush3.msra.mxu1 %v2472_v61  ;;  %v1419_v14 = vadd.f32 %v5102_v23, %v1411_v10 }
 0x203   :  { %4149 = vmatprep.subr.mxu0 %v4934_v48  ;;  %4184 = vmatprep.subr.mxu1 %v4934_v48  ;;  %v701_v9 = vmax.f32 %v700_v5, %v699_v6 }
 0x204   :  { %4150 = vmatpush3.msra.mxu0 %v2383_v4  ;;  %4151 = vmatprep.mubr.msk.f32.mxu0 %vm4410_vm0, %v4934_v48  ;;  %v5117_v19 = vmax.f32 %v1419_v14, 0.0  ;;  %v2791_v4 = vld [vmem:[#allocation9] ss:$0 sm:$0xff] }
 0x205   :  { %4185 = vmatpush3.msra.mxu1 %v2471_v7  ;;  %702 = vst [vmem:[%s5213_s7 + $0x8] sm:$0xf] %v701_v9  ;;  %4152 = vmatmul.mubr.f32.vlgmr.msra.gmra.mxu0 %v2797_v8 }
 0x206   :  { %4186 = vmatprep.mubr.msk.f32.mxu1 %vm4410_vm0, %v4934_v48  ;;  %4189 = vmatprep.subr.mxu0 %v4934_v48  ;;  %v1422_v27 = vrot.slane %v5117_v19, 3 }
 0x207   :  { %4224 = vmatprep.subr.mxu1 %v4934_v48  ;;  %4187 = vmatmul.mubr.f32.vlgmr.msra.gmra.mxu1 %v2798_v11 }
 0x208   :  { %4190 = vmatpush3.msra.mxu0 %v2574_v12  ;;  %4225 = vmatpush3.msra.mxu1 %v2662_v13 }
 0x209   :  { %4191 = vmatprep.subr.mxu0 %v4934_v48  ;;  %4226 = vmatprep.subr.mxu1 %v4934_v48 }
 0x20a   :  { %4192 = vmatpush3.msra.mxu0 %v2573_v15  ;;  %4227 = vmatpush3.msra.mxu1 %v2661_v16 }
 0x20b   :  { %4193 = vmatprep.subr.mxu0 %v4934_v48  ;;  %4228 = vmatprep.subr.mxu1 %v4934_v48 }
 0x20c   :  { %4194 = vmatpush3.msra.mxu0 %v2572_v17  ;;  %4229 = vmatpush3.msra.mxu1 %v2660_v18  ;;  %v1431_v17 = vrot.slane %v5117_v19, 7 }
 0x20d   :  { %4195 = vmatprep.subr.mxu0 %v4934_v48  ;;  %4230 = vmatprep.subr.mxu1 %v4934_v48 }
 0x20e   :  { %4196 = vmatpush3.msra.mxu0 %v2571_v20  ;;  %4231 = vmatpush3.msra.mxu1 %v2659_v21 }
 0x20f   :  { %4197 = vmatprep.subr.mxu0 %v4934_v48  ;;  %4232 = vmatprep.subr.mxu1 %v4934_v48 }
 0x210   :  { %4198 = vmatpush3.msra.mxu0 %v2570_v22  ;;  %4233 = vmatpush3.msra.mxu1 %v2658_v24  ;;  %v1434_v22 = vrot.slane %v5117_v19, 1 }
 0x211   :  { %1427 = vrot.lane.b32.xlu1 %v5117_v19, %s4411_s19  ;;  %4199 = vmatprep.subr.mxu0 %v4934_v48 }
 0x212   :  { %4234 = vmatprep.subr.mxu1 %v4934_v48  ;;  %4200 = vmatpush3.msra.mxu0 %v2569_v26 }
 0x213   :  { %4235 = vmatpush3.msra.mxu1 %v2657_v28  ;;  %1423 = vrot.lane.b32.xlu0 %v1422_v27, %s4412_s4 }
 0x214   :  { %4201 = vmatprep.subr.mxu0 %v4934_v48  ;;  %4236 = vmatprep.subr.mxu1 %v4934_v48 }
 0x215   :  { %4202 = vmatpush3.msra.mxu0 %v2568_v29  ;;  %4237 = vmatpush3.msra.mxu1 %v2656_v30 }
 0x216   :  { %4203 = vmatprep.subr.mxu0 %v4934_v48  ;;  %4238 = vmatprep.subr.mxu1 %v4934_v48 }
 0x217   :  { %4204 = vmatpush3.msra.mxu0 %v2567_v31  ;;  %4239 = vmatpush3.msra.mxu1 %v2655_v32 }
 0x218   :  { %4205 = vmatprep.subr.mxu0 %v4934_v48  ;;  %4240 = vmatprep.subr.mxu1 %v4934_v48 }
 0x219   :  { %4206 = vmatpush3.msra.mxu0 %v2566_v33  ;;  %4241 = vmatpush3.msra.mxu1 %v2654_v34 }
 0x21a   :  { %4207 = vmatprep.subr.mxu0 %v4934_v48  ;;  %4242 = vmatprep.subr.mxu1 %v4934_v48 }
 0x21b   :  { %4208 = vmatpush3.msra.mxu0 %v2565_v35  ;;  %4243 = vmatpush3.msra.mxu1 %v2653_v36  ;;  %v1545_v39 = vpop.f32.mrf.mxu0  ;;  %v1615_v40 = vpop.f32.mrf.mxu1 }
 0x21c   :  { %4209 = vmatprep.subr.mxu0 %v4934_v48  ;;  %4244 = vmatprep.subr.mxu1 %v4934_v48  ;;  %v1616_v43 = vadd.f32 %v1615_v40, %v1545_v39 }
 0x21d   :  { %4210 = vmatpush3.msra.mxu0 %v2564_v37  ;;  %4245 = vmatpush3.msra.mxu1 %v2652_v38  ;;  %v3803_v44 = vpop.f32.mrf.mxu0  ;;  %v3838_v45 = vpop.f32.mrf.mxu1 }
 0x21e   :  { %4211 = vmatprep.subr.mxu0 %v4934_v48  ;;  %4246 = vmatprep.subr.mxu1 %v4934_v48  ;;  %v1626_v49 = vadd.f32 %v2785_v41, %v1616_v43 }
 0x21f   :  { %4212 = vmatpush3.msra.mxu0 %v2563_v42  ;;  %4247 = vmatpush3.msra.mxu1 %v2651_v63 }
 0x220   :  { %4213 = vmatprep.subr.mxu0 %v4934_v48  ;;  %4248 = vmatprep.subr.mxu1 %v4934_v48  ;;  %v5147_v53 = vmax.f32 %v1626_v49, 0.0 }
 0x221   :  { %4214 = vmatpush3.msra.mxu0 %v2562_v46  ;;  %4249 = vmatpush3.msra.mxu1 %v2650_v0 }
 0x222   :  { %4215 = vmatprep.subr.mxu0 %v4934_v48  ;;  %4250 = vmatprep.subr.mxu1 %v4934_v48  ;;  %v1629_v57 = vrot.slane %v5147_v53, 3  ;;  %v1638_v30 = vrot.slane %v5147_v53, 7  ;;  %v1641_v34 = vrot.slane %v5147_v53, 1 }
 0x223   :  { %4216 = vmatpush3.msra.mxu0 %v2561_v50  ;;  %4251 = vmatpush3.msra.mxu1 %v2649_v47 }
 0x224   :  { %4217 = vmatprep.subr.mxu0 %v4934_v48  ;;  %4252 = vmatprep.subr.mxu1 %v4934_v48 }
 0x225   :  { %4218 = vmatpush3.msra.mxu0 %v2560_v51  ;;  %4253 = vmatpush3.msra.mxu1 %v2648_v52 }
 0x226   :  { %4219 = vmatprep.subr.mxu0 %v4934_v48  ;;  %4254 = vmatprep.subr.mxu1 %v4934_v48 }
 0x227   :  { %4220 = vmatpush3.msra.mxu0 %v2559_v25  ;;  %4221 = vmatprep.mubr.msk.f32.mxu0 %vm4410_vm0, %v4934_v48 }
 0x228   :  { %4255 = vmatpush3.msra.mxu1 %v2647_v54  ;;  %4256 = vmatprep.mubr.msk.f32.mxu1 %vm4410_vm0, %v4934_v48 }
 0x229   :  { %4222 = vmatmul.mubr.f32.vlgmr.msra.gmra.mxu0 %v2799_v55  ;;  %4257 = vmatmul.mubr.f32.vlgmr.msra.gmra.mxu1 %v2800_v56 }
 0x22a   :  { %1634 = vrot.lane.b32.xlu1 %v5147_v53, %s4411_s19  ;;  %1630 = vrot.lane.b32.xlu0 %v1629_v57, %s4412_s4 }
 0x23c   :  { %v1751_v58 = vpop.f32.mrf.mxu0 }
 0x23e   :  { %v1821_v59 = vpop.f32.mrf.mxu1  ;;  %v3873_v60 = vpop.f32.mrf.mxu0 }
 0x23f   :  { %v1822_v62 = vadd.f32 %v1821_v59, %v1751_v58 }
 0x240   :  { %v3908_v61 = vpop.f32.mrf.mxu1 }
 0x25f   :  { %v1908_v1 = vpop.f32.mrf.mxu0 }
 0x260   :  { %v1912_v2 = vadd.f32 %v1908_v1, %v1822_v62 }
 0x261   :  { %v1996_v3 = vpop.f32.mrf.mxu1  ;;  %v3943_v5 = vpop.f32.mrf.mxu0 }
 0x262   :  { %v2000_v6 = vadd.f32 %v1996_v3, %v1912_v2 }
 0x263   :  { %v3978_v7 = vpop.f32.mrf.mxu1 }
 0x264   :  { %v2008_v48 = vadd.f32 %v2791_v4, %v2000_v6 }
 0x266   :  { %v2009_v8 = vmax.f32 %v2008_v48, 0.0 }
 0x268   :  { %2016 = vrot.lane.b32.xlu1 %v2009_v8, %s4411_s19  ;;  %v2011_v9 = vrot.slane %v2009_v8, 3  ;;  %v2020_v50 = vrot.slane %v2009_v8, 7 }
 0x26a   :  { %2012 = vrot.lane.b32.xlu0 %v2011_v9, %s4412_s4 }
 0x281   :  { %v2132_v10 = vpop.f32.mrf.mxu0 }
 0x283   :  { %v1428_v11 = vpop.permute.xlu1 %1427  ;;  %v2202_v12 = vpop.f32.mrf.mxu1 }
 0x284   :  { %v1430_v13 = vsel %vm303_vm1, %v1428_v11, 0.0  ;;  %v2203_v14 = vadd.f32 %v2202_v12, %v2132_v10  ;;  %v4013_v15 = vpop.f32.mrf.mxu0 }
 0x285   :  { %v1437_v16 = vrot.slane %v1430_v13, 5  ;;  %v1424_v18 = vpop.permute.xlu0 %1423  ;;  %v4048_v20 = vpop.f32.mrf.mxu1 }
 0x286   :  { %v1426_v21 = vsel %vm298_vm2, 0.0, %v1424_v18 }
 0x287   :  { %v1433_v24 = vsel %vm307_vm3, %v1426_v21, %v1431_v17  ;;  %v1439_v27 = vsel %vm314_vm4, %v1434_v22, %v1437_v16 }
 0x288   :  { %v1440_v26 = vmax.f32 %v5117_v19, %v1433_v24 }
 0x28a   :  { %v1441_v28 = vmax.f32 %v1440_v26, %v1439_v27 }
 0x28c   :  { %1442 = vst [vmem:[%s5213_s7 + $0x10] sm:$0xf] %v1441_v28 }
 0x29c   :  { %v1635_v29 = vpop.permute.xlu1 %1634  ;;  %v1631_v31 = vpop.permute.xlu0 %1630 }
 0x29d   :  { %v1637_v32 = vsel %vm303_vm1, %v1635_v29, 0.0  ;;  %v1633_v33 = vsel %vm298_vm2, 0.0, %v1631_v31 }
 0x29e   :  { %v1644_v35 = vrot.slane %v1637_v32, 5  ;;  %v1640_v19 = vsel %vm307_vm3, %v1633_v33, %v1638_v30 }
 0x29f   :  { %v1647_v36 = vmax.f32 %v5147_v53, %v1640_v19  ;;  %v2023_v53 = vrot.slane %v2009_v8, 1 }
 0x2a0   :  { %v1646_v37 = vsel %vm314_vm4, %v1641_v34, %v1644_v35 }
 0x2a1   :  { %v1648_v38 = vmax.f32 %v1647_v36, %v1646_v37 }
 0x2a3   :  { %2786 = vst [vmem:[%s5213_s7 + $0x18] sm:$0xf] %v1648_v38  ;;  %v2289_v39 = vpop.f32.mrf.mxu0 }
 0x2a4   :  { %v2293_v52 = vadd.f32 %v2289_v39, %v2203_v14 }
 0x2a5   :  { %v2377_v40 = vpop.f32.mrf.mxu1  ;;  %v4083_v41 = vpop.f32.mrf.mxu0 }
 0x2a6   :  { %v2381_v57 = vadd.f32 %v2377_v40, %v2293_v52 }
 0x2a7   :  { %v4118_v42 = vpop.f32.mrf.mxu1 }
 0x2c5   :  { %v2465_v63 = vpop.f32.mrf.mxu0 }
 0x2c6   :  { %v2469_v58 = vadd.f32 %v2465_v63, %v2381_v57 }
 0x2c7   :  { %v2553_v43 = vpop.f32.mrf.mxu1  ;;  %v4153_v44 = vpop.f32.mrf.mxu0 }
 0x2c8   :  { %v2557_v59 = vadd.f32 %v2553_v43, %v2469_v58 }
 0x2c9   :  { %v4188_v45 = vpop.f32.mrf.mxu1 }
 0x2da   :  { %v2017_v46 = vpop.permute.xlu1 %2016 }
 0x2db   :  { %v2019_v0 = vsel %vm303_vm1, %v2017_v46, 0.0 }
 0x2dc   :  { %v2026_v49 = vrot.slane %v2019_v0, 5  ;;  %v2013_v47 = vpop.permute.xlu0 %2012 }
 0x2dd   :  { %v2015_v51 = vsel %vm298_vm2, 0.0, %v2013_v47 }
 0x2de   :  { %v2022_v25 = vsel %vm307_vm3, %v2015_v51, %v2020_v50  ;;  %v2028_v55 = vsel %vm314_vm4, %v2023_v53, %v2026_v49 }
 0x2df   :  { %v2029_v54 = vmax.f32 %v2009_v8, %v2022_v25 }
 0x2e1   :  { %v2030_v56 = vmax.f32 %v2029_v54, %v2028_v55 }
 0x2e3   :  { %2792 = vst [vmem:[%s5213_s7 + $0x20] sm:$0xf] %v2030_v56 }
 0x2e9   :  { %v2641_v60 = vpop.f32.mrf.mxu0  ;;  %v2729_v61 = vpop.f32.mrf.mxu1 }
 0x2ea   :  { %v2645_v62 = vadd.f32 %v2641_v60, %v2557_v59 }
 0x2eb   :  { %v4223_v1 = vpop.f32.mrf.mxu0  ;;  %v4258_v2 = vpop.f32.mrf.mxu1 }
 0x2ec   :  { %v2733_v3 = vadd.f32 %v2729_v61, %v2645_v62 }
 0x2ee   :  { %v2741_v4 = vadd.f32 %v5102_v23, %v2733_v3 }
 0x2f0   :  { %v2742_v5 = vmax.f32 %v2741_v4, 0.0 }
 0x2f2   :  { %2749 = vrot.lane.b32.xlu1 %v2742_v5, %s4411_s19  ;;  %v2744_v6 = vrot.slane %v2742_v5, 3  ;;  %v2753_v9 = vrot.slane %v2742_v5, 7  ;;  %v2756_v12 = vrot.slane %v2742_v5, 1 }
 0x2f4   :  { %2745 = vrot.lane.b32.xlu0 %v2744_v6, %s4412_s4 }
 0x364   :  { %v2750_v7 = vpop.permute.xlu1 %2749 }
 0x365   :  { %v2752_v48 = vsel %vm303_vm1, %v2750_v7, 0.0 }
 0x366   :  { %v2759_v8 = vrot.slane %v2752_v48, 5  ;;  %v2746_v10 = vpop.permute.xlu0 %2745 }
 0x367   :  { %v2748_v11 = vsel %vm298_vm2, 0.0, %v2746_v10 }
 0x368   :  { %v2755_v13 = vsel %vm307_vm3, %v2748_v11, %v2753_v9  ;;  %v2761_v23 = vsel %vm314_vm4, %v2756_v12, %v2759_v8 }
 0x369   :  { %v2762_v14 = vmax.f32 %v2742_v5, %v2755_v13 }
 0x36b   :  { %v2763_v15 = vmax.f32 %v2762_v14, %v2761_v23 }
 0x36d   :  { %2802 = vst [vmem:[%s5213_s7 + $0x28] sm:$0xf] %v2763_v15 }
 0x36e   :  { %2769 = vsyncpa [#allocation3], 1 }
 0x36f   :  { %2770 = vsyncpa [#allocation5], 1 }
 0x370   :  { %2771 = vsyncpa [#allocation8], 1 }
 0x371   :  { %2772 = vsyncpa [#allocation11], 1 }

// kernel: _lambda_.4
= control target key start
LH: loop header
LB: loop body
LE: loop exit
PB: predicated region body
PF: predicated region fallthrough
CT: control target
= control target key end

     0   :  { %v2888_v22 = vmov 1966171168   ;;  %v415_v24 = vlaneseq  ;;  %s3536_s1 = inlined_call_operand.vmem [shape: bf16[3072,128], index: 1, kind: input, shape index: {}]   ;;  %s3537_s0 = inlined_call_operand.vmem [shape: bf16[2,3072], index: 0, kind: input, shape index: {}]   ;;  %s3538_s2 = inlined_call_operand.vmem [shape: f32[1,128], index: 2, kind: input, shape index: {}]   ;;  %s3539_s3 = inlined_call_operand.vmem [shape: f32[2,128], index: 3, kind: output, shape index: {}]  }
   0x1   :  { %v2693_v0 = vld [vmem:[%s3536_s1 + $0x78] sm:$0xff]   ;;  %v2697_v4 = vld [vmem:[%s3536_s1 + $0x70] sm:$0xff]   ;;  %v2701_v8 = vld [vmem:[%s3536_s1 + $0x68] sm:$0xff]   ;;  %v413_v23 = vunpack.c.l.s4 %v2888_v22 }
   0x2   :  { %v2694_v1 = vld [vmem:[%s3536_s1 + $0xf8] sm:$0xff]   ;;  %2427 = vmatprep.subr.bf16.mxu0 %v2693_v0  ;;  %v2698_v5 = vld [vmem:[%s3536_s1 + $0xf0] sm:$0xff]   ;;  %v2702_v9 = vld [vmem:[%s3536_s1 + $0xe8] sm:$0xff]   ;;  %v416_v30 = vshrl.u32 %v415_v24, 7 }
   0x3   :  { %v2695_v2 = vld [vmem:[%s3536_s1 + $0x38] sm:$0xff]   ;;  %2449 = vmatprep.subr.bf16.mxu1 %v2694_v1  ;;  %v2699_v6 = vld [vmem:[%s3536_s1 + $0x30] sm:$0xff]   ;;  %v2703_v10 = vld [vmem:[%s3536_s1 + $0x28] sm:$0xff]   ;;  %v414_v29 = vunpack.c.0.s8 %v413_v23 }
   0x4   :  { %v2696_v3 = vld [vmem:[%s3536_s1 + $0xb8] sm:$0xff]   ;;  %2428 = vmatpush3.bf16.msra.mxu0 %v2695_v2  ;;  %v2700_v7 = vld [vmem:[%s3536_s1 + $0xb0] sm:$0xff]   ;;  %v2704_v11 = vld [vmem:[%s3536_s1 + $0xa8] sm:$0xff]  }
   0x5   :  { %2450 = vmatpush3.bf16.msra.mxu1 %v2696_v3  ;;  %2429 = vmatprep.subr.bf16.mxu0 %v2697_v4  ;;  %v2705_v12 = vld [vmem:[%s3536_s1 + $0x60] sm:$0xff]   ;;  %v2709_v16 = vld [vmem:[%s3536_s1 + $0x58] sm:$0xff]   ;;  %v2713_v20 = vld [vmem:[%s3536_s1 + $0x50] sm:$0xff]   ;;  %v3000_v35 = vsub.s32 %v414_v29, %v416_v30 }
   0x6   :  { %2451 = vmatprep.subr.bf16.mxu1 %v2698_v5  ;;  %v2706_v13 = vld [vmem:[%s3536_s1 + $0xe0] sm:$0xff]   ;;  %v2710_v17 = vld [vmem:[%s3536_s1 + $0xd8] sm:$0xff]   ;;  %v2714_v21 = vld [vmem:[%s3536_s1 + $0xd0] sm:$0xff]  }
   0x7   :  { %v2707_v14 = vld [vmem:[%s3536_s1 + $0x20] sm:$0xff]   ;;  %v2711_v18 = vld [vmem:[%s3536_s1 + $0x18] sm:$0xff]   ;;  %v2715_v25 = vld [vmem:[%s3536_s1 + $0x10] sm:$0xff]  }
   0x8   :  { %2430 = vmatpush3.bf16.msra.mxu0 %v2699_v6  ;;  %v2708_v15 = vld [vmem:[%s3536_s1 + $0xa0] sm:$0xff]   ;;  %v2712_v19 = vld [vmem:[%s3536_s1 + $0x98] sm:$0xff]   ;;  %v2716_v26 = vld [vmem:[%s3536_s1 + $0x90] sm:$0xff]  }
   0x9   :  { %2452 = vmatpush3.bf16.msra.mxu1 %v2700_v7  ;;  %2431 = vmatprep.subr.bf16.mxu0 %v2701_v8  ;;  %v2717_v27 = vld [vmem:[%s3536_s1 + $0x48] sm:$0xff]   ;;  %v2721_v33 = vld [vmem:[%s3536_s1 + $0x40] sm:$0xff]   ;;  %v2726_v41 = vld [vmem:[%s3536_s1 + $0x178] sm:$0xff]  }
   0xa   :  { %2453 = vmatprep.subr.bf16.mxu1 %v2702_v9  ;;  %v2718_v28 = vld [vmem:[%s3536_s1 + $0xc8] sm:$0xff]   ;;  %v2722_v34 = vld [vmem:[%s3536_s1 + $0xc0] sm:$0xff]   ;;  %v2727_v42 = vld [vmem:[%s3536_s1 + $0x1f8] sm:$0xff]  }
   0xb   :  { %v2719_v31 = vld [vmem:[%s3536_s1 + $0x8] sm:$0xff]   ;;  %v2723_v36 = vld [vmem:[%s3536_s1] sm:$0xff]   ;;  %v2728_v47 = vld [vmem:[%s3536_s1 + $0x138] sm:$0xff]  }
   0xc   :  { %2432 = vmatpush3.bf16.msra.mxu0 %v2703_v10  ;;  %v2720_v32 = vld [vmem:[%s3536_s1 + $0x88] sm:$0xff]   ;;  %v2724_v37 = vld [vmem:[%s3536_s1 + $0x80] sm:$0xff]   ;;  %v2730_v50 = vld [vmem:[%s3536_s1 + $0x170] sm:$0xff]  }
   0xd   :  { %2454 = vmatpush3.bf16.msra.mxu1 %v2704_v11  ;;  %2433 = vmatprep.subr.bf16.mxu0 %v2705_v12  ;;  %v21_v38 = vld [vmem:[%s3537_s0] sm:$0xff]  ;;  %v2729_v52 = vld [vmem:[%s3536_s1 + $0x1b8] sm:$0xff]   ;;  %v2731_v54 = vld [vmem:[%s3536_s1 + $0x1f0] sm:$0xff]  }
   0xe   :  { %2455 = vmatprep.subr.bf16.mxu1 %v2706_v13  ;;  %v411_v39 = vcombine.high %v21_v38, %v21_v38  ;;  %v418_v40 = vrot.slane %v21_v38, %v3000_v35  ;;  %v2732_v55 = vld [vmem:[%s3536_s1 + $0x130] sm:$0xff]   ;;  %v2734_v57 = vld [vmem:[%s3536_s1 + $0x168] sm:$0xff]   ;;  %v2738_v61 = vld [vmem:[%s3536_s1 + $0x160] sm:$0xff]  }
   0xf   :  { %v2733_v58 = vld [vmem:[%s3536_s1 + $0x1b0] sm:$0xff]   ;;  %v2735_v59 = vld [vmem:[%s3536_s1 + $0x1e8] sm:$0xff]   ;;  %v2739_v63 = vld [vmem:[%s3536_s1 + $0x1e0] sm:$0xff]  }
  0x10   :  { %2434 = vmatpush3.bf16.msra.mxu0 %v2707_v14  ;;  %v426_v43 = vcombine.high %v418_v40, %v418_v40  ;;  %v434_v44 = vrot.slane %v418_v40, %v3000_v35  ;;  %v3020_v45 = vrot.slane %v411_v39, %v3000_v35  ;;  %v2736_v60 = vld [vmem:[%s3536_s1 + $0x128] sm:$0xff]   ;;  %v2740_v0 = vld [vmem:[%s3536_s1 + $0x120] sm:$0xff]   ;;  %v2742_v1 = vld [vmem:[%s3536_s1 + $0x158] sm:$0xff]  }
  0x11   :  { %2456 = vmatpush3.bf16.msra.mxu1 %v2708_v15  ;;  %2435 = vmatprep.subr.bf16.mxu0 %v2709_v16  ;;  %v2737_v62 = vld [vmem:[%s3536_s1 + $0x1a8] sm:$0xff]   ;;  %v2741_v2 = vld [vmem:[%s3536_s1 + $0x1a0] sm:$0xff]   ;;  %v2743_v3 = vld [vmem:[%s3536_s1 + $0x1d8] sm:$0xff]  }
  0x12   :  { %2457 = vmatprep.subr.bf16.mxu1 %v2710_v17  ;;  %v448_v46 = vrot.slane %v426_v43, %v3000_v35  ;;  %v427_v48 = vcombine.high %v3020_v45, %v3020_v45  ;;  %v456_v49 = vcombine.high %v434_v44, %v434_v44  ;;  %v2744_v4 = vld [vmem:[%s3536_s1 + $0x118] sm:$0xff]   ;;  %v2746_v5 = vld [vmem:[%s3536_s1 + $0x150] sm:$0xff]   ;;  %v2750_v9 = vld [vmem:[%s3536_s1 + $0x148] sm:$0xff]   ;;  %v441_v17 = vrot.slane %v3020_v45, %v3000_v35 }
  0x13   :  { %v2745_v6 = vld [vmem:[%s3536_s1 + $0x198] sm:$0xff]   ;;  %v2747_v7 = vld [vmem:[%s3536_s1 + $0x1d0] sm:$0xff]   ;;  %v2751_v11 = vld [vmem:[%s3536_s1 + $0x1c8] sm:$0xff]  }
  0x14   :  { %2436 = vmatpush3.bf16.msra.mxu0 %v2711_v18  ;;  %1766 = vmatprep.mubr.bf16.mxu0 %v448_v46  ;;  %v458_v51 = vcombine.high %v448_v46, %v448_v46  ;;  %v455_v53 = vrot.slane %v427_v48, %v3000_v35  ;;  %v2748_v8 = vld [vmem:[%s3536_s1 + $0x110] sm:$0xff]   ;;  %v2752_v12 = vld [vmem:[%s3536_s1 + $0x108] sm:$0xff]   ;;  %v2754_v13 = vld [vmem:[%s3536_s1 + $0x140] sm:$0xff]   ;;  %v457_v22 = vcombine.high %v441_v17, %v441_v17 }
  0x15   :  { %2458 = vmatpush3.bf16.msra.mxu1 %v2712_v19  ;;  %2437 = vmatprep.subr.bf16.mxu0 %v2713_v20  ;;  %v2749_v10 = vld [vmem:[%s3536_s1 + $0x190] sm:$0xff]   ;;  %v2753_v14 = vld [vmem:[%s3536_s1 + $0x188] sm:$0xff]   ;;  %v2755_v15 = vld [vmem:[%s3536_s1 + $0x1c0] sm:$0xff]  }
  0x16   :  { %2459 = vmatprep.subr.bf16.mxu1 %v2714_v21  ;;  %1806 = vmatprep.mubr.bf16.mxu1 %v458_v51  ;;  %v459_v56 = vcombine.high %v455_v53, %v455_v53  ;;  %v2756_v16 = vld [vmem:[%s3536_s1 + $0x100] sm:$0xff]   ;;  %v2758_v18 = vld [vmem:[%s3536_s1 + $0x278] sm:$0xff]   ;;  %v2762_v23 = vld [vmem:[%s3536_s1 + $0x270] sm:$0xff]  }
  0x17   :  { %v2757_v19 = vld [vmem:[%s3536_s1 + $0x180] sm:$0xff]   ;;  %v2759_v20 = vld [vmem:[%s3536_s1 + $0x2f8] sm:$0xff]   ;;  %v2767_v29 = vld [vmem:[%s3536_s1 + $0x2e8] sm:$0xff]  }
  0x18   :  { %2438 = vmatpush3.bf16.msra.mxu0 %v2715_v25  ;;  %v2760_v21 = vld [vmem:[%s3536_s1 + $0x238] sm:$0xff]   ;;  %v2763_v25 = vld [vmem:[%s3536_s1 + $0x2f0] sm:$0xff]   ;;  %v2768_v30 = vld [vmem:[%s3536_s1 + $0x228] sm:$0xff]  }
  0x19   :  { %2460 = vmatpush3.bf16.msra.mxu1 %v2716_v26  ;;  %2439 = vmatprep.subr.bf16.mxu0 %v2717_v27  ;;  %v2761_v24 = vld [vmem:[%s3536_s1 + $0x2b8] sm:$0xff]   ;;  %v2764_v26 = vld [vmem:[%s3536_s1 + $0x230] sm:$0xff]   ;;  %v2766_v27 = vld [vmem:[%s3536_s1 + $0x268] sm:$0xff]  }
  0x1a   :  { %2461 = vmatprep.subr.bf16.mxu1 %v2718_v28  ;;  %v2765_v28 = vld [vmem:[%s3536_s1 + $0x2b0] sm:$0xff]   ;;  %v2775_v38 = vld [vmem:[%s3536_s1 + $0x2d8] sm:$0xff]   ;;  %v2783_v46 = vld [vmem:[%s3536_s1 + $0x2c8] sm:$0xff]  }
  0x1b   :  { %v2776_v39 = vld [vmem:[%s3536_s1 + $0x218] sm:$0xff]   ;;  %v2778_v40 = vld [vmem:[%s3536_s1 + $0x250] sm:$0xff]   ;;  %v2786_v48 = vld [vmem:[%s3536_s1 + $0x240] sm:$0xff]  }
  0x1c   :  { %2440 = vmatpush3.bf16.msra.mxu0 %v2719_v31  ;;  %v2770_v31 = vld [vmem:[%s3536_s1 + $0x260] sm:$0xff]   ;;  %v2780_v43 = vld [vmem:[%s3536_s1 + $0x210] sm:$0xff]   ;;  %v22_v51 = vld [vmem:[%s3537_s0 + $0x8] sm:$0xff] }
  0x1d   :  { %2462 = vmatpush3.bf16.msra.mxu1 %v2720_v32  ;;  %2441 = vmatprep.subr.bf16.mxu0 %v2721_v33  ;;  %v2769_v32 = vld [vmem:[%s3536_s1 + $0x2a8] sm:$0xff]   ;;  %v2771_v33 = vld [vmem:[%s3536_s1 + $0x2e0] sm:$0xff]   ;;  %v2781_v45 = vld [vmem:[%s3536_s1 + $0x290] sm:$0xff]  }
  0x1e   :  { %2463 = vmatprep.subr.bf16.mxu1 %v2722_v34  ;;  %v2772_v34 = vld [vmem:[%s3536_s1 + $0x220] sm:$0xff]  }
  0x20   :  { %2442 = vmatpush3.bf16.msra.mxu0 %v2723_v36  ;;  %v2774_v36 = vld [vmem:[%s3536_s1 + $0x258] sm:$0xff]  }
  0x21   :  { %2464 = vmatpush3.bf16.msra.mxu1 %v2724_v37  ;;  %2471 = vmatprep.subr.bf16.mxu0 %v2726_v41  ;;  %v2773_v37 = vld [vmem:[%s3536_s1 + $0x2a0] sm:$0xff]   ;;  %v2777_v41 = vld [vmem:[%s3536_s1 + $0x298] sm:$0xff]  }
  0x22   :  { %2493 = vmatprep.subr.bf16.mxu1 %v2727_v42  ;;  %v2779_v42 = vld [vmem:[%s3536_s1 + $0x2d0] sm:$0xff]  }
  0x23   :  { %1767 = vmatmul.mubr.bf16.vlgmr.msra.gmra.mxu0 %v434_v44  ;;  %v2782_v44 = vld [vmem:[%s3536_s1 + $0x248] sm:$0xff]  }
  0x24   :  { %2472 = vmatpush3.bf16.msra.mxu0 %v2728_v47  ;;  %1807 = vmatmul.mubr.bf16.vlgmr.msra.gmra.mxu1 %v456_v49  ;;  %v2784_v47 = vld [vmem:[%s3536_s1 + $0x208] sm:$0xff]  }
  0x25   :  { %2473 = vmatprep.subr.bf16.mxu0 %v2730_v50  ;;  %2494 = vmatpush3.bf16.msra.mxu1 %v2729_v52  ;;  %v2785_v49 = vld [vmem:[%s3536_s1 + $0x288] sm:$0xff]   ;;  %v2787_v50 = vld [vmem:[%s3536_s1 + $0x2c0] sm:$0xff]  }
  0x26   :  { %1846 = vmatprep.mubr.bf16.mxu0 %v455_v53  ;;  %2495 = vmatprep.subr.bf16.mxu1 %v2731_v54  ;;  %v2788_v52 = vld [vmem:[%s3536_s1 + $0x200] sm:$0xff]   ;;  %v467_v53 = vrot.slane %v22_v51, %v3000_v35  ;;  %v460_v54 = vcombine.high %v22_v51, %v22_v51  ;;  %v2839_v51 = vld [vmem:[%s3536_s1 + $0x458] sm:$0xff]  }
  0x27   :  { %1886 = vmatprep.mubr.bf16.mxu1 %v459_v56  ;;  %v2789_v56 = vld [vmem:[%s3536_s1 + $0x280] sm:$0xff]  }
  0x28   :  { %2474 = vmatpush3.bf16.msra.mxu0 %v2732_v55  ;;  %v2790_v55 = vld [vmem:[%s3536_s1 + $0x378] sm:$0xff]  }
  0x29   :  { %2475 = vmatprep.subr.bf16.mxu0 %v2734_v57  ;;  %2496 = vmatpush3.bf16.msra.mxu1 %v2733_v58  ;;  %v475_v57 = vcombine.high %v467_v53, %v467_v53  ;;  %v483_v58 = vrot.slane %v467_v53, %v3000_v35  ;;  %v2840_v53 = vld [vmem:[%s3536_s1 + $0x4d8] sm:$0xff]  }
  0x2a   :  { %2497 = vmatprep.subr.bf16.mxu1 %v2735_v59  ;;  %v3223_v59 = vrot.slane %v460_v54, %v3000_v35  ;;  %v2841_v54 = vld [vmem:[%s3536_s1 + $0x418] sm:$0xff]  }
  0x2c   :  { %2476 = vmatpush3.bf16.msra.mxu0 %v2736_v60  ;;  %v2791_v60 = vld [vmem:[%s3536_s1 + $0x3f8] sm:$0xff]  }
  0x2d   :  { %2477 = vmatprep.subr.bf16.mxu0 %v2738_v61  ;;  %2498 = vmatpush3.bf16.msra.mxu1 %v2737_v62  ;;  %v497_v61 = vrot.slane %v475_v57, %v3000_v35  ;;  %v2792_v62 = vld [vmem:[%s3536_s1 + $0x338] sm:$0xff]   ;;  %v2844_v57 = vld [vmem:[%s3536_s1 + $0x4d0] sm:$0xff]  }
  0x2e   :  { %2499 = vmatprep.subr.bf16.mxu1 %v2739_v63  ;;  %v476_v63 = vcombine.high %v3223_v59, %v3223_v59 }
  0x30   :  { %2478 = vmatpush3.bf16.msra.mxu0 %v2740_v0  ;;  %v505_v0 = vcombine.high %v483_v58, %v483_v58 }
  0x31   :  { %2479 = vmatprep.subr.bf16.mxu0 %v2742_v1  ;;  %2500 = vmatpush3.bf16.msra.mxu1 %v2741_v2  ;;  %v2794_v1 = vld [vmem:[%s3536_s1 + $0x370] sm:$0xff]   ;;  %v507_v2 = vcombine.high %v497_v61, %v497_v61 }
  0x32   :  { %2501 = vmatprep.subr.bf16.mxu1 %v2743_v3  ;;  %v2793_v3 = vld [vmem:[%s3536_s1 + $0x3b8] sm:$0xff]  }
  0x34   :  { %2480 = vmatpush3.bf16.msra.mxu0 %v2744_v4  ;;  %v504_v4 = vrot.slane %v476_v63, %v3000_v35  ;;  %v2851_v63 = vld [vmem:[%s3536_s1 + $0x440] sm:$0xff]  }
  0x35   :  { %2481 = vmatprep.subr.bf16.mxu0 %v2746_v5  ;;  %2502 = vmatpush3.bf16.msra.mxu1 %v2745_v6  ;;  %v2795_v5 = vld [vmem:[%s3536_s1 + $0x3f0] sm:$0xff]  }
  0x36   :  { %2503 = vmatprep.subr.bf16.mxu1 %v2747_v7  ;;  %v2796_v6 = vld [vmem:[%s3536_s1 + $0x330] sm:$0xff]   ;;  %v508_v7 = vcombine.high %v504_v4, %v504_v4 }
  0x38   :  { %2482 = vmatpush3.bf16.msra.mxu0 %v2748_v8  ;;  %v2798_v8 = vld [vmem:[%s3536_s1 + $0x368] sm:$0xff]  }
  0x39   :  { %2483 = vmatprep.subr.bf16.mxu0 %v2750_v9  ;;  %2504 = vmatpush3.bf16.msra.mxu1 %v2749_v10  ;;  %v2797_v9 = vld [vmem:[%s3536_s1 + $0x3b0] sm:$0xff]   ;;  %v2799_v10 = vld [vmem:[%s3536_s1 + $0x3e8] sm:$0xff]  }
  0x3a   :  { %2505 = vmatprep.subr.bf16.mxu1 %v2751_v11  ;;  %v2800_v11 = vld [vmem:[%s3536_s1 + $0x328] sm:$0xff]  }
  0x3c   :  { %2484 = vmatpush3.bf16.msra.mxu0 %v2752_v12  ;;  %v2802_v12 = vld [vmem:[%s3536_s1 + $0x360] sm:$0xff]  }
  0x3d   :  { %2485 = vmatprep.subr.bf16.mxu0 %v2754_v13  ;;  %2506 = vmatpush3.bf16.msra.mxu1 %v2753_v14  ;;  %v2801_v13 = vld [vmem:[%s3536_s1 + $0x3a8] sm:$0xff]   ;;  %v2803_v14 = vld [vmem:[%s3536_s1 + $0x3e0] sm:$0xff]  }
  0x3e   :  { %2507 = vmatprep.subr.bf16.mxu1 %v2755_v15  ;;  %v2804_v15 = vld [vmem:[%s3536_s1 + $0x320] sm:$0xff]  }
  0x40   :  { %2486 = vmatpush3.bf16.msra.mxu0 %v2756_v16  ;;  %v2806_v16 = vld [vmem:[%s3536_s1 + $0x358] sm:$0xff]  }
  0x41   :  { %2515 = vmatprep.subr.bf16.mxu0 %v2758_v18  ;;  %2508 = vmatpush3.bf16.msra.mxu1 %v2757_v19  ;;  %v2807_v18 = vld [vmem:[%s3536_s1 + $0x3d8] sm:$0xff]  }
  0x42   :  { %2537 = vmatprep.subr.bf16.mxu1 %v2759_v20  ;;  %v2808_v19 = vld [vmem:[%s3536_s1 + $0x318] sm:$0xff]   ;;  %v2810_v20 = vld [vmem:[%s3536_s1 + $0x350] sm:$0xff]  }
  0x43   :  { %1847 = vmatmul.mubr.bf16.vlgmr.msra.gmra.mxu0 %v441_v17  ;;  %v2805_v17 = vld [vmem:[%s3536_s1 + $0x3a0] sm:$0xff]  }
  0x44   :  { %2516 = vmatpush3.bf16.msra.mxu0 %v2760_v21  ;;  %1887 = vmatmul.mubr.bf16.vlgmr.msra.gmra.mxu1 %v457_v22  ;;  %v2809_v21 = vld [vmem:[%s3536_s1 + $0x398] sm:$0xff]   ;;  %v2811_v22 = vld [vmem:[%s3536_s1 + $0x3d0] sm:$0xff]  }
  0x45   :  { %2517 = vmatprep.subr.bf16.mxu0 %v2762_v23  ;;  %2538 = vmatpush3.bf16.msra.mxu1 %v2761_v24  ;;  %v2812_v23 = vld [vmem:[%s3536_s1 + $0x310] sm:$0xff]   ;;  %v2814_v24 = vld [vmem:[%s3536_s1 + $0x348] sm:$0xff]  }
  0x46   :  { %2539 = vmatprep.subr.bf16.mxu1 %v2763_v25  ;;  %1926 = vmatprep.mubr.bf16.mxu0 %v497_v61  ;;  %v2813_v25 = vld [vmem:[%s3536_s1 + $0x390] sm:$0xff]   ;;  %v2848_v61 = vld [vmem:[%s3536_s1 + $0x4c8] sm:$0xff]  }
  0x47   :  { %1966 = vmatprep.mubr.bf16.mxu1 %v507_v2  ;;  %v23_v2 = vld [vmem:[%s3537_s0 + $0x10] sm:$0xff] }
  0x48   :  { %2518 = vmatpush3.bf16.msra.mxu0 %v2764_v26  ;;  %v2815_v26 = vld [vmem:[%s3536_s1 + $0x3c8] sm:$0xff]  }
  0x49   :  { %2519 = vmatprep.subr.bf16.mxu0 %v2766_v27  ;;  %2540 = vmatpush3.bf16.msra.mxu1 %v2765_v28  ;;  %v2816_v27 = vld [vmem:[%s3536_s1 + $0x308] sm:$0xff]   ;;  %v2818_v28 = vld [vmem:[%s3536_s1 + $0x340] sm:$0xff]  }
  0x4a   :  { %2541 = vmatprep.subr.bf16.mxu1 %v2767_v29  ;;  %v2817_v29 = vld [vmem:[%s3536_s1 + $0x388] sm:$0xff]  }
  0x4c   :  { %2520 = vmatpush3.bf16.msra.mxu0 %v2768_v30  ;;  %v2819_v30 = vld [vmem:[%s3536_s1 + $0x3c0] sm:$0xff]  }
  0x4d   :  { %2521 = vmatprep.subr.bf16.mxu0 %v2770_v31  ;;  %2542 = vmatpush3.bf16.msra.mxu1 %v2769_v32  ;;  %v2820_v31 = vld [vmem:[%s3536_s1 + $0x300] sm:$0xff]   ;;  %v490_v32 = vrot.slane %v3223_v59, %v3000_v35  ;;  %v2847_v59 = vld [vmem:[%s3536_s1 + $0x448] sm:$0xff]  }
  0x4e   :  { %2543 = vmatprep.subr.bf16.mxu1 %v2771_v33  ;;  %v2823_v33 = vld [vmem:[%s3536_s1 + $0x478] sm:$0xff]  }
  0x50   :  { %2522 = vmatpush3.bf16.msra.mxu0 %v2772_v34  ;;  %v2821_v34 = vld [vmem:[%s3536_s1 + $0x380] sm:$0xff]  }
  0x51   :  { %2523 = vmatprep.subr.bf16.mxu0 %v2774_v36  ;;  %2544 = vmatpush3.bf16.msra.mxu1 %v2773_v37  ;;  %v2824_v36 = vld [vmem:[%s3536_s1 + $0x4f8] sm:$0xff]  }
  0x52   :  { %2545 = vmatprep.subr.bf16.mxu1 %v2775_v38  ;;  %v2825_v37 = vld [vmem:[%s3536_s1 + $0x438] sm:$0xff]   ;;  %v506_v38 = vcombine.high %v490_v32, %v490_v32 }
  0x54   :  { %2524 = vmatpush3.bf16.msra.mxu0 %v2776_v39  ;;  %v2827_v39 = vld [vmem:[%s3536_s1 + $0x470] sm:$0xff]  }
  0x55   :  { %2525 = vmatprep.subr.bf16.mxu0 %v2778_v40  ;;  %2546 = vmatpush3.bf16.msra.mxu1 %v2777_v41  ;;  %v2826_v40 = vld [vmem:[%s3536_s1 + $0x4b8] sm:$0xff]   ;;  %v2828_v41 = vld [vmem:[%s3536_s1 + $0x4f0] sm:$0xff]  }
  0x56   :  { %2547 = vmatprep.subr.bf16.mxu1 %v2779_v42  ;;  %v2829_v42 = vld [vmem:[%s3536_s1 + $0x430] sm:$0xff]  }
  0x58   :  { %2526 = vmatpush3.bf16.msra.mxu0 %v2780_v43  ;;  %v2831_v43 = vld [vmem:[%s3536_s1 + $0x468] sm:$0xff]  }
  0x59   :  { %2527 = vmatprep.subr.bf16.mxu0 %v2782_v44  ;;  %2548 = vmatpush3.bf16.msra.mxu1 %v2781_v45  ;;  %v2830_v44 = vld [vmem:[%s3536_s1 + $0x4b0] sm:$0xff]   ;;  %v2832_v45 = vld [vmem:[%s3536_s1 + $0x4e8] sm:$0xff]  }
  0x5a   :  { %2549 = vmatprep.subr.bf16.mxu1 %v2783_v46  ;;  %v2833_v46 = vld [vmem:[%s3536_s1 + $0x428] sm:$0xff]  }
  0x5c   :  { %2528 = vmatpush3.bf16.msra.mxu0 %v2784_v47  ;;  %v2835_v47 = vld [vmem:[%s3536_s1 + $0x460] sm:$0xff]  }
  0x5d   :  { %2529 = vmatprep.subr.bf16.mxu0 %v2786_v48  ;;  %2550 = vmatpush3.bf16.msra.mxu1 %v2785_v49  ;;  %v2834_v48 = vld [vmem:[%s3536_s1 + $0x4a8] sm:$0xff]   ;;  %v2836_v49 = vld [vmem:[%s3536_s1 + $0x4e0] sm:$0xff]  }
  0x5e   :  { %2551 = vmatprep.subr.bf16.mxu1 %v2787_v50  ;;  %v2837_v50 = vld [vmem:[%s3536_s1 + $0x420] sm:$0xff]  }
  0x60   :  { %2530 = vmatpush3.bf16.msra.mxu0 %v2788_v52  ;;  %v2838_v52 = vld [vmem:[%s3536_s1 + $0x4a0] sm:$0xff]  }
  0x61   :  { %2559 = vmatprep.subr.bf16.mxu0 %v2790_v55  ;;  %2552 = vmatpush3.bf16.msra.mxu1 %v2789_v56  ;;  %v2843_v55 = vld [vmem:[%s3536_s1 + $0x450] sm:$0xff]   ;;  %v2842_v56 = vld [vmem:[%s3536_s1 + $0x498] sm:$0xff]  }
  0x62   :  { %2581 = vmatprep.subr.bf16.mxu1 %v2791_v60  ;;  %v2846_v60 = vld [vmem:[%s3536_s1 + $0x490] sm:$0xff]  }
  0x63   :  { %1927 = vmatmul.mubr.bf16.vlgmr.msra.gmra.mxu0 %v483_v58  ;;  %v2845_v58 = vld [vmem:[%s3536_s1 + $0x410] sm:$0xff]  }
  0x64   :  { %2560 = vmatpush3.bf16.msra.mxu0 %v2792_v62  ;;  %1967 = vmatmul.mubr.bf16.vlgmr.msra.gmra.mxu1 %v505_v0  ;;  %v2849_v62 = vld [vmem:[%s3536_s1 + $0x408] sm:$0xff]  }
  0x65   :  { %2561 = vmatprep.subr.bf16.mxu0 %v2794_v1  ;;  %2582 = vmatpush3.bf16.msra.mxu1 %v2793_v3  ;;  %v2850_v0 = vld [vmem:[%s3536_s1 + $0x488] sm:$0xff]   ;;  %v2852_v1 = vld [vmem:[%s3536_s1 + $0x4c0] sm:$0xff]  }
  0x66   :  { %2006 = vmatprep.mubr.bf16.mxu0 %v504_v4  ;;  %2583 = vmatprep.subr.bf16.mxu1 %v2795_v5  ;;  %v2853_v3 = vld [vmem:[%s3536_s1 + $0x400] sm:$0xff]   ;;  %v516_v4 = vrot.slane %v23_v2, %v3000_v35  ;;  %v509_v5 = vcombine.high %v23_v2, %v23_v2 }
  0x67   :  { %2046 = vmatprep.mubr.bf16.mxu1 %v508_v7  ;;  %v2854_v7 = vld [vmem:[%s3536_s1 + $0x480] sm:$0xff]  }
  0x68   :  { %2562 = vmatpush3.bf16.msra.mxu0 %v2796_v6  ;;  %v2855_v6 = vld [vmem:[%s3536_s1 + $0x578] sm:$0xff]  }
  0x69   :  { %2563 = vmatprep.subr.bf16.mxu0 %v2798_v8  ;;  %2584 = vmatpush3.bf16.msra.mxu1 %v2797_v9  ;;  %v524_v8 = vcombine.high %v516_v4, %v516_v4  ;;  %v532_v9 = vrot.slane %v516_v4, %v3000_v35 }
  0x6a   :  { %2585 = vmatprep.subr.bf16.mxu1 %v2799_v10  ;;  %v3429_v10 = vrot.slane %v509_v5, %v3000_v35 }
  0x6c   :  { %2564 = vmatpush3.bf16.msra.mxu0 %v2800_v11  ;;  %v2856_v11 = vld [vmem:[%s3536_s1 + $0x5f8] sm:$0xff]  }
  0x6d   :  { %2565 = vmatprep.subr.bf16.mxu0 %v2802_v12  ;;  %2586 = vmatpush3.bf16.msra.mxu1 %v2801_v13  ;;  %v546_v12 = vrot.slane %v524_v8, %v3000_v35  ;;  %v2857_v13 = vld [vmem:[%s3536_s1 + $0x538] sm:$0xff]  }
  0x6e   :  { %2587 = vmatprep.subr.bf16.mxu1 %v2803_v14  ;;  %v525_v14 = vcombine.high %v3429_v10, %v3429_v10 }
  0x70   :  { %2566 = vmatpush3.bf16.msra.mxu0 %v2804_v15  ;;  %v554_v15 = vcombine.high %v532_v9, %v532_v9 }
  0x71   :  { %2567 = vmatprep.subr.bf16.mxu0 %v2806_v16  ;;  %2588 = vmatpush3.bf16.msra.mxu1 %v2805_v17  ;;  %v2859_v16 = vld [vmem:[%s3536_s1 + $0x570] sm:$0xff]   ;;  %v556_v17 = vcombine.high %v546_v12, %v546_v12 }
  0x72   :  { %2589 = vmatprep.subr.bf16.mxu1 %v2807_v18  ;;  %v2858_v18 = vld [vmem:[%s3536_s1 + $0x5b8] sm:$0xff]  }
  0x74   :  { %2568 = vmatpush3.bf16.msra.mxu0 %v2808_v19  ;;  %v553_v19 = vrot.slane %v525_v14, %v3000_v35 }
  0x75   :  { %2569 = vmatprep.subr.bf16.mxu0 %v2810_v20  ;;  %2590 = vmatpush3.bf16.msra.mxu1 %v2809_v21  ;;  %v2860_v20 = vld [vmem:[%s3536_s1 + $0x5f0] sm:$0xff]  }
  0x76   :  { %2591 = vmatprep.subr.bf16.mxu1 %v2811_v22  ;;  %v2861_v21 = vld [vmem:[%s3536_s1 + $0x530] sm:$0xff]   ;;  %v557_v22 = vcombine.high %v553_v19, %v553_v19 }
  0x78   :  { %2570 = vmatpush3.bf16.msra.mxu0 %v2812_v23  ;;  %v2863_v23 = vld [vmem:[%s3536_s1 + $0x568] sm:$0xff]  }
  0x79   :  { %2571 = vmatprep.subr.bf16.mxu0 %v2814_v24  ;;  %2592 = vmatpush3.bf16.msra.mxu1 %v2813_v25  ;;  %v2862_v24 = vld [vmem:[%s3536_s1 + $0x5b0] sm:$0xff]   ;;  %v2864_v25 = vld [vmem:[%s3536_s1 + $0x5e8] sm:$0xff]  }
  0x7a   :  { %2593 = vmatprep.subr.bf16.mxu1 %v2815_v26  ;;  %v2865_v26 = vld [vmem:[%s3536_s1 + $0x528] sm:$0xff]  }
  0x7c   :  { %2572 = vmatpush3.bf16.msra.mxu0 %v2816_v27  ;;  %v2867_v27 = vld [vmem:[%s3536_s1 + $0x560] sm:$0xff]  }
  0x7d   :  { %2573 = vmatprep.subr.bf16.mxu0 %v2818_v28  ;;  %2594 = vmatpush3.bf16.msra.mxu1 %v2817_v29  ;;  %v2866_v28 = vld [vmem:[%s3536_s1 + $0x5a8] sm:$0xff]   ;;  %v2868_v29 = vld [vmem:[%s3536_s1 + $0x5e0] sm:$0xff]  }
  0x7e   :  { %2595 = vmatprep.subr.bf16.mxu1 %v2819_v30  ;;  %v2869_v30 = vld [vmem:[%s3536_s1 + $0x520] sm:$0xff]  }
  0x80   :  { %2574 = vmatpush3.bf16.msra.mxu0 %v2820_v31  ;;  %v2871_v31 = vld [vmem:[%s3536_s1 + $0x558] sm:$0xff]  }
  0x81   :  { %2603 = vmatprep.subr.bf16.mxu0 %v2823_v33  ;;  %2596 = vmatpush3.bf16.msra.mxu1 %v2821_v34  ;;  %v2872_v33 = vld [vmem:[%s3536_s1 + $0x5d8] sm:$0xff]  }
  0x82   :  { %2625 = vmatprep.subr.bf16.mxu1 %v2824_v36  ;;  %v2873_v34 = vld [vmem:[%s3536_s1 + $0x518] sm:$0xff]   ;;  %v2875_v36 = vld [vmem:[%s3536_s1 + $0x550] sm:$0xff]  }
  0x83   :  { %2007 = vmatmul.mubr.bf16.vlgmr.msra.gmra.mxu0 %v490_v32  ;;  %v2870_v32 = vld [vmem:[%s3536_s1 + $0x5a0] sm:$0xff]  }
  0x84   :  { %2604 = vmatpush3.bf16.msra.mxu0 %v2825_v37  ;;  %2047 = vmatmul.mubr.bf16.vlgmr.msra.gmra.mxu1 %v506_v38  ;;  %v2874_v37 = vld [vmem:[%s3536_s1 + $0x598] sm:$0xff]   ;;  %v2876_v38 = vld [vmem:[%s3536_s1 + $0x5d0] sm:$0xff]  }
  0x85   :  { %2605 = vmatprep.subr.bf16.mxu0 %v2827_v39  ;;  %2626 = vmatpush3.bf16.msra.mxu1 %v2826_v40  ;;  %v2877_v39 = vld [vmem:[%s3536_s1 + $0x510] sm:$0xff]   ;;  %v2879_v40 = vld [vmem:[%s3536_s1 + $0x548] sm:$0xff]  }
  0x86   :  { %2627 = vmatprep.subr.bf16.mxu1 %v2828_v41  ;;  %2086 = vmatprep.mubr.bf16.mxu0 %v546_v12  ;;  %v2878_v41 = vld [vmem:[%s3536_s1 + $0x590] sm:$0xff]  }
  0x87   :  { %2126 = vmatprep.mubr.bf16.mxu1 %v556_v17 }
  0x88   :  { %2606 = vmatpush3.bf16.msra.mxu0 %v2829_v42  ;;  %v2880_v42 = vld [vmem:[%s3536_s1 + $0x5c8] sm:$0xff]  }
  0x89   :  { %2607 = vmatprep.subr.bf16.mxu0 %v2831_v43  ;;  %2628 = vmatpush3.bf16.msra.mxu1 %v2830_v44  ;;  %v2881_v43 = vld [vmem:[%s3536_s1 + $0x508] sm:$0xff]   ;;  %v2883_v44 = vld [vmem:[%s3536_s1 + $0x540] sm:$0xff]  }
  0x8a   :  { %2629 = vmatprep.subr.bf16.mxu1 %v2832_v45  ;;  %v2882_v45 = vld [vmem:[%s3536_s1 + $0x588] sm:$0xff]  }
  0x8c   :  { %2608 = vmatpush3.bf16.msra.mxu0 %v2833_v46  ;;  %v2884_v46 = vld [vmem:[%s3536_s1 + $0x5c0] sm:$0xff]  }
  0x8d   :  { %2609 = vmatprep.subr.bf16.mxu0 %v2835_v47  ;;  %2630 = vmatpush3.bf16.msra.mxu1 %v2834_v48  ;;  %v2885_v47 = vld [vmem:[%s3536_s1 + $0x500] sm:$0xff]   ;;  %v539_v48 = vrot.slane %v3429_v10, %v3000_v35 }
  0x8e   :  { %2631 = vmatprep.subr.bf16.mxu1 %v2836_v49  ;;  %v2886_v49 = vld [vmem:[%s3536_s1 + $0x580] sm:$0xff]  }
  0x90   :  { %2610 = vmatpush3.bf16.msra.mxu0 %v2837_v50  ;;  %v555_v50 = vcombine.high %v539_v48, %v539_v48 }
  0x91   :  { %2611 = vmatprep.subr.bf16.mxu0 %v2839_v51  ;;  %2632 = vmatpush3.bf16.msra.mxu1 %v2838_v52 }
  0x92   :  { %2633 = vmatprep.subr.bf16.mxu1 %v2840_v53 }
  0x94   :  { %2612 = vmatpush3.bf16.msra.mxu0 %v2841_v54 }
  0x95   :  { %2613 = vmatprep.subr.bf16.mxu0 %v2843_v55  ;;  %2634 = vmatpush3.bf16.msra.mxu1 %v2842_v56 }
  0x96   :  { %2635 = vmatprep.subr.bf16.mxu1 %v2844_v57 }
  0x98   :  { %2614 = vmatpush3.bf16.msra.mxu0 %v2845_v58 }
  0x99   :  { %2615 = vmatprep.subr.bf16.mxu0 %v2847_v59  ;;  %2636 = vmatpush3.bf16.msra.mxu1 %v2846_v60 }
  0x9a   :  { %2637 = vmatprep.subr.bf16.mxu1 %v2848_v61 }
  0x9c   :  { %2616 = vmatpush3.bf16.msra.mxu0 %v2849_v62 }
  0x9d   :  { %2617 = vmatprep.subr.bf16.mxu0 %v2851_v63  ;;  %2638 = vmatpush3.bf16.msra.mxu1 %v2850_v0 }
  0x9e   :  { %2639 = vmatprep.subr.bf16.mxu1 %v2852_v1  ;;  %v2889_v1 = vmov 0.0  }
  0x9f   :  { %19 = vst [vmem:[#allocation2] sm:$0x3] %v2889_v1 }
  0xa0   :  { %2618 = vmatpush3.bf16.msra.mxu0 %v2853_v3 }
  0xa1   :  { %2647 = vmatprep.subr.bf16.mxu0 %v2855_v6  ;;  %2640 = vmatpush3.bf16.msra.mxu1 %v2854_v7 }
  0xa2   :  { %2669 = vmatprep.subr.bf16.mxu1 %v2856_v11 }
  0xa3   :  { %2087 = vmatmul.mubr.bf16.vlgmr.msra.gmra.mxu0 %v532_v9 }
  0xa4   :  { %2648 = vmatpush3.bf16.msra.mxu0 %v2857_v13  ;;  %2127 = vmatmul.mubr.bf16.vlgmr.msra.gmra.mxu1 %v554_v15 }
  0xa5   :  { %2649 = vmatprep.subr.bf16.mxu0 %v2859_v16  ;;  %2670 = vmatpush3.bf16.msra.mxu1 %v2858_v18 }
  0xa6   :  { %2166 = vmatprep.mubr.bf16.mxu0 %v553_v19  ;;  %2671 = vmatprep.subr.bf16.mxu1 %v2860_v20 }
  0xa7   :  { %2206 = vmatprep.mubr.bf16.mxu1 %v557_v22 }
  0xa8   :  { %2650 = vmatpush3.bf16.msra.mxu0 %v2861_v21 }
  0xa9   :  { %2651 = vmatprep.subr.bf16.mxu0 %v2863_v23  ;;  %2672 = vmatpush3.bf16.msra.mxu1 %v2862_v24 }
  0xaa   :  { %2673 = vmatprep.subr.bf16.mxu1 %v2864_v25 }
  0xac   :  { %2652 = vmatpush3.bf16.msra.mxu0 %v2865_v26 }
  0xad   :  { %2653 = vmatprep.subr.bf16.mxu0 %v2867_v27  ;;  %2674 = vmatpush3.bf16.msra.mxu1 %v2866_v28 }
  0xae   :  { %2675 = vmatprep.subr.bf16.mxu1 %v2868_v29 }
  0xb0   :  { %2654 = vmatpush3.bf16.msra.mxu0 %v2869_v30 }
  0xb1   :  { %2655 = vmatprep.subr.bf16.mxu0 %v2871_v31  ;;  %2676 = vmatpush3.bf16.msra.mxu1 %v2870_v32 }
  0xb2   :  { %2677 = vmatprep.subr.bf16.mxu1 %v2872_v33 }
  0xb4   :  { %2656 = vmatpush3.bf16.msra.mxu0 %v2873_v34 }
  0xb5   :  { %2657 = vmatprep.subr.bf16.mxu0 %v2875_v36  ;;  %2678 = vmatpush3.bf16.msra.mxu1 %v2874_v37 }
  0xb6   :  { %2679 = vmatprep.subr.bf16.mxu1 %v2876_v38 }
  0xb8   :  { %2658 = vmatpush3.bf16.msra.mxu0 %v2877_v39 }
  0xb9   :  { %2659 = vmatprep.subr.bf16.mxu0 %v2879_v40  ;;  %2680 = vmatpush3.bf16.msra.mxu1 %v2878_v41 }
  0xba   :  { %2681 = vmatprep.subr.bf16.mxu1 %v2880_v42 }
  0xbc   :  { %2660 = vmatpush3.bf16.msra.mxu0 %v2881_v43 }
  0xbd   :  { %2661 = vmatprep.subr.bf16.mxu0 %v2883_v44  ;;  %2682 = vmatpush3.bf16.msra.mxu1 %v2882_v45 }
  0xbe   :  { %2683 = vmatprep.subr.bf16.mxu1 %v2884_v46 }
  0xc0   :  { %2662 = vmatpush3.bf16.msra.mxu0 %v2885_v47 }
  0xc1   :  { %2684 = vmatpush3.bf16.msra.mxu1 %v2886_v49 }
  0xc3   :  { %2167 = vmatmul.mubr.bf16.vlgmr.msra.gmra.mxu0 %v539_v48 }
  0xc4   :  { %2207 = vmatmul.mubr.bf16.vlgmr.msra.gmra.mxu1 %v555_v50 }
  0xe3   :  { %v2443_v51 = vpop.f32.mrf.mxu0 }
  0xe4   :  { %v2465_v52 = vpop.f32.mrf.mxu1 }
  0xe5   :  { %v2444_v53 = vpop.f32.mrf.mxu0 }
  0xe6   :  { %v2445_v54 = vadd.f32 %v2444_v53, %v2443_v51  ;;  %v2466_v55 = vpop.f32.mrf.mxu1 }
  0xe7   :  { %v2446_v56 = vpop.f32.mrf.mxu0  ;;  %v2467_v57 = vadd.f32 %v2466_v55, %v2465_v52  ;;  %v20_v55 = vld [vmem:[#allocation2] sm:$0x3] }
  0xe8   :  { %v2468_v58 = vpop.f32.mrf.mxu1 }
  0xe9   :  { %v2447_v35 = vpop.f32.mrf.mxu0  ;;  %v1809_v59 = vadd.f32 %v2467_v57, %v2445_v54 }
  0xea   :  { %v2469_v60 = vpop.f32.mrf.mxu1 }
  0xeb   :  { %v2426_v60 = vld [vmem:[%s3538_s2] ss:$0 sm:$0xff] }
 0x103   :  { %v2487_v61 = vpop.f32.mrf.mxu0 }
 0x104   :  { %v2509_v62 = vpop.f32.mrf.mxu1 }
 0x105   :  { %v2488_v63 = vpop.f32.mrf.mxu0 }
 0x106   :  { %v2489_v0 = vadd.f32 %v2488_v63, %v2487_v61  ;;  %v2510_v2 = vpop.f32.mrf.mxu1 }
 0x107   :  { %v2490_v3 = vpop.f32.mrf.mxu0  ;;  %v2511_v5 = vadd.f32 %v2510_v2, %v2509_v62 }
 0x108   :  { %v1849_v4 = vadd.f32 %v2489_v0, %v1809_v59  ;;  %v2512_v6 = vpop.f32.mrf.mxu1 }
 0x109   :  { %v2491_v7 = vpop.f32.mrf.mxu0 }
 0x10a   :  { %v1889_v8 = vadd.f32 %v2511_v5, %v1849_v4  ;;  %v2513_v9 = vpop.f32.mrf.mxu1 }
 0x123   :  { %v2531_v10 = vpop.f32.mrf.mxu0 }
 0x124   :  { %v2553_v11 = vpop.f32.mrf.mxu1 }
 0x125   :  { %v2532_v12 = vpop.f32.mrf.mxu0 }
 0x126   :  { %v2533_v13 = vadd.f32 %v2532_v12, %v2531_v10  ;;  %v2554_v14 = vpop.f32.mrf.mxu1 }
 0x127   :  { %v2534_v15 = vpop.f32.mrf.mxu0  ;;  %v2555_v17 = vadd.f32 %v2554_v14, %v2553_v11 }
 0x128   :  { %v1929_v16 = vadd.f32 %v2533_v13, %v1889_v8  ;;  %v2556_v18 = vpop.f32.mrf.mxu1 }
 0x129   :  { %v2535_v19 = vpop.f32.mrf.mxu0 }
 0x12a   :  { %v1969_v20 = vadd.f32 %v2555_v17, %v1929_v16  ;;  %v2557_v21 = vpop.f32.mrf.mxu1 }
 0x143   :  { %v2575_v22 = vpop.f32.mrf.mxu0 }
 0x144   :  { %v2597_v23 = vpop.f32.mrf.mxu1 }
 0x145   :  { %v2576_v24 = vpop.f32.mrf.mxu0 }
 0x146   :  { %v2598_v25 = vpop.f32.mrf.mxu1  ;;  %v2577_v39 = vadd.f32 %v2576_v24, %v2575_v22 }
 0x147   :  { %v2578_v26 = vpop.f32.mrf.mxu0  ;;  %v2599_v41 = vadd.f32 %v2598_v25, %v2597_v23 }
 0x148   :  { %v2600_v27 = vpop.f32.mrf.mxu1  ;;  %v2009_v40 = vadd.f32 %v2577_v39, %v1969_v20 }
 0x149   :  { %v2579_v28 = vpop.f32.mrf.mxu0 }
 0x14a   :  { %v2601_v29 = vpop.f32.mrf.mxu1  ;;  %v2049_v43 = vadd.f32 %v2599_v41, %v2009_v40 }
 0x163   :  { %v2619_v30 = vpop.f32.mrf.mxu0 }
 0x164   :  { %v2641_v31 = vpop.f32.mrf.mxu1 }
 0x165   :  { %v2620_v32 = vpop.f32.mrf.mxu0 }
 0x166   :  { %v2642_v33 = vpop.f32.mrf.mxu1  ;;  %v2621_v42 = vadd.f32 %v2620_v32, %v2619_v30 }
 0x167   :  { %v2622_v34 = vpop.f32.mrf.mxu0  ;;  %v2643_v45 = vadd.f32 %v2642_v33, %v2641_v31 }
 0x168   :  { %v2644_v36 = vpop.f32.mrf.mxu1  ;;  %v2089_v44 = vadd.f32 %v2621_v42, %v2049_v43 }
 0x169   :  { %v2623_v37 = vpop.f32.mrf.mxu0 }
 0x16a   :  { %v2645_v38 = vpop.f32.mrf.mxu1  ;;  %v2129_v49 = vadd.f32 %v2643_v45, %v2089_v44 }
 0x183   :  { %v2663_v46 = vpop.f32.mrf.mxu0 }
 0x184   :  { %v2685_v47 = vpop.f32.mrf.mxu1 }
 0x185   :  { %v2664_v48 = vpop.f32.mrf.mxu0 }
 0x186   :  { %v2665_v50 = vadd.f32 %v2664_v48, %v2663_v46  ;;  %v2686_v51 = vpop.f32.mrf.mxu1 }
 0x187   :  { %v2666_v52 = vpop.f32.mrf.mxu0  ;;  %v2687_v54 = vadd.f32 %v2686_v51, %v2685_v47 }
 0x188   :  { %v2169_v53 = vadd.f32 %v2665_v50, %v2129_v49  ;;  %v2688_v56 = vpop.f32.mrf.mxu1 }
 0x189   :  { %v2667_v57 = vpop.f32.mrf.mxu0 }
 0x18a   :  { %v2209_v58 = vadd.f32 %v2687_v54, %v2169_v53  ;;  %v2689_v35 = vpop.f32.mrf.mxu1 }
 0x18c   :  { %v2214_v59 = vadd.f32 %v2209_v58, %v20_v55 }
 0x18e   :  { %2215 = vst [vmem:[#allocation2] sm:$0x3] %v2214_v59 }
 0x195   :  { %v2219_v61 = vld [vmem:[#allocation2] sm:$0x3] }
 0x196   :  { %v2227_v62 = vadd.f32 %v2426_v60, %v2219_v61 }
 0x198   :  { %v2228_v63 = vmax.f32 %v2227_v62, 0.0 }
 0x19a   :  { %2229 = vst [vmem:[%s3539_s3] sm:$0x3] %v2228_v63 }

</bundles_post_ra>
